<compile_context>
chip_gen: v7x
topology: tpu7x:2x2x1
jax: 0.10.0
libtpu: 0.0.40
codegen_flags: <defaults>
</compile_context>

<pallas_src>
import jax
import jax.numpy as jnp
from jax.experimental import pallas as pl
from jax.experimental.pallas import tpu as pltpu

# ---- small synthetic model hyper-parameters ---------------------------------
VOCAB = 64      # vocab size
B = 2           # batch
S = 8           # sequence length
H = 32          # hidden size (emb_dim)
NH = 4          # attention heads
HD = H // NH    # head dim
F = 64          # FFN intermediate size
LAYERS = 2      # encoder layers
EPS = 1e-12
OUT_PAD = 128   # lane-dense padded classifier output width


# ---- small helpers used inside the kernel ------------------------------------
def _layernorm(x, g, b):
    mu = jnp.mean(x, axis=-1, keepdims=True)
    var = jnp.mean(jnp.square(x - mu), axis=-1, keepdims=True)
    return (x - mu) * jax.lax.rsqrt(var + EPS) * g + b


def _gelu(x):
    # TODO(synk): HF BERT uses exact erf GELU; tanh approximation used here
    # (erf has no guaranteed Mosaic lowering) — small numeric drift.
    c = jnp.float32((2.0 / jnp.pi) ** 0.5)
    return 0.5 * x * (1.0 + jnp.tanh(c * (x + 0.044715 * x * x * x)))


# ==============================================================================
# Single fused kernel: embedding LayerNorm -> LAYERS encoder layers ->
# tanh pooler on [CLS] -> Linear(H, 1) (lane-dense padded to 128 columns).
# Everything stays resident in VMEM; no grid (one block, one TensorCore).
# ==============================================================================
def _cls_fused_kernel(emb_ref, mask_ref, embln_ref,
                      wqkvo_ref, wi_ref, wo2_ref, smallh_ref, bi_ref,
                      wp_ref, bp_ref, wc_ref, bc_ref, o_ref):
    # ---- load everything once (total footprint ~100 KB, trivially fits VMEM)
    emb = emb_ref[...]                       # (B, S, H)
    mask = mask_ref[...]                     # (B, S)
    embln = embln_ref[...]                   # (2, H)  [gamma; beta]
    wqkvo = wqkvo_ref[...]                   # (LAYERS, 4, H, H)
    wi_all = wi_ref[...]                     # (LAYERS, H, F)
    wo2_all = wo2_ref[...]                   # (LAYERS, F, H)
    small = smallh_ref[...]                  # (LAYERS, 9, H)
    bi_all = bi_ref[...]                     # (LAYERS, 1, F)

    # ---- embedding LayerNorm on the folded (B*S, H) slab
    x2 = _layernorm(emb.reshape(B * S, H), embln[0:1], embln[1:2])

    # ---- attention mask bias, computed ONCE for the whole kernel (hoisted)
    neg = (mask - 1.0) * 1e9                                   # (B, S)
    neg3 = jnp.broadcast_to(neg[:, None, None, :],
                            (B, NH, 1, S)).reshape(B * NH, 1, S)
    scale = jnp.float32(1.0 / (HD ** 0.5))

    # ---- encoder layers (static unroll; LAYERS is tiny)
    for li in range(LAYERS):
        wq, wk, wv, wo = (wqkvo[li, 0], wqkvo[li, 1],
                          wqkvo[li, 2], wqkvo[li, 3])
        sl = small[li]                                         # (9, H)
        bq, bk, bv, bo = sl[0:1], sl[1:2], sl[2:3], sl[3:4]
        ln1g, ln1b = sl[4:5], sl[5:6]
        bo2 = sl[6:7]
        ln2g, ln2b = sl[7:8], sl[8:9]
        wi_l, bi_l, wo2_l = wi_all[li], bi_all[li], wo2_all[li]

        # QKV projections on the full (B*S, H) slab
        q = jnp.dot(x2, wq, preferred_element_type=jnp.float32) + bq
        k = jnp.dot(x2, wk, preferred_element_type=jnp.float32) + bk
        v = jnp.dot(x2, wv, preferred_element_type=jnp.float32) + bv

        # fold (batch, head) into a single batch dim -> one batched contraction
        q3 = q.reshape(B, S, NH, HD).transpose(0, 2, 1, 3).reshape(B * NH, S, HD)
        k3 = k.reshape(B, S, NH, HD).transpose(0, 2, 1, 3).reshape(B * NH, S, HD)
        v3 = v.reshape(B, S, NH, HD).transpose(0, 2, 1, 3).reshape(B * NH, S, HD)

        scores = jnp.einsum('bqd,bkd->bqk', q3, k3,
                            preferred_element_type=jnp.float32) * scale + neg3
        m = jnp.max(scores, axis=-1, keepdims=True)
        p = jnp.exp(scores - m)
        p = p * pl.reciprocal(jnp.sum(p, axis=-1, keepdims=True), approx=True)
        ctx = jnp.einsum('bqk,bkd->bqd', p, v3,
                         preferred_element_type=jnp.float32)    # (B*NH, S, HD)
        ctx2 = ctx.reshape(B, NH, S, HD).transpose(0, 2, 1, 3).reshape(B * S, H)

        attn_out = jnp.dot(ctx2, wo, preferred_element_type=jnp.float32) + bo
        h1 = _layernorm(x2 + attn_out, ln1g, ln1b)

        ff = _gelu(jnp.dot(h1, wi_l, preferred_element_type=jnp.float32) + bi_l)
        ff = jnp.dot(ff, wo2_l, preferred_element_type=jnp.float32) + bo2
        x2 = _layernorm(h1 + ff, ln2g, ln2b)

    # ---- pooler (tanh on [CLS] token) + classifier (lane-dense padded output)
    cls_tok = x2.reshape(B, S, H)[:, 0, :]                      # (B, H)
    pooled = jnp.tanh(
        jnp.dot(cls_tok, wp_ref[...], preferred_element_type=jnp.float32)
        + bp_ref[...])
    o_ref[...] = (jnp.dot(pooled, wc_ref[...],
                          preferred_element_type=jnp.float32) + bc_ref[...])


# ==============================================================================
# Parameter init (deterministic, packed layouts) and full forward
# ==============================================================================
def init_params(key):
    def nrm(k, shape, scale=0.02):
        return scale * jax.random.normal(k, shape, dtype=jnp.float32)

    keys = jax.random.split(key, 8 + LAYERS)

    wqkvo, wi_all, wo2_all, small_all = [], [], [], []
    for li in range(LAYERS):
        lk = jax.random.split(keys[8 + li], 6)
        wqkvo.append(jnp.stack([nrm(lk[0], (H, H)), nrm(lk[1], (H, H)),
                                nrm(lk[2], (H, H)), nrm(lk[3], (H, H))]))
        wi_all.append(nrm(lk[4], (H, F)))
        wo2_all.append(nrm(lk[5], (F, H)))
        # packed per-layer small params: rows =
        #   0:bq 1:bk 2:bv 3:bo 4:ln1g 5:ln1b 6:bo2 7:ln2g 8:ln2b
        sm = jnp.zeros((9, H), jnp.float32)
        sm = sm.at[4].set(1.0).at[7].set(1.0)
        small_all.append(sm)

    wc = nrm(keys[4], (H, 1))     # nn.Linear(emb_dim, 1) weight, stored [in, out]
    wc_pad = jnp.zeros((H, OUT_PAD), jnp.float32).at[:, 0:1].set(wc)

    params = {
        "word_emb": nrm(keys[0], (VOCAB, H)),
        "pos_emb": nrm(keys[1], (S, H)),
        "type_emb": nrm(keys[2], (2, H)),
        "emb_ln": jnp.concatenate(
            [jnp.ones((1, H), jnp.float32), jnp.zeros((1, H), jnp.float32)], 0),
        "wqkvo": jnp.stack(wqkvo),                 # (LAYERS, 4, H, H)
        "wi": jnp.stack(wi_all),                   # (LAYERS, H, F)
        "wo2": jnp.stack(wo2_all),                 # (LAYERS, F, H)
        "small_h": jnp.stack(small_all),           # (LAYERS, 9, H)
        "bi": jnp.zeros((LAYERS, 1, F), jnp.float32),
        "wp": nrm(keys[3], (H, H)),
        "bp": jnp.zeros((1, H), jnp.float32),
        "wc_pad": wc_pad,                          # (H, 128), col 0 = real weight
        "bc_pad": jnp.zeros((1, OUT_PAD), jnp.float32),
    }
    return params


def cls_forward(params, input_ids, attention_mask, labels=None):
    # `labels` is accepted (as in the PyTorch forward signature) but unused.
    del labels
    seq = input_ids.shape[1]
    # Embedding lookup is glue (gather) in plain JAX.
    emb = (params["word_emb"][input_ids]
           + params["pos_emb"][None, :seq, :]
           + params["type_emb"][0][None, None, :]).astype(jnp.float32)
    mask = attention_mask.astype(jnp.float32)                  # (B, S)

    logits_pad = pl.pallas_call(
        _cls_fused_kernel,
        out_shape=jax.ShapeDtypeStruct((B, OUT_PAD), jnp.float32),
    )(emb, mask, params["emb_ln"], params["wqkvo"], params["wi"],
      params["wo2"], params["small_h"], params["bi"],
      params["wp"], params["bp"], params["wc_pad"], params["bc_pad"])

    return logits_pad[:, :1]                                   # (B, 1)


if __name__ == "__main__":
    key = jax.random.PRNGKey(0)
    k_param, k_ids = jax.random.split(key)

    params = init_params(k_param)
    input_ids = jax.random.randint(k_ids, (B, S), 1, VOCAB, dtype=jnp.int32)
    attention_mask = jnp.ones((B, S), dtype=jnp.int32)
    attention_mask = attention_mask.at[1, S - 2:].set(0)       # pad tail of sample 1
    labels = jnp.zeros((B,), dtype=jnp.int32)                  # unused, as in PyTorch forward

    logits = cls_forward(params, input_ids, attention_mask, labels)
    logits = jax.block_until_ready(logits)
    assert logits.shape == (B, 1) and logits.dtype == jnp.float32
    print("KERNEL_OK")
</pallas_src>

<mosaic_0001>
module attributes {stable_mosaic.version = 11 : i64} {
  func.func @_cls_fused_kernel(%arg0: memref<2x8x32xf32, #tpu.memory_space<vmem>>, %arg1: memref<2x8xf32, #tpu.memory_space<vmem>>, %arg2: memref<2x32xf32, #tpu.memory_space<vmem>>, %arg3: memref<2x4x32x32xf32, #tpu.memory_space<vmem>>, %arg4: memref<2x32x64xf32, #tpu.memory_space<vmem>>, %arg5: memref<2x64x32xf32, #tpu.memory_space<vmem>>, %arg6: memref<2x9x32xf32, #tpu.memory_space<vmem>>, %arg7: memref<2x1x64xf32, #tpu.memory_space<vmem>>, %arg8: memref<32x32xf32, #tpu.memory_space<vmem>>, %arg9: memref<1x32xf32, #tpu.memory_space<vmem>>, %arg10: memref<32x128xf32, #tpu.memory_space<vmem>>, %arg11: memref<1x128xf32, #tpu.memory_space<vmem>>, %arg12: memref<2x128xf32, #tpu.memory_space<vmem>>) attributes {dimension_semantics = [], scalar_prefetch = 0 : i64, scratch_operands = 0 : i64, tpu.core_type = #tpu.core_type<tc>} {
    %c0 = arith.constant 0 : index
    %c0_0 = arith.constant 0 : index
    %c0_1 = arith.constant 0 : index
    %0 = vector.load %arg0[%c0, %c0_0, %c0_1] : memref<2x8x32xf32, #tpu.memory_space<vmem>>, vector<2x8x32xf32>
    %c0_2 = arith.constant 0 : index
    %c0_3 = arith.constant 0 : index
    %1 = vector.load %arg1[%c0_2, %c0_3] : memref<2x8xf32, #tpu.memory_space<vmem>>, vector<2x8xf32>
    %c0_4 = arith.constant 0 : index
    %c0_5 = arith.constant 0 : index
    %2 = vector.load %arg2[%c0_4, %c0_5] : memref<2x32xf32, #tpu.memory_space<vmem>>, vector<2x32xf32>
    %c0_6 = arith.constant 0 : index
    %c0_7 = arith.constant 0 : index
    %c0_8 = arith.constant 0 : index
    %c0_9 = arith.constant 0 : index
    %3 = vector.load %arg3[%c0_6, %c0_7, %c0_8, %c0_9] : memref<2x4x32x32xf32, #tpu.memory_space<vmem>>, vector<2x4x32x32xf32>
    %c0_10 = arith.constant 0 : index
    %c0_11 = arith.constant 0 : index
    %c0_12 = arith.constant 0 : index
    %4 = vector.load %arg4[%c0_10, %c0_11, %c0_12] : memref<2x32x64xf32, #tpu.memory_space<vmem>>, vector<2x32x64xf32>
    %c0_13 = arith.constant 0 : index
    %c0_14 = arith.constant 0 : index
    %c0_15 = arith.constant 0 : index
    %5 = vector.load %arg5[%c0_13, %c0_14, %c0_15] : memref<2x64x32xf32, #tpu.memory_space<vmem>>, vector<2x64x32xf32>
    %c0_16 = arith.constant 0 : index
    %c0_17 = arith.constant 0 : index
    %c0_18 = arith.constant 0 : index
    %6 = vector.load %arg6[%c0_16, %c0_17, %c0_18] : memref<2x9x32xf32, #tpu.memory_space<vmem>>, vector<2x9x32xf32>
    %c0_19 = arith.constant 0 : index
    %c0_20 = arith.constant 0 : index
    %c0_21 = arith.constant 0 : index
    %7 = vector.load %arg7[%c0_19, %c0_20, %c0_21] : memref<2x1x64xf32, #tpu.memory_space<vmem>>, vector<2x1x64xf32>
    %8 = vector.shape_cast %0 : vector<2x8x32xf32> to vector<16x32xf32>
    %9 = vector.extract_strided_slice %2 {offsets = [0, 0], sizes = [1, 32], strides = [1, 1]} : vector<2x32xf32> to vector<1x32xf32>
    %10 = vector.extract_strided_slice %2 {offsets = [1, 0], sizes = [1, 32], strides = [1, 1]} : vector<2x32xf32> to vector<1x32xf32>
    %cst = arith.constant dense<0.000000e+00> : vector<16xf32>
    %11 = vector.multi_reduction <add>, %8, %cst [1] : vector<16x32xf32> to vector<16xf32>
    %12 = vector.shape_cast %11 : vector<16xf32> to vector<16x1xf32>
    %cst_22 = arith.constant 3.200000e+01 : f32
    %13 = vector.broadcast %cst_22 : f32 to vector<16x1xf32>
    %14 = arith.divf %12, %13 : vector<16x1xf32>
    %15 = vector.broadcast %14 : vector<16x1xf32> to vector<16x32xf32>
    %16 = arith.subf %8, %15 : vector<16x32xf32>
    %17 = arith.mulf %16, %16 : vector<16x32xf32>
    %cst_23 = arith.constant dense<0.000000e+00> : vector<16xf32>
    %18 = vector.multi_reduction <add>, %17, %cst_23 [1] : vector<16x32xf32> to vector<16xf32>
    %19 = vector.shape_cast %18 : vector<16xf32> to vector<16x1xf32>
    %cst_24 = arith.constant 3.200000e+01 : f32
    %20 = vector.broadcast %cst_24 : f32 to vector<16x1xf32>
    %21 = arith.divf %19, %20 : vector<16x1xf32>
    %22 = vector.broadcast %14 : vector<16x1xf32> to vector<16x32xf32>
    %23 = arith.subf %8, %22 : vector<16x32xf32>
    %cst_25 = arith.constant 9.99999996E-13 : f32
    %24 = vector.broadcast %cst_25 : f32 to vector<16x1xf32>
    %25 = arith.addf %21, %24 : vector<16x1xf32>
    %26 = math.rsqrt %25 : vector<16x1xf32>
    %27 = vector.broadcast %26 : vector<16x1xf32> to vector<16x32xf32>
    %28 = arith.mulf %23, %27 : vector<16x32xf32>
    %29 = vector.broadcast %9 : vector<1x32xf32> to vector<16x32xf32>
    %30 = arith.mulf %28, %29 : vector<16x32xf32>
    %31 = vector.broadcast %10 : vector<1x32xf32> to vector<16x32xf32>
    %32 = arith.addf %30, %31 : vector<16x32xf32>
    %cst_26 = arith.constant 1.000000e+00 : f32
    %33 = vector.broadcast %cst_26 : f32 to vector<2x8xf32>
    %34 = arith.subf %1, %33 : vector<2x8xf32>
    %cst_27 = arith.constant 1.000000e+09 : f32
    %35 = vector.broadcast %cst_27 : f32 to vector<2x8xf32>
    %36 = arith.mulf %34, %35 : vector<2x8xf32>
    %37 = vector.shape_cast %36 : vector<2x8xf32> to vector<2x1x1x8xf32>
    %38 = vector.shape_cast %37 : vector<2x1x1x8xf32> to vector<2x1x1x8xf32>
    %39 = vector.broadcast %38 : vector<2x1x1x8xf32> to vector<2x4x1x8xf32>
    %40 = vector.shape_cast %39 : vector<2x4x1x8xf32> to vector<8x1x8xf32>
    %41 = vector.extract_strided_slice %3 {offsets = [0, 0, 0, 0], sizes = [1, 1, 32, 32], strides = [1, 1, 1, 1]} : vector<2x4x32x32xf32> to vector<1x1x32x32xf32>
    %42 = vector.shape_cast %41 : vector<1x1x32x32xf32> to vector<32x32xf32>
    %43 = vector.extract_strided_slice %3 {offsets = [0, 1, 0, 0], sizes = [1, 1, 32, 32], strides = [1, 1, 1, 1]} : vector<2x4x32x32xf32> to vector<1x1x32x32xf32>
    %44 = vector.shape_cast %43 : vector<1x1x32x32xf32> to vector<32x32xf32>
    %45 = vector.extract_strided_slice %3 {offsets = [0, 2, 0, 0], sizes = [1, 1, 32, 32], strides = [1, 1, 1, 1]} : vector<2x4x32x32xf32> to vector<1x1x32x32xf32>
    %46 = vector.shape_cast %45 : vector<1x1x32x32xf32> to vector<32x32xf32>
    %47 = vector.extract_strided_slice %3 {offsets = [0, 3, 0, 0], sizes = [1, 1, 32, 32], strides = [1, 1, 1, 1]} : vector<2x4x32x32xf32> to vector<1x1x32x32xf32>
    %48 = vector.shape_cast %47 : vector<1x1x32x32xf32> to vector<32x32xf32>
    %49 = vector.extract_strided_slice %6 {offsets = [0, 0, 0], sizes = [1, 9, 32], strides = [1, 1, 1]} : vector<2x9x32xf32> to vector<1x9x32xf32>
    %50 = vector.shape_cast %49 : vector<1x9x32xf32> to vector<9x32xf32>
    %51 = vector.extract_strided_slice %50 {offsets = [0, 0], sizes = [1, 32], strides = [1, 1]} : vector<9x32xf32> to vector<1x32xf32>
    %52 = vector.extract_strided_slice %50 {offsets = [1, 0], sizes = [1, 32], strides = [1, 1]} : vector<9x32xf32> to vector<1x32xf32>
    %53 = vector.extract_strided_slice %50 {offsets = [2, 0], sizes = [1, 32], strides = [1, 1]} : vector<9x32xf32> to vector<1x32xf32>
    %54 = vector.extract_strided_slice %50 {offsets = [3, 0], sizes = [1, 32], strides = [1, 1]} : vector<9x32xf32> to vector<1x32xf32>
    %55 = vector.extract_strided_slice %50 {offsets = [4, 0], sizes = [1, 32], strides = [1, 1]} : vector<9x32xf32> to vector<1x32xf32>
    %56 = vector.extract_strided_slice %50 {offsets = [5, 0], sizes = [1, 32], strides = [1, 1]} : vector<9x32xf32> to vector<1x32xf32>
    %57 = vector.extract_strided_slice %50 {offsets = [6, 0], sizes = [1, 32], strides = [1, 1]} : vector<9x32xf32> to vector<1x32xf32>
    %58 = vector.extract_strided_slice %50 {offsets = [7, 0], sizes = [1, 32], strides = [1, 1]} : vector<9x32xf32> to vector<1x32xf32>
    %59 = vector.extract_strided_slice %50 {offsets = [8, 0], sizes = [1, 32], strides = [1, 1]} : vector<9x32xf32> to vector<1x32xf32>
    %60 = vector.extract_strided_slice %4 {offsets = [0, 0, 0], sizes = [1, 32, 64], strides = [1, 1, 1]} : vector<2x32x64xf32> to vector<1x32x64xf32>
    %61 = vector.shape_cast %60 : vector<1x32x64xf32> to vector<32x64xf32>
    %62 = vector.extract_strided_slice %7 {offsets = [0, 0, 0], sizes = [1, 1, 64], strides = [1, 1, 1]} : vector<2x1x64xf32> to vector<1x1x64xf32>
    %63 = vector.shape_cast %62 : vector<1x1x64xf32> to vector<1x64xf32>
    %64 = vector.extract_strided_slice %5 {offsets = [0, 0, 0], sizes = [1, 64, 32], strides = [1, 1, 1]} : vector<2x64x32xf32> to vector<1x64x32xf32>
    %65 = vector.shape_cast %64 : vector<1x64x32xf32> to vector<64x32xf32>
    %cst_28 = arith.constant dense<0.000000e+00> : vector<16x32xf32>
    %66 = tpu.matmul %32, %42, %cst_28 {dimension_numbers = #tpu.dot_dimension_numbers<[1], [0], [0], [1], [0, 0, 1, 1], [], []>} : vector<16x32xf32>, vector<32x32xf32>, vector<16x32xf32> -> vector<16x32xf32>
    %67 = vector.broadcast %51 : vector<1x32xf32> to vector<16x32xf32>
    %68 = arith.addf %66, %67 : vector<16x32xf32>
    %cst_29 = arith.constant dense<0.000000e+00> : vector<16x32xf32>
    %69 = tpu.matmul %32, %44, %cst_29 {dimension_numbers = #tpu.dot_dimension_numbers<[1], [0], [0], [1], [0, 0, 1, 1], [], []>} : vector<16x32xf32>, vector<32x32xf32>, vector<16x32xf32> -> vector<16x32xf32>
    %70 = vector.broadcast %52 : vector<1x32xf32> to vector<16x32xf32>
    %71 = arith.addf %69, %70 : vector<16x32xf32>
    %cst_30 = arith.constant dense<0.000000e+00> : vector<16x32xf32>
    %72 = tpu.matmul %32, %46, %cst_30 {dimension_numbers = #tpu.dot_dimension_numbers<[1], [0], [0], [1], [0, 0, 1, 1], [], []>} : vector<16x32xf32>, vector<32x32xf32>, vector<16x32xf32> -> vector<16x32xf32>
    %73 = vector.broadcast %53 : vector<1x32xf32> to vector<16x32xf32>
    %74 = arith.addf %72, %73 : vector<16x32xf32>
    %75 = vector.shape_cast %68 : vector<16x32xf32> to vector<2x8x4x8xf32>
    %76 = tpu.transpose %75, [0, 2, 1, 3] : vector<2x8x4x8xf32> -> vector<2x4x8x8xf32>
    %77 = vector.shape_cast %76 : vector<2x4x8x8xf32> to vector<8x8x8xf32>
    %78 = vector.shape_cast %71 : vector<16x32xf32> to vector<2x8x4x8xf32>
    %79 = tpu.transpose %78, [0, 2, 1, 3] : vector<2x8x4x8xf32> -> vector<2x4x8x8xf32>
    %80 = vector.shape_cast %79 : vector<2x4x8x8xf32> to vector<8x8x8xf32>
    %81 = vector.shape_cast %74 : vector<16x32xf32> to vector<2x8x4x8xf32>
    %82 = tpu.transpose %81, [0, 2, 1, 3] : vector<2x8x4x8xf32> -> vector<2x4x8x8xf32>
    %83 = vector.shape_cast %82 : vector<2x4x8x8xf32> to vector<8x8x8xf32>
    "tpu.trace_start"() <{level = 10 : i32, message = "bqd,bkd->bqk"}> : () -> ()
    %cst_31 = arith.constant dense<0.000000e+00> : vector<8x8x8xf32>
    %84 = tpu.matmul %77, %80, %cst_31 {dimension_numbers = #tpu.dot_dimension_numbers<[2], [2], [1], [1], [0, 0, 0, 1, 1, 1], [0], [0]>} : vector<8x8x8xf32>, vector<8x8x8xf32>, vector<8x8x8xf32> -> vector<8x8x8xf32>
    "tpu.trace_stop"() : () -> ()
    %cst_32 = arith.constant 0.353553385 : f32
    %85 = vector.broadcast %cst_32 : f32 to vector<8x8x8xf32>
    %86 = arith.mulf %84, %85 : vector<8x8x8xf32>
    %87 = vector.broadcast %40 : vector<8x1x8xf32> to vector<8x8x8xf32>
    %88 = arith.addf %86, %87 : vector<8x8x8xf32>
    %cst_33 = arith.constant dense<0xFF800000> : vector<8x8xf32>
    %89 = vector.multi_reduction <maximumf>, %88, %cst_33 [2] : vector<8x8x8xf32> to vector<8x8xf32>
    %90 = vector.shape_cast %89 : vector<8x8xf32> to vector<8x8x1xf32>
    %91 = vector.broadcast %90 : vector<8x8x1xf32> to vector<8x8x8xf32>
    %92 = arith.subf %88, %91 : vector<8x8x8xf32>
    %93 = math.exp %92 : vector<8x8x8xf32>
    %cst_34 = arith.constant dense<0.000000e+00> : vector<8x8xf32>
    %94 = vector.multi_reduction <add>, %93, %cst_34 [2] : vector<8x8x8xf32> to vector<8x8xf32>
    %95 = vector.shape_cast %94 : vector<8x8xf32> to vector<8x8x1xf32>
    %96 = tpu.reciprocal %95 {approx = true} : vector<8x8x1xf32> -> vector<8x8x1xf32>
    %97 = vector.broadcast %96 : vector<8x8x1xf32> to vector<8x8x8xf32>
    %98 = arith.mulf %93, %97 : vector<8x8x8xf32>
    "tpu.trace_start"() <{level = 10 : i32, message = "bqk,bkd->bqd"}> : () -> ()
    %cst_35 = arith.constant dense<0.000000e+00> : vector<8x8x8xf32>
    %99 = tpu.matmul %98, %83, %cst_35 {dimension_numbers = #tpu.dot_dimension_numbers<[2], [1], [1], [2], [0, 0, 0, 1, 1, 2], [0], [0]>} : vector<8x8x8xf32>, vector<8x8x8xf32>, vector<8x8x8xf32> -> vector<8x8x8xf32>
    "tpu.trace_stop"() : () -> ()
    %100 = vector.shape_cast %99 : vector<8x8x8xf32> to vector<2x4x8x8xf32>
    %101 = tpu.transpose %100, [0, 2, 1, 3] : vector<2x4x8x8xf32> -> vector<2x8x4x8xf32>
    %102 = vector.shape_cast %101 : vector<2x8x4x8xf32> to vector<16x32xf32>
    %cst_36 = arith.constant dense<0.000000e+00> : vector<16x32xf32>
    %103 = tpu.matmul %102, %48, %cst_36 {dimension_numbers = #tpu.dot_dimension_numbers<[1], [0], [0], [1], [0, 0, 1, 1], [], []>} : vector<16x32xf32>, vector<32x32xf32>, vector<16x32xf32> -> vector<16x32xf32>
    %104 = vector.broadcast %54 : vector<1x32xf32> to vector<16x32xf32>
    %105 = arith.addf %103, %104 : vector<16x32xf32>
    %106 = arith.addf %32, %105 : vector<16x32xf32>
    %cst_37 = arith.constant dense<0.000000e+00> : vector<16xf32>
    %107 = vector.multi_reduction <add>, %106, %cst_37 [1] : vector<16x32xf32> to vector<16xf32>
    %108 = vector.shape_cast %107 : vector<16xf32> to vector<16x1xf32>
    %cst_38 = arith.constant 3.200000e+01 : f32
    %109 = vector.broadcast %cst_38 : f32 to vector<16x1xf32>
    %110 = arith.divf %108, %109 : vector<16x1xf32>
    %111 = vector.broadcast %110 : vector<16x1xf32> to vector<16x32xf32>
    %112 = arith.subf %106, %111 : vector<16x32xf32>
    %113 = arith.mulf %112, %112 : vector<16x32xf32>
    %cst_39 = arith.constant dense<0.000000e+00> : vector<16xf32>
    %114 = vector.multi_reduction <add>, %113, %cst_39 [1] : vector<16x32xf32> to vector<16xf32>
    %115 = vector.shape_cast %114 : vector<16xf32> to vector<16x1xf32>
    %cst_40 = arith.constant 3.200000e+01 : f32
    %116 = vector.broadcast %cst_40 : f32 to vector<16x1xf32>
    %117 = arith.divf %115, %116 : vector<16x1xf32>
    %118 = vector.broadcast %110 : vector<16x1xf32> to vector<16x32xf32>
    %119 = arith.subf %106, %118 : vector<16x32xf32>
    %cst_41 = arith.constant 9.99999996E-13 : f32
    %120 = vector.broadcast %cst_41 : f32 to vector<16x1xf32>
    %121 = arith.addf %117, %120 : vector<16x1xf32>
    %122 = math.rsqrt %121 : vector<16x1xf32>
    %123 = vector.broadcast %122 : vector<16x1xf32> to vector<16x32xf32>
    %124 = arith.mulf %119, %123 : vector<16x32xf32>
    %125 = vector.broadcast %55 : vector<1x32xf32> to vector<16x32xf32>
    %126 = arith.mulf %124, %125 : vector<16x32xf32>
    %127 = vector.broadcast %56 : vector<1x32xf32> to vector<16x32xf32>
    %128 = arith.addf %126, %127 : vector<16x32xf32>
    %cst_42 = arith.constant dense<0.000000e+00> : vector<16x64xf32>
    %129 = tpu.matmul %128, %61, %cst_42 {dimension_numbers = #tpu.dot_dimension_numbers<[1], [0], [0], [1], [0, 0, 1, 1], [], []>} : vector<16x32xf32>, vector<32x64xf32>, vector<16x64xf32> -> vector<16x64xf32>
    %130 = vector.broadcast %63 : vector<1x64xf32> to vector<16x64xf32>
    %131 = arith.addf %129, %130 : vector<16x64xf32>
    %cst_43 = arith.constant 5.000000e-01 : f32
    %132 = vector.broadcast %cst_43 : f32 to vector<16x64xf32>
    %133 = arith.mulf %132, %131 : vector<16x64xf32>
    %cst_44 = arith.constant 4.471500e-02 : f32
    %134 = vector.broadcast %cst_44 : f32 to vector<16x64xf32>
    %135 = arith.mulf %134, %131 : vector<16x64xf32>
    %136 = arith.mulf %135, %131 : vector<16x64xf32>
    %137 = arith.mulf %136, %131 : vector<16x64xf32>
    %138 = arith.addf %131, %137 : vector<16x64xf32>
    %cst_45 = arith.constant 0.797884583 : f32
    %139 = vector.broadcast %cst_45 : f32 to vector<16x64xf32>
    %140 = arith.mulf %139, %138 : vector<16x64xf32>
    %141 = math.tanh %140 : vector<16x64xf32>
    %cst_46 = arith.constant 1.000000e+00 : f32
    %142 = vector.broadcast %cst_46 : f32 to vector<16x64xf32>
    %143 = arith.addf %142, %141 : vector<16x64xf32>
    %144 = arith.mulf %133, %143 : vector<16x64xf32>
    %cst_47 = arith.constant dense<0.000000e+00> : vector<16x32xf32>
    %145 = tpu.matmul %144, %65, %cst_47 {dimension_numbers = #tpu.dot_dimension_numbers<[1], [0], [0], [1], [0, 0, 1, 1], [], []>} : vector<16x64xf32>, vector<64x32xf32>, vector<16x32xf32> -> vector<16x32xf32>
    %146 = vector.broadcast %57 : vector<1x32xf32> to vector<16x32xf32>
    %147 = arith.addf %145, %146 : vector<16x32xf32>
    %148 = arith.addf %128, %147 : vector<16x32xf32>
    %cst_48 = arith.constant dense<0.000000e+00> : vector<16xf32>
    %149 = vector.multi_reduction <add>, %148, %cst_48 [1] : vector<16x32xf32> to vector<16xf32>
    %150 = vector.shape_cast %149 : vector<16xf32> to vector<16x1xf32>
    %cst_49 = arith.constant 3.200000e+01 : f32
    %151 = vector.broadcast %cst_49 : f32 to vector<16x1xf32>
    %152 = arith.divf %150, %151 : vector<16x1xf32>
    %153 = vector.broadcast %152 : vector<16x1xf32> to vector<16x32xf32>
    %154 = arith.subf %148, %153 : vector<16x32xf32>
    %155 = arith.mulf %154, %154 : vector<16x32xf32>
    %cst_50 = arith.constant dense<0.000000e+00> : vector<16xf32>
    %156 = vector.multi_reduction <add>, %155, %cst_50 [1] : vector<16x32xf32> to vector<16xf32>
    %157 = vector.shape_cast %156 : vector<16xf32> to vector<16x1xf32>
    %cst_51 = arith.constant 3.200000e+01 : f32
    %158 = vector.broadcast %cst_51 : f32 to vector<16x1xf32>
    %159 = arith.divf %157, %158 : vector<16x1xf32>
    %160 = vector.broadcast %152 : vector<16x1xf32> to vector<16x32xf32>
    %161 = arith.subf %148, %160 : vector<16x32xf32>
    %cst_52 = arith.constant 9.99999996E-13 : f32
    %162 = vector.broadcast %cst_52 : f32 to vector<16x1xf32>
    %163 = arith.addf %159, %162 : vector<16x1xf32>
    %164 = math.rsqrt %163 : vector<16x1xf32>
    %165 = vector.broadcast %164 : vector<16x1xf32> to vector<16x32xf32>
    %166 = arith.mulf %161, %165 : vector<16x32xf32>
    %167 = vector.broadcast %58 : vector<1x32xf32> to vector<16x32xf32>
    %168 = arith.mulf %166, %167 : vector<16x32xf32>
    %169 = vector.broadcast %59 : vector<1x32xf32> to vector<16x32xf32>
    %170 = arith.addf %168, %169 : vector<16x32xf32>
    %171 = vector.extract_strided_slice %3 {offsets = [1, 0, 0, 0], sizes = [1, 1, 32, 32], strides = [1, 1, 1, 1]} : vector<2x4x32x32xf32> to vector<1x1x32x32xf32>
    %172 = vector.shape_cast %171 : vector<1x1x32x32xf32> to vector<32x32xf32>
    %173 = vector.extract_strided_slice %3 {offsets = [1, 1, 0, 0], sizes = [1, 1, 32, 32], strides = [1, 1, 1, 1]} : vector<2x4x32x32xf32> to vector<1x1x32x32xf32>
    %174 = vector.shape_cast %173 : vector<1x1x32x32xf32> to vector<32x32xf32>
    %175 = vector.extract_strided_slice %3 {offsets = [1, 2, 0, 0], sizes = [1, 1, 32, 32], strides = [1, 1, 1, 1]} : vector<2x4x32x32xf32> to vector<1x1x32x32xf32>
    %176 = vector.shape_cast %175 : vector<1x1x32x32xf32> to vector<32x32xf32>
    %177 = vector.extract_strided_slice %3 {offsets = [1, 3, 0, 0], sizes = [1, 1, 32, 32], strides = [1, 1, 1, 1]} : vector<2x4x32x32xf32> to vector<1x1x32x32xf32>
    %178 = vector.shape_cast %177 : vector<1x1x32x32xf32> to vector<32x32xf32>
    %179 = vector.extract_strided_slice %6 {offsets = [1, 0, 0], sizes = [1, 9, 32], strides = [1, 1, 1]} : vector<2x9x32xf32> to vector<1x9x32xf32>
    %180 = vector.shape_cast %179 : vector<1x9x32xf32> to vector<9x32xf32>
    %181 = vector.extract_strided_slice %180 {offsets = [0, 0], sizes = [1, 32], strides = [1, 1]} : vector<9x32xf32> to vector<1x32xf32>
    %182 = vector.extract_strided_slice %180 {offsets = [1, 0], sizes = [1, 32], strides = [1, 1]} : vector<9x32xf32> to vector<1x32xf32>
    %183 = vector.extract_strided_slice %180 {offsets = [2, 0], sizes = [1, 32], strides = [1, 1]} : vector<9x32xf32> to vector<1x32xf32>
    %184 = vector.extract_strided_slice %180 {offsets = [3, 0], sizes = [1, 32], strides = [1, 1]} : vector<9x32xf32> to vector<1x32xf32>
    %185 = vector.extract_strided_slice %180 {offsets = [4, 0], sizes = [1, 32], strides = [1, 1]} : vector<9x32xf32> to vector<1x32xf32>
    %186 = vector.extract_strided_slice %180 {offsets = [5, 0], sizes = [1, 32], strides = [1, 1]} : vector<9x32xf32> to vector<1x32xf32>
    %187 = vector.extract_strided_slice %180 {offsets = [6, 0], sizes = [1, 32], strides = [1, 1]} : vector<9x32xf32> to vector<1x32xf32>
    %188 = vector.extract_strided_slice %180 {offsets = [7, 0], sizes = [1, 32], strides = [1, 1]} : vector<9x32xf32> to vector<1x32xf32>
    %189 = vector.extract_strided_slice %180 {offsets = [8, 0], sizes = [1, 32], strides = [1, 1]} : vector<9x32xf32> to vector<1x32xf32>
    %190 = vector.extract_strided_slice %4 {offsets = [1, 0, 0], sizes = [1, 32, 64], strides = [1, 1, 1]} : vector<2x32x64xf32> to vector<1x32x64xf32>
    %191 = vector.shape_cast %190 : vector<1x32x64xf32> to vector<32x64xf32>
    %192 = vector.extract_strided_slice %7 {offsets = [1, 0, 0], sizes = [1, 1, 64], strides = [1, 1, 1]} : vector<2x1x64xf32> to vector<1x1x64xf32>
    %193 = vector.shape_cast %192 : vector<1x1x64xf32> to vector<1x64xf32>
    %194 = vector.extract_strided_slice %5 {offsets = [1, 0, 0], sizes = [1, 64, 32], strides = [1, 1, 1]} : vector<2x64x32xf32> to vector<1x64x32xf32>
    %195 = vector.shape_cast %194 : vector<1x64x32xf32> to vector<64x32xf32>
    %cst_53 = arith.constant dense<0.000000e+00> : vector<16x32xf32>
    %196 = tpu.matmul %170, %172, %cst_53 {dimension_numbers = #tpu.dot_dimension_numbers<[1], [0], [0], [1], [0, 0, 1, 1], [], []>} : vector<16x32xf32>, vector<32x32xf32>, vector<16x32xf32> -> vector<16x32xf32>
    %197 = vector.broadcast %181 : vector<1x32xf32> to vector<16x32xf32>
    %198 = arith.addf %196, %197 : vector<16x32xf32>
    %cst_54 = arith.constant dense<0.000000e+00> : vector<16x32xf32>
    %199 = tpu.matmul %170, %174, %cst_54 {dimension_numbers = #tpu.dot_dimension_numbers<[1], [0], [0], [1], [0, 0, 1, 1], [], []>} : vector<16x32xf32>, vector<32x32xf32>, vector<16x32xf32> -> vector<16x32xf32>
    %200 = vector.broadcast %182 : vector<1x32xf32> to vector<16x32xf32>
    %201 = arith.addf %199, %200 : vector<16x32xf32>
    %cst_55 = arith.constant dense<0.000000e+00> : vector<16x32xf32>
    %202 = tpu.matmul %170, %176, %cst_55 {dimension_numbers = #tpu.dot_dimension_numbers<[1], [0], [0], [1], [0, 0, 1, 1], [], []>} : vector<16x32xf32>, vector<32x32xf32>, vector<16x32xf32> -> vector<16x32xf32>
    %203 = vector.broadcast %183 : vector<1x32xf32> to vector<16x32xf32>
    %204 = arith.addf %202, %203 : vector<16x32xf32>
    %205 = vector.shape_cast %198 : vector<16x32xf32> to vector<2x8x4x8xf32>
    %206 = tpu.transpose %205, [0, 2, 1, 3] : vector<2x8x4x8xf32> -> vector<2x4x8x8xf32>
    %207 = vector.shape_cast %206 : vector<2x4x8x8xf32> to vector<8x8x8xf32>
    %208 = vector.shape_cast %201 : vector<16x32xf32> to vector<2x8x4x8xf32>
    %209 = tpu.transpose %208, [0, 2, 1, 3] : vector<2x8x4x8xf32> -> vector<2x4x8x8xf32>
    %210 = vector.shape_cast %209 : vector<2x4x8x8xf32> to vector<8x8x8xf32>
    %211 = vector.shape_cast %204 : vector<16x32xf32> to vector<2x8x4x8xf32>
    %212 = tpu.transpose %211, [0, 2, 1, 3] : vector<2x8x4x8xf32> -> vector<2x4x8x8xf32>
    %213 = vector.shape_cast %212 : vector<2x4x8x8xf32> to vector<8x8x8xf32>
    "tpu.trace_start"() <{level = 10 : i32, message = "bqd,bkd->bqk"}> : () -> ()
    %cst_56 = arith.constant dense<0.000000e+00> : vector<8x8x8xf32>
    %214 = tpu.matmul %207, %210, %cst_56 {dimension_numbers = #tpu.dot_dimension_numbers<[2], [2], [1], [1], [0, 0, 0, 1, 1, 1], [0], [0]>} : vector<8x8x8xf32>, vector<8x8x8xf32>, vector<8x8x8xf32> -> vector<8x8x8xf32>
    "tpu.trace_stop"() : () -> ()
    %cst_57 = arith.constant 0.353553385 : f32
    %215 = vector.broadcast %cst_57 : f32 to vector<8x8x8xf32>
    %216 = arith.mulf %214, %215 : vector<8x8x8xf32>
    %217 = vector.broadcast %40 : vector<8x1x8xf32> to vector<8x8x8xf32>
    %218 = arith.addf %216, %217 : vector<8x8x8xf32>
    %cst_58 = arith.constant dense<0xFF800000> : vector<8x8xf32>
    %219 = vector.multi_reduction <maximumf>, %218, %cst_58 [2] : vector<8x8x8xf32> to vector<8x8xf32>
    %220 = vector.shape_cast %219 : vector<8x8xf32> to vector<8x8x1xf32>
    %221 = vector.broadcast %220 : vector<8x8x1xf32> to vector<8x8x8xf32>
    %222 = arith.subf %218, %221 : vector<8x8x8xf32>
    %223 = math.exp %222 : vector<8x8x8xf32>
    %cst_59 = arith.constant dense<0.000000e+00> : vector<8x8xf32>
    %224 = vector.multi_reduction <add>, %223, %cst_59 [2] : vector<8x8x8xf32> to vector<8x8xf32>
    %225 = vector.shape_cast %224 : vector<8x8xf32> to vector<8x8x1xf32>
    %226 = tpu.reciprocal %225 {approx = true} : vector<8x8x1xf32> -> vector<8x8x1xf32>
    %227 = vector.broadcast %226 : vector<8x8x1xf32> to vector<8x8x8xf32>
    %228 = arith.mulf %223, %227 : vector<8x8x8xf32>
    "tpu.trace_start"() <{level = 10 : i32, message = "bqk,bkd->bqd"}> : () -> ()
    %cst_60 = arith.constant dense<0.000000e+00> : vector<8x8x8xf32>
    %229 = tpu.matmul %228, %213, %cst_60 {dimension_numbers = #tpu.dot_dimension_numbers<[2], [1], [1], [2], [0, 0, 0, 1, 1, 2], [0], [0]>} : vector<8x8x8xf32>, vector<8x8x8xf32>, vector<8x8x8xf32> -> vector<8x8x8xf32>
    "tpu.trace_stop"() : () -> ()
    %230 = vector.shape_cast %229 : vector<8x8x8xf32> to vector<2x4x8x8xf32>
    %231 = tpu.transpose %230, [0, 2, 1, 3] : vector<2x4x8x8xf32> -> vector<2x8x4x8xf32>
    %232 = vector.shape_cast %231 : vector<2x8x4x8xf32> to vector<16x32xf32>
    %cst_61 = arith.constant dense<0.000000e+00> : vector<16x32xf32>
    %233 = tpu.matmul %232, %178, %cst_61 {dimension_numbers = #tpu.dot_dimension_numbers<[1], [0], [0], [1], [0, 0, 1, 1], [], []>} : vector<16x32xf32>, vector<32x32xf32>, vector<16x32xf32> -> vector<16x32xf32>
    %234 = vector.broadcast %184 : vector<1x32xf32> to vector<16x32xf32>
    %235 = arith.addf %233, %234 : vector<16x32xf32>
    %236 = arith.addf %170, %235 : vector<16x32xf32>
    %cst_62 = arith.constant dense<0.000000e+00> : vector<16xf32>
    %237 = vector.multi_reduction <add>, %236, %cst_62 [1] : vector<16x32xf32> to vector<16xf32>
    %238 = vector.shape_cast %237 : vector<16xf32> to vector<16x1xf32>
    %cst_63 = arith.constant 3.200000e+01 : f32
    %239 = vector.broadcast %cst_63 : f32 to vector<16x1xf32>
    %240 = arith.divf %238, %239 : vector<16x1xf32>
    %241 = vector.broadcast %240 : vector<16x1xf32> to vector<16x32xf32>
    %242 = arith.subf %236, %241 : vector<16x32xf32>
    %243 = arith.mulf %242, %242 : vector<16x32xf32>
    %cst_64 = arith.constant dense<0.000000e+00> : vector<16xf32>
    %244 = vector.multi_reduction <add>, %243, %cst_64 [1] : vector<16x32xf32> to vector<16xf32>
    %245 = vector.shape_cast %244 : vector<16xf32> to vector<16x1xf32>
    %cst_65 = arith.constant 3.200000e+01 : f32
    %246 = vector.broadcast %cst_65 : f32 to vector<16x1xf32>
    %247 = arith.divf %245, %246 : vector<16x1xf32>
    %248 = vector.broadcast %240 : vector<16x1xf32> to vector<16x32xf32>
    %249 = arith.subf %236, %248 : vector<16x32xf32>
    %cst_66 = arith.constant 9.99999996E-13 : f32
    %250 = vector.broadcast %cst_66 : f32 to vector<16x1xf32>
    %251 = arith.addf %247, %250 : vector<16x1xf32>
    %252 = math.rsqrt %251 : vector<16x1xf32>
    %253 = vector.broadcast %252 : vector<16x1xf32> to vector<16x32xf32>
    %254 = arith.mulf %249, %253 : vector<16x32xf32>
    %255 = vector.broadcast %185 : vector<1x32xf32> to vector<16x32xf32>
    %256 = arith.mulf %254, %255 : vector<16x32xf32>
    %257 = vector.broadcast %186 : vector<1x32xf32> to vector<16x32xf32>
    %258 = arith.addf %256, %257 : vector<16x32xf32>
    %cst_67 = arith.constant dense<0.000000e+00> : vector<16x64xf32>
    %259 = tpu.matmul %258, %191, %cst_67 {dimension_numbers = #tpu.dot_dimension_numbers<[1], [0], [0], [1], [0, 0, 1, 1], [], []>} : vector<16x32xf32>, vector<32x64xf32>, vector<16x64xf32> -> vector<16x64xf32>
    %260 = vector.broadcast %193 : vector<1x64xf32> to vector<16x64xf32>
    %261 = arith.addf %259, %260 : vector<16x64xf32>
    %cst_68 = arith.constant 5.000000e-01 : f32
    %262 = vector.broadcast %cst_68 : f32 to vector<16x64xf32>
    %263 = arith.mulf %262, %261 : vector<16x64xf32>
    %cst_69 = arith.constant 4.471500e-02 : f32
    %264 = vector.broadcast %cst_69 : f32 to vector<16x64xf32>
    %265 = arith.mulf %264, %261 : vector<16x64xf32>
    %266 = arith.mulf %265, %261 : vector<16x64xf32>
    %267 = arith.mulf %266, %261 : vector<16x64xf32>
    %268 = arith.addf %261, %267 : vector<16x64xf32>
    %cst_70 = arith.constant 0.797884583 : f32
    %269 = vector.broadcast %cst_70 : f32 to vector<16x64xf32>
    %270 = arith.mulf %269, %268 : vector<16x64xf32>
    %271 = math.tanh %270 : vector<16x64xf32>
    %cst_71 = arith.constant 1.000000e+00 : f32
    %272 = vector.broadcast %cst_71 : f32 to vector<16x64xf32>
    %273 = arith.addf %272, %271 : vector<16x64xf32>
    %274 = arith.mulf %263, %273 : vector<16x64xf32>
    %cst_72 = arith.constant dense<0.000000e+00> : vector<16x32xf32>
    %275 = tpu.matmul %274, %195, %cst_72 {dimension_numbers = #tpu.dot_dimension_numbers<[1], [0], [0], [1], [0, 0, 1, 1], [], []>} : vector<16x64xf32>, vector<64x32xf32>, vector<16x32xf32> -> vector<16x32xf32>
    %276 = vector.broadcast %187 : vector<1x32xf32> to vector<16x32xf32>
    %277 = arith.addf %275, %276 : vector<16x32xf32>
    %278 = arith.addf %258, %277 : vector<16x32xf32>
    %cst_73 = arith.constant dense<0.000000e+00> : vector<16xf32>
    %279 = vector.multi_reduction <add>, %278, %cst_73 [1] : vector<16x32xf32> to vector<16xf32>
    %280 = vector.shape_cast %279 : vector<16xf32> to vector<16x1xf32>
    %cst_74 = arith.constant 3.200000e+01 : f32
    %281 = vector.broadcast %cst_74 : f32 to vector<16x1xf32>
    %282 = arith.divf %280, %281 : vector<16x1xf32>
    %283 = vector.broadcast %282 : vector<16x1xf32> to vector<16x32xf32>
    %284 = arith.subf %278, %283 : vector<16x32xf32>
    %285 = arith.mulf %284, %284 : vector<16x32xf32>
    %cst_75 = arith.constant dense<0.000000e+00> : vector<16xf32>
    %286 = vector.multi_reduction <add>, %285, %cst_75 [1] : vector<16x32xf32> to vector<16xf32>
    %287 = vector.shape_cast %286 : vector<16xf32> to vector<16x1xf32>
    %cst_76 = arith.constant 3.200000e+01 : f32
    %288 = vector.broadcast %cst_76 : f32 to vector<16x1xf32>
    %289 = arith.divf %287, %288 : vector<16x1xf32>
    %290 = vector.broadcast %282 : vector<16x1xf32> to vector<16x32xf32>
    %291 = arith.subf %278, %290 : vector<16x32xf32>
    %cst_77 = arith.constant 9.99999996E-13 : f32
    %292 = vector.broadcast %cst_77 : f32 to vector<16x1xf32>
    %293 = arith.addf %289, %292 : vector<16x1xf32>
    %294 = math.rsqrt %293 : vector<16x1xf32>
    %295 = vector.broadcast %294 : vector<16x1xf32> to vector<16x32xf32>
    %296 = arith.mulf %291, %295 : vector<16x32xf32>
    %297 = vector.broadcast %188 : vector<1x32xf32> to vector<16x32xf32>
    %298 = arith.mulf %296, %297 : vector<16x32xf32>
    %299 = vector.broadcast %189 : vector<1x32xf32> to vector<16x32xf32>
    %300 = arith.addf %298, %299 : vector<16x32xf32>
    %301 = vector.shape_cast %300 : vector<16x32xf32> to vector<2x8x32xf32>
    %302 = vector.extract_strided_slice %301 {offsets = [0, 0, 0], sizes = [2, 1, 32], strides = [1, 1, 1]} : vector<2x8x32xf32> to vector<2x1x32xf32>
    %303 = vector.shape_cast %302 : vector<2x1x32xf32> to vector<2x32xf32>
    %c0_78 = arith.constant 0 : index
    %c0_79 = arith.constant 0 : index
    %304 = vector.load %arg8[%c0_78, %c0_79] : memref<32x32xf32, #tpu.memory_space<vmem>>, vector<32x32xf32>
    %cst_80 = arith.constant dense<0.000000e+00> : vector<2x32xf32>
    %305 = tpu.matmul %303, %304, %cst_80 {dimension_numbers = #tpu.dot_dimension_numbers<[1], [0], [0], [1], [0, 0, 1, 1], [], []>} : vector<2x32xf32>, vector<32x32xf32>, vector<2x32xf32> -> vector<2x32xf32>
    %c0_81 = arith.constant 0 : index
    %c0_82 = arith.constant 0 : index
    %306 = vector.load %arg9[%c0_81, %c0_82] : memref<1x32xf32, #tpu.memory_space<vmem>>, vector<1x32xf32>
    %307 = vector.broadcast %306 : vector<1x32xf32> to vector<2x32xf32>
    %308 = arith.addf %305, %307 : vector<2x32xf32>
    %309 = math.tanh %308 : vector<2x32xf32>
    %c0_83 = arith.constant 0 : index
    %c0_84 = arith.constant 0 : index
    %310 = vector.load %arg10[%c0_83, %c0_84] : memref<32x128xf32, #tpu.memory_space<vmem>>, vector<32x128xf32>
    %cst_85 = arith.constant dense<0.000000e+00> : vector<2x128xf32>
    %311 = tpu.matmul %309, %310, %cst_85 {dimension_numbers = #tpu.dot_dimension_numbers<[1], [0], [0], [1], [0, 0, 1, 1], [], []>} : vector<2x32xf32>, vector<32x128xf32>, vector<2x128xf32> -> vector<2x128xf32>
    %c0_86 = arith.constant 0 : index
    %c0_87 = arith.constant 0 : index
    %312 = vector.load %arg11[%c0_86, %c0_87] : memref<1x128xf32, #tpu.memory_space<vmem>>, vector<1x128xf32>
    %313 = vector.broadcast %312 : vector<1x128xf32> to vector<2x128xf32>
    %314 = arith.addf %311, %313 : vector<2x128xf32>
    %c0_88 = arith.constant 0 : index
    %c0_89 = arith.constant 0 : index
    %315 = vector.load %arg12[%c0_88, %c0_89] : memref<2x128xf32, #tpu.memory_space<vmem>>, vector<2x128xf32>
    tpu.vector_store %arg12[%c0_88, %c0_89], %314 {strides = array<i32>} : memref<2x128xf32, #tpu.memory_space<vmem>>, vector<2x128xf32>,
    return
  }
}

</mosaic_0001>

<bundles_post_ra>
// kernel: tpu_custom_call.1
= control target key start
LH: loop header
LB: loop body
LE: loop exit
PB: predicated region body
PF: predicated region fallthrough
CT: control target
= control target key end

     0   :  { %17 = vsyncpa [#allocation3], 0  ;;  %s8541_s0 = inlined_call_operand.vmem [shape: f32[2,8,32], index: 0, kind: input, shape index: {}]   ;;  %s8542_s1 = inlined_call_operand.vmem [shape: f32[2,8], index: 1, kind: input, shape index: {}]   ;;  %s8543_s2 = inlined_call_operand.vmem [shape: f32[2,32], index: 2, kind: input, shape index: {}]   ;;  %s8544_s3 = inlined_call_operand.hbm [shape: f32[2,4,32,32], index: 3, kind: input, shape index: {}]   ;;  %s8545_s4 = inlined_call_operand.vmem [shape: f32[2,32,64], index: 4, kind: input, shape index: {}]   ;;  %s8546_s5 = inlined_call_operand.vmem [shape: f32[2,64,32], index: 5, kind: input, shape index: {}]   ;;  %s8547_s6 = inlined_call_operand.vmem [shape: f32[2,9,32], index: 6, kind: input, shape index: {}]   ;;  %s8548_s7 = inlined_call_operand.vmem [shape: f32[2,1,64], index: 7, kind: input, shape index: {}]   ;;  %s8549_s8 = inlined_call_operand.vmem [shape: f32[32,32], index: 8, kind: input, shape index: {}]   ;;  %s8550_s9 = inlined_call_operand.vmem [shape: f32[1,32], index: 9, kind: input, shape index: {}]   ;;  %s8551_s10 = inlined_call_operand.vmem [shape: f32[32,128], index: 10, kind: input, shape index: {}]   ;;  %s8552_s11 = inlined_call_operand.vmem [shape: f32[1,128], index: 11, kind: input, shape index: {}]   ;;  %s8553_s12 = inlined_call_operand.hbm [shape: f32[2,128], index: 12, kind: output, shape index: {}]  }
   0x1   :  { %18 = vsyncpa [#allocation4], 0  ;;  %s7414_s21 = smov [#allocation2]   ;;  %s7366_s25 = scalar_lea.hbm %s8544_s3, 4096 }
   0x2   :  { %s30_s22 = sshll.u32 %s7414_s21, 4  ;;  %p7367_p0 = scmp.ne.s32.totalorder %s8544_s3, %s7366_s25  ;;  %s31_s22 = int_to_ptr.vmem [resolvable:$true] %s30_s22 }
   0x3   :  { %p7370_p1 = scmp.lt.u32.totalorder %s7366_s25, %s8544_s3 }
   0x5   :  { %p7372_p2 = pnand %p7370_p1, %p7367_p0 }
   0x7   :  { %7375 = shalt.err (!%p7372_p2)
}
   0x8   :  { %s7376_s30 = scalar_lea.vmem %s31_s22, 4096  ;;  %p7381_p4 = scmp.lt.s32.totalorder %s31_s22, %s31_s22 }
   0x9   :  { %p7377_p3 = scmp.ne.s32.totalorder %s31_s22, %s7376_s30  ;;  %p7382_p5 = scmp.lt.s32.totalorder %s7376_s30, %s7376_s30 }
   0xb   :  { %p7383_p6 = por %p7382_p5, %p7381_p4 }
   0xd   :  { %p7384_p7 = pnand %p7383_p6, %p7377_p3 }
   0xf   :  { %7387 = shalt.err (!%p7384_p7)
}
  0x10   :  { %s7415_s13 = smov 128   ;;  %s7416_s14 = smov 8  }
  0x11   :  { %36 = dma.hbm_to_vmem [thread:$0]  %s8544_s3, 4096, %s31_s22, [#allocation3], %s7415_s13, %s7415_s13, %s7416_s14  }
  0x12   :  { %7410 = dma.done.wait [#allocation3], 4096  }
  0x13   :  { %7411 = vsyncadd [#allocation3], 4294963200  ;;  %vm122_vm0 = vcmask 261120   ;;  %v56_v0 = vld [vmem:[%s8541_s0] sm:$0xff]  ;;  %v57_v1 = vld [vmem:[%s8541_s0 + $0x8] sm:$0xff]  ;;  %v150_v31 = vlaneseq  ;;  %s7417_s22 = smov 112  }
  0x14   :  { %v123_v2 = vsel %vm122_vm0, %v56_v0, 0.0  ;;  %v126_v3 = vsel %vm122_vm0, %v57_v1, 0.0  ;;  %v60_v14 = vld [vmem:[#allocation2] sm:$0xff]  ;;  %v61_v15 = vld [vmem:[#allocation2 + $0x8] sm:$0xff]  ;;  %v62_v19 = vld [vmem:[#allocation2 + $0x10] sm:$0xff]  ;;  %s7418_s23 = smov 120  }
  0x15   :  { %124 = vadd.xlane.f32.xlu0 %v123_v2  ;;  %v64_v16 = vld [vmem:[#allocation2 + $0x20] sm:$0xff]  ;;  %v7131_v17 = vpack.c.bf16 %v61_v15, %v60_v14  ;;  %v65_v18 = vld [vmem:[#allocation2 + $0x28] sm:$0xff]  ;;  %v63_v20 = vld [vmem:[#allocation2 + $0x18] sm:$0xff]  ;;  %v7517_v35 = vshrl.u32 %v150_v31, 7  ;;  %s7419_s24 = smov 104   ;;  %vm7421_vm1 = vmmov 0  }
  0x16   :  { %v7139_v21 = vpack.c.bf16 %v65_v18, %v64_v16  ;;  %v7135_v22 = vpack.c.bf16 %v63_v20, %v62_v19  ;;  %v66_v23 = vld [vmem:[#allocation2 + $0x30] sm:$0xff]  ;;  %v67_v24 = vld [vmem:[#allocation2 + $0x38] sm:$0xff]  ;;  %v68_v26 = vld [vmem:[#allocation2 + $0x40] sm:$0xff]  ;;  %vm1306_vm2 = vcmask 64512   ;;  %s7426_s27 = smov 24   ;;  %vm2911_vm3 = vcmask 130048  }
  0x17   :  { %7132 = vmatprep.subr.bf16.mxu0 %v7131_v17  ;;  %v7143_v25 = vpack.c.bf16 %v67_v24, %v66_v23  ;;  %v69_v27 = vld [vmem:[#allocation2 + $0x48] sm:$0xff]  ;;  %v7520_v37 = vsub.s32 0, %v7517_v35  ;;  %v59_v38 = vld [vmem:[%s8543_s2] sm:$0x3]  ;;  %v7526_v39 = vsub.s32 1, %v7517_v35  ;;  %v70_v48 = vld [vmem:[#allocation2 + $0x50] sm:$0xff] }
  0x18   :  { %7134 = vmatpush3.bf16.msra.mxu0 %v7131_v17  ;;  %7140 = vmatprep.subr.bf16.mxu1 %v7139_v21  ;;  %v7147_v28 = vpack.c.bf16 %v69_v27, %v68_v26  ;;  %v71_v49 = vld [vmem:[#allocation2 + $0x58] sm:$0xff]  ;;  %v7549_v53 = vld [vmem:[%s8547_s6] sm:$0xff]  ;;  %vm2914_vm4 = vcmask 195584   ;;  %vm3151_vm5 = vcmask 523264   ;;  %vm6359_vm6 = vcmask 1041409  }
  0x19   :  { %127 = vadd.xlane.f32.xlu0 %v126_v3  ;;  %7142 = vmatpush3.bf16.msra.mxu1 %v7139_v21  ;;  %v153_v40 = vrot.slane %v59_v38, %v7520_v37  ;;  %v159_v43 = vrot.slane %v59_v38, %v7526_v39  ;;  %v7151_v52 = vpack.c.bf16 %v71_v49, %v70_v48  ;;  %v7422_v3 = vmov 1983009808  }
  0x1a   :  { %7136 = vmatprep.subr.bf16.mxu0 %v7135_v22  ;;  %7144 = vmatprep.subr.bf16.mxu1 %v7143_v25  ;;  %v275_v54 = vrot.slane %v7549_v53, %v7526_v39  ;;  %v190_v59 = vrot.slane %v7549_v53, %v7520_v37 }
  0x1c   :  { %7138 = vmatpush3.bf16.msra.mxu0 %v7135_v22 }
  0x1d   :  { %7146 = vmatpush3.bf16.msra.mxu1 %v7143_v25  ;;  %7148 = vmatprep.subr.bf16.mxu0 %v7147_v28 }
  0xa2   :  { %v125_v4 = vpop.xlane.xlu0 %124 }
  0xa3   :  { %v130_v5 = vmul.f32 0.03125, %v125_v4  ;;  %v453_v4 = vunpack.c.l.s4 %v7422_v3 }
  0xa5   :  { %v132_v6 = vsub.f32 %v56_v0, %v130_v5  ;;  %v7423_v5 = vmov 1934713408  }
  0xa6   :  { %v128_v7 = vpop.xlane.xlu0 %127 }
  0xa7   :  { %v131_v8 = vmul.f32 0.03125, %v128_v7  ;;  %v134_v9 = vmul.f32 %v132_v6, %v132_v6  ;;  %v454_v7 = vunpack.c.0.s8 %v453_v4 }
  0xa9   :  { %v133_v10 = vsub.f32 %v57_v1, %v131_v8  ;;  %v136_v11 = vsel %vm122_vm0, %v134_v9, 0.0  ;;  %v7420_v1 = vmov 0.0  }
  0xaa   :  { %137 = vadd.xlane.f32.xlu1 %v136_v11  ;;  %6834 = vmatprep.subr.mxu1 %v7420_v1  ;;  %v7593_v11 = vsub.s32 %v454_v7, %v7517_v35 }
  0xab   :  { %v135_v12 = vmul.f32 %v133_v10, %v133_v10 }
  0xad   :  { %v139_v13 = vsel %vm122_vm0, %v135_v12, 0.0 }
  0xae   :  { %140 = vadd.xlane.f32.xlu1 %v139_v13 }
 0x137   :  { %v138_v29 = vpop.xlane.xlu1 %137 }
 0x138   :  { %v142_v30 = vmul.f32 0.03125, %v138_v29 }
 0x13a   :  { %v144_v32 = vadd.f32 1e-12, %v142_v30 }
 0x13b   :  { %v141_v33 = vpop.xlane.xlu1 %140 }
 0x13c   :  { %7270 = vrsqrt.f32 %v144_v32  ;;  %v143_v34 = vmul.f32 0.03125, %v141_v33 }
 0x13e   :  { %v145_v36 = vadd.f32 1e-12, %v143_v34 }
 0x140   :  { %7272 = vrsqrt.f32 %v145_v36 }
 0x146   :  { %v7271_v41 = vpop.eup %7270 }
 0x147   :  { %v148_v42 = vmul.f32 %v7271_v41, %v132_v6  ;;  %v485_v6 = vunpack.c.l.s4 %v7423_v5 }
 0x149   :  { %v154_v44 = vmul.f32 %v153_v40, %v148_v42 }
 0x14a   :  { %v7273_v45 = vpop.eup %7272 }
 0x14b   :  { %v7530_v46 = vadd.f32 %v159_v43, %v154_v44  ;;  %v149_v47 = vmul.f32 %v7273_v45, %v133_v10  ;;  %v486_v10 = vunpack.c.0.s8 %v485_v6 }
 0x14d   :  { %6809 = vmatprep.mubr.msk.f32.mxu0 %vm122_vm0, %v7530_v46  ;;  %6820 = vmatprep.mubr.msk.f32.mxu1 %vm122_vm0, %v7530_v46  ;;  %v155_v50 = vmul.f32 %v153_v40, %v149_v47  ;;  %v7596_v18 = vsub.s32 %v486_v10, %v7517_v35 }
 0x14f   :  { %v7536_v51 = vadd.f32 %v159_v43, %v155_v50 }
 0x151   :  { %6810 = vmatmul.mubr.msk.f32.vlgmr.msra.gmra.mrb[0].mxu0 %vm122_vm0, %v7536_v51  ;;  %6821 = vmatmul.mubr.msk.f32.vlgmr.msra.gmra.mrb[0].mxu1 %vm122_vm0, %v7536_v51 }
 0x152   :  { %7150 = vmatpush3.bf16.msra.mxu0 %v7147_v28  ;;  %6831 = vmatprep.mubr.msk.f32.mxu0 %vm122_vm0, %v7530_v46 }
 0x153   :  { %7152 = vmatprep.subr.bf16.mxu0 %v7151_v52  ;;  %6836 = vmatprep.mubr.msk.f32.mxu1 %vm7421_vm1, %v7420_v1 }
 0x156   :  { %7154 = vmatpush3.bf16.msra.mxu0 %v7151_v52 }
 0x157   :  { %6844 = vmatprep.subr.mxu0 %v7420_v1 }
 0x159   :  { %6832 = vmatmul.mubr.msk.f32.vlgmr.msra.gmra.mrb[2].mxu0 %vm122_vm0, %v7536_v51 }
 0x15a   :  { %6846 = vmatprep.mubr.msk.f32.mxu0 %vm7421_vm1, %v7420_v1 }
 0x224   :  { %v6811_v55 = vpop.f32.mrb[0].mxu0  ;;  %v6822_v56 = vpop.f32.mrb[0].mxu1 }
 0x225   :  { %v263_v57 = vpop.f32.mrb[1].mxu0  ;;  %v342_v58 = vpop.f32.mrb[1].mxu1  ;;  %v7566_v0 = vadd.f32 %v6822_v56, %v275_v54  ;;  %v7578_v2 = vadd.f32 %v6811_v55, %v190_v59 }
 0x226   :  { %v343_v60 = vadd.f32 %v342_v58, %v275_v54  ;;  %v7557_v61 = vadd.f32 %v263_v57, %v190_v59 }
 0x228   :  { %730 = vrot.lane.b32.xlu1 %v343_v60, %s7417_s22  ;;  %724 = vrot.lane.b32.xlu0 %v343_v60, %s7418_s23 }
 0x22c   :  { %v7559_v62 = vpop.f32.mrb[2].mxu0  ;;  %736 = vrot.lane.b32.xlu1 %v343_v60, %s7419_s24  ;;  %438 = vrot.lane.b32.xlu0 %v7557_v61, %s7417_s22 }
 0x22d   :  { %v7564_v63 = vpop.f32.mrb[3].mxu0 }
 0x230   :  { %726 = vrot.lane.b32.xlu0 %v7566_v0, %s7418_s23  ;;  %432 = vrot.lane.b32.xlu1 %v7557_v61, %s7418_s23 }
 0x234   :  { %738 = vrot.lane.b32.xlu0 %v7566_v0, %s7419_s24  ;;  %444 = vrot.lane.b32.xlu1 %v7557_v61, %s7419_s24 }
 0x238   :  { %440 = vrot.lane.b32.xlu0 %v7578_v2, %s7417_s22  ;;  %732 = vrot.lane.b32.xlu1 %v7566_v0, %s7417_s22 }
 0x23c   :  { %434 = vrot.lane.b32.xlu1 %v7578_v2, %s7418_s23 }
 0x240   :  { %446 = vrot.lane.b32.xlu1 %v7578_v2, %s7419_s24 }
 0x29a   :  { %v731_v8 = vpop.permute.xlu1 %730  ;;  %v725_v9 = vpop.permute.xlu0 %724 }
 0x29b   :  { %v742_v12 = vcombine.low %v343_v60, %v731_v8  ;;  %v743_v13 = vcombine.high %v343_v60, %v731_v8 }
 0x29d   :  { %v750_v19 = vrot.slane %v742_v12, %v7593_v11  ;;  %v757_v20 = vrot.slane %v743_v13, %v7593_v11 }
 0x29e   :  { %v737_v14 = vpop.permute.xlu1 %736  ;;  %v439_v15 = vpop.permute.xlu0 %438 }
 0x29f   :  { %v758_v16 = vcombine.low %v725_v9, %v737_v14  ;;  %v759_v17 = vcombine.high %v725_v9, %v737_v14  ;;  %v450_v33 = vcombine.low %v7557_v61, %v439_v15  ;;  %v451_v34 = vcombine.high %v7557_v61, %v439_v15 }
 0x2a1   :  { %v766_v21 = vrot.slane %v758_v16, %v7593_v11  ;;  %v773_v22 = vrot.slane %v759_v17, %v7593_v11  ;;  %v458_v55 = vrot.slane %v450_v33, %v7593_v11  ;;  %v465_v56 = vrot.slane %v451_v34, %v7593_v11 }
 0x2a2   :  { %v727_v23 = vpop.permute.xlu0 %726  ;;  %v433_v24 = vpop.permute.xlu1 %432 }
 0x2a3   :  { %v774_v25 = vcombine.low %v750_v19, %v766_v21  ;;  %v775_v26 = vcombine.high %v750_v19, %v766_v21  ;;  %v790_v27 = vcombine.low %v757_v20, %v773_v22  ;;  %v791_v28 = vcombine.high %v757_v20, %v773_v22 }
 0x2a5   :  { %v782_v29 = vrot.slane %v774_v25, %v7596_v18  ;;  %v789_v30 = vrot.slane %v775_v26, %v7596_v18  ;;  %v798_v31 = vrot.slane %v790_v27, %v7596_v18  ;;  %v805_v32 = vrot.slane %v791_v28, %v7596_v18 }
 0x2a6   :  { %v739_v36 = vpop.permute.xlu0 %738  ;;  %v445_v38 = vpop.permute.xlu1 %444 }
 0x2a7   :  { %v878_v40 = vcombine.low %v782_v29, %v789_v30  ;;  %v6545_v41 = vcombine.high %v782_v29, %v789_v30  ;;  %v894_v42 = vcombine.low %v798_v31, %v805_v32  ;;  %v6546_v43 = vcombine.high %v798_v31, %v805_v32 }
 0x2a8   :  { %v826_v44 = vcombine.low %v727_v23, %v739_v36  ;;  %v827_v45 = vcombine.high %v727_v23, %v739_v36  ;;  %v466_v47 = vcombine.low %v433_v24, %v445_v38  ;;  %v467_v48 = vcombine.high %v433_v24, %v445_v38 }
 0x2a9   :  { %v885_v49 = vrot.slane %v878_v40, %v7593_v11  ;;  %v893_v50 = vrot.slane %v6545_v41, %v7593_v11  ;;  %v901_v52 = vrot.slane %v894_v42, %v7593_v11  ;;  %v909_v54 = vrot.slane %v6546_v43, %v7593_v11 }
 0x2aa   :  { %v474_v57 = vrot.slane %v466_v47, %v7593_v11  ;;  %v481_v58 = vrot.slane %v467_v48, %v7593_v11  ;;  %v733_v59 = vpop.permute.xlu1 %732  ;;  %v834_v3 = vrot.slane %v826_v44, %v7593_v11  ;;  %v841_v4 = vrot.slane %v827_v45, %v7593_v11  ;;  %v441_v9 = vpop.permute.xlu0 %440 }
 0x2ab   :  { %v910_v60 = vcombine.low %v885_v49, %v893_v50  ;;  %v911_v61 = vcombine.high %v885_v49, %v893_v50  ;;  %v926_v10 = vcombine.low %v901_v52, %v909_v54  ;;  %v927_v12 = vcombine.high %v901_v52, %v909_v54 }
 0x2ac   :  { %v482_v5 = vcombine.low %v458_v55, %v474_v57  ;;  %v483_v6 = vcombine.high %v458_v55, %v474_v57  ;;  %v498_v7 = vcombine.low %v465_v56, %v481_v58  ;;  %v499_v8 = vcombine.high %v465_v56, %v481_v58 }
 0x2ad   :  { %v810_v13 = vcombine.low %v7566_v0, %v733_v59  ;;  %v811_v14 = vcombine.high %v7566_v0, %v733_v59  ;;  %v518_v20 = vcombine.low %v7578_v2, %v441_v9  ;;  %v519_v21 = vcombine.high %v7578_v2, %v441_v9 }
 0x2ae   :  { %v490_v15 = vrot.slane %v482_v5, %v7596_v18  ;;  %v497_v16 = vrot.slane %v483_v6, %v7596_v18  ;;  %v506_v17 = vrot.slane %v498_v7, %v7596_v18  ;;  %v513_v19 = vrot.slane %v499_v8, %v7596_v18  ;;  %v435_v24 = vpop.permute.xlu1 %434 }
 0x2af   :  { %v818_v22 = vrot.slane %v810_v13, %v7593_v11  ;;  %v825_v23 = vrot.slane %v811_v14, %v7593_v11  ;;  %v918_v54 = vrot.slane %v910_v60, %v7596_v18  ;;  %v934_v55 = vrot.slane %v926_v10, %v7596_v18 }
 0x2b0   :  { %v586_v25 = vcombine.low %v490_v15, %v497_v16  ;;  %v6541_v0 = vcombine.high %v490_v15, %v497_v16  ;;  %v602_v26 = vcombine.low %v506_v17, %v513_v19  ;;  %v6542_v27 = vcombine.high %v506_v17, %v513_v19 }
 0x2b1   :  { %v842_v28 = vcombine.low %v818_v22, %v834_v3  ;;  %v843_v29 = vcombine.high %v818_v22, %v834_v3  ;;  %v858_v30 = vcombine.low %v825_v23, %v841_v4  ;;  %v859_v31 = vcombine.high %v825_v23, %v841_v4 }
 0x2b2   :  { %v593_v32 = vrot.slane %v586_v25, %v7593_v11  ;;  %v601_v33 = vrot.slane %v6541_v0, %v7593_v11  ;;  %v609_v2 = vrot.slane %v602_v26, %v7593_v11  ;;  %v617_v34 = vrot.slane %v6542_v27, %v7593_v11  ;;  %v447_v52 = vpop.permute.xlu1 %446 }
 0x2b3   :  { %v850_v36 = vrot.slane %v842_v28, %v7596_v18  ;;  %v857_v38 = vrot.slane %v843_v29, %v7596_v18  ;;  %v866_v40 = vrot.slane %v858_v30, %v7596_v18  ;;  %v873_v41 = vrot.slane %v859_v31, %v7596_v18 }
 0x2b4   :  { %v618_v42 = vcombine.low %v593_v32, %v601_v33  ;;  %v619_v43 = vcombine.high %v593_v32, %v601_v33  ;;  %v634_v44 = vcombine.low %v609_v2, %v617_v34  ;;  %v635_v45 = vcombine.high %v609_v2, %v617_v34 }
 0x2b5   :  { %v946_v47 = vcombine.low %v850_v36, %v857_v38  ;;  %v6547_v48 = vcombine.high %v850_v36, %v857_v38  ;;  %v962_v49 = vcombine.low %v866_v40, %v873_v41  ;;  %v6548_v50 = vcombine.high %v866_v40, %v873_v41 }
 0x2b6   :  { %v7639_v56 = vrot.slane %v911_v61, %v7596_v18  ;;  %v941_v57 = vrot.slane %v927_v12, %v7596_v18  ;;  %v942_v60 = vcombine.low %v918_v54, %v934_v55  ;;  %v534_v6 = vcombine.low %v435_v24, %v447_v52 }
 0x2b7   :  { %v7643_v58 = vrot.slane %v946_v47, %v7593_v11  ;;  %v7646_v59 = vrot.slane %v6547_v48, %v7593_v11  ;;  %v7649_v3 = vrot.slane %v962_v49, %v7593_v11  ;;  %v7652_v4 = vrot.slane %v6548_v50, %v7593_v11 }
 0x2b8   :  { %v944_v5 = vcombine.low %v7639_v56, %v941_v57  ;;  %v535_v61 = vcombine.high %v435_v24, %v447_v52  ;;  %v526_v7 = vrot.slane %v518_v20, %v7593_v11  ;;  %v533_v8 = vrot.slane %v519_v21, %v7593_v11  ;;  %6835 = vmatpush3.xpose.msk.msra.mxu1 %vm1306_vm2, %v942_v60 }
 0x2b9   :  { %v978_v9 = vcombine.low %v7643_v58, %v7646_v59  ;;  %v542_v10 = vrot.slane %v534_v6, %v7593_v11  ;;  %v626_v13 = vrot.slane %v618_v42, %v7596_v18  ;;  %v994_v14 = vcombine.low %v7649_v3, %v7652_v4  ;;  %6839 = vmatprep.subr.mxu1 %v7420_v1 }
 0x2ba   :  { %6845 = vmatpush3.xpose.msk.msra.mxu0 %vm1306_vm2, %v944_v5  ;;  %v549_v12 = vrot.slane %v535_v61, %v7593_v11  ;;  %v642_v15 = vrot.slane %v634_v44, %v7596_v18  ;;  %v633_v16 = vrot.slane %v619_v43, %v7596_v18  ;;  %v649_v17 = vrot.slane %v635_v45, %v7596_v18 }
 0x2bb   :  { %v550_v19 = vcombine.low %v526_v7, %v542_v10  ;;  %v551_v20 = vcombine.high %v526_v7, %v542_v10  ;;  %6854 = vmatprep.subr.mxu0 %v7420_v1  ;;  %v979_v23 = vcombine.high %v7643_v58, %v7646_v59  ;;  %v943_v25 = vcombine.high %v918_v54, %v934_v55  ;;  %v58_v10 = vld [vmem:[%s8542_s1] sm:$0x3]  ;;  %s7425_s1 = smov 16  }
 0x2bc   :  { %v566_v21 = vcombine.low %v533_v8, %v549_v12  ;;  %v567_v22 = vcombine.high %v533_v8, %v549_v12  ;;  %v650_v24 = vcombine.low %v626_v13, %v642_v15  ;;  %v652_v0 = vcombine.low %v633_v16, %v649_v17 }
 0x2bd   :  { %v558_v26 = vrot.slane %v550_v19, %v7596_v18  ;;  %v565_v27 = vrot.slane %v551_v20, %v7596_v18  ;;  %v995_v30 = vcombine.high %v7649_v3, %v7652_v4  ;;  %v986_v31 = vrot.slane %v978_v9, %v7596_v18 }
 0x2be   :  { %v574_v28 = vrot.slane %v566_v21, %v7596_v18  ;;  %v581_v29 = vrot.slane %v567_v22, %v7596_v18  ;;  %6837 = vmatmul.mubr.msk.f32.vlgmr.msra.gmra.mrb[2].mxu1 %vm1306_vm2, %v650_v24  ;;  %6847 = vmatmul.mubr.msk.f32.vlgmr.msra.gmra.mrb[4].mxu0 %vm1306_vm2, %v652_v0  ;;  %v1002_v32 = vrot.slane %v994_v14, %v7596_v18  ;;  %v7424_v8 = vmov 1966171168  }
 0x2bf   :  { %v654_v33 = vcombine.low %v558_v26, %v565_v27  ;;  %v6543_v2 = vcombine.high %v558_v26, %v565_v27  ;;  %6840 = vmatpush3.xpose.msk.msra.mxu1 %vm1306_vm2, %v943_v25  ;;  %6841 = vmatprep.mubr.msk.f32.mxu1 %vm7421_vm1, %v7420_v1  ;;  %v651_v38 = vcombine.high %v626_v13, %v642_v15  ;;  %v166_v9 = vunpack.c.l.s4 %v7424_v8 }
 0x2c0   :  { %v670_v34 = vcombine.low %v574_v28, %v581_v29  ;;  %v6544_v36 = vcombine.high %v574_v28, %v581_v29  ;;  %6849 = vmatprep.subr.mxu1 %v7420_v1  ;;  %v945_v40 = vcombine.high %v7639_v56, %v941_v57  ;;  %v1010_v41 = vcombine.low %v986_v31, %v1002_v32 }
 0x2c1   :  { %v661_v42 = vrot.slane %v654_v33, %v7593_v11  ;;  %v669_v43 = vrot.slane %v6543_v2, %v7593_v11  ;;  %6856 = vmatprep.mubr.msk.f32.mxu0 %vm7421_vm1, %v7420_v1  ;;  %v653_v52 = vcombine.high %v633_v16, %v649_v17  ;;  %v993_v54 = vrot.slane %v979_v23, %v7596_v18 }
 0x2c2   :  { %v677_v44 = vrot.slane %v670_v34, %v7593_v11  ;;  %v685_v45 = vrot.slane %v6544_v36, %v7593_v11  ;;  %6842 = vmatmul.mubr.msk.f32.vlgmr.msra.gmra.mrb[4].mxu1 %vm1306_vm2, %v651_v38  ;;  %6855 = vmatpush3.xpose.msk.msra.mxu0 %vm1306_vm2, %v1010_v41  ;;  %v1009_v55 = vrot.slane %v995_v30, %v7596_v18  ;;  %v6534_v12 = vadd.f32 -1.0, %v58_v10 }
 0x2c3   :  { %v686_v47 = vcombine.low %v661_v42, %v669_v43  ;;  %v687_v48 = vcombine.high %v661_v42, %v669_v43  ;;  %6850 = vmatpush3.xpose.msk.msra.mxu1 %vm1306_vm2, %v945_v40  ;;  %6851 = vmatprep.mubr.msk.f32.mxu1 %vm7421_vm1, %v7420_v1  ;;  %v1011_v56 = vcombine.high %v986_v31, %v1002_v32  ;;  %v167_v13 = vunpack.c.0.s8 %v166_v9 }
 0x2c4   :  { %v702_v49 = vcombine.low %v677_v44, %v685_v45  ;;  %v703_v50 = vcombine.high %v677_v44, %v685_v45  ;;  %6859 = vmatprep.subr.mxu1 %v7420_v1  ;;  %6864 = vmatprep.subr.mxu0 %v7420_v1  ;;  %v1012_v5 = vcombine.low %v993_v54, %v1009_v55  ;;  %v163_v14 = vmul.f32 1e+09, %v6534_v12 }
 0x2c5   :  { %v694_v57 = vrot.slane %v686_v47, %v7596_v18  ;;  %v701_v59 = vrot.slane %v687_v48, %v7596_v18  ;;  %v1013_v6 = vcombine.high %v993_v54, %v1009_v55  ;;  %v170_v15 = vsub.s32 %v167_v13, %v7517_v35 }
 0x2c6   :  { %v710_v58 = vrot.slane %v702_v49, %v7596_v18  ;;  %6852 = vmatmul.mubr.msk.f32.vlgmr.msra.gmra.mrb[6].mxu1 %vm1306_vm2, %v653_v52  ;;  %v717_v60 = vrot.slane %v703_v50, %v7596_v18 }
 0x2c7   :  { %6860 = vmatpush3.xpose.msk.msra.mxu1 %vm1306_vm2, %v1011_v56  ;;  %6861 = vmatprep.mubr.msk.f32.mxu1 %vm7421_vm1, %v7420_v1  ;;  %v171_v16 = vrot.slane %v163_v14, %v170_v15 }
 0x2c8   :  { %v718_v3 = vcombine.low %v694_v57, %v710_v58  ;;  %v719_v4 = vcombine.high %v694_v57, %v710_v58  ;;  %6869 = vmatprep.subr.mxu1 %v7420_v1  ;;  %v720_v61 = vcombine.low %v701_v59, %v717_v60  ;;  %v721_v7 = vcombine.high %v701_v59, %v717_v60 }
 0x2c9   :  { %v179_v17 = vrot.slane %v171_v16, %v170_v15  ;;  %v172_v0 = vcombine.high %v171_v16, %v171_v16  ;;  %v353_v57 = vsub.s32 2, %v7517_v35 }
 0x2ca   :  { %6857 = vmatmul.mubr.msk.f32.vlgmr.msra.gmra.mrb[6].mxu0 %vm1306_vm2, %v718_v3  ;;  %6862 = vmatmul.mubr.msk.f32.vlgmr.msra.gmra.mrb[8].mxu1 %vm1306_vm2, %v719_v4 }
 0x2cb   :  { %6865 = vmatpush3.xpose.msk.msra.mxu0 %vm1306_vm2, %v1012_v5  ;;  %6870 = vmatpush3.xpose.msk.msra.mxu1 %vm1306_vm2, %v1013_v6  ;;  %v7733_v19 = vrot.slane %v179_v17, %v7520_v37  ;;  %v186_v32 = vrot.slane %v172_v0, %v170_v15  ;;  %v354_v4 = vrot.slane %v7549_v53, %v353_v57 }
 0x2cc   :  { %6866 = vmatprep.mubr.msk.f32.mxu0 %vm7421_vm1, %v7420_v1  ;;  %6871 = vmatprep.mubr.msk.f32.mxu1 %vm7421_vm1, %v7420_v1 }
 0x2cd   :  { %6874 = vmatprep.subr.mxu0 %v7420_v1  ;;  %6879 = vmatprep.subr.mxu1 %v7420_v1  ;;  %v7742_v40 = vrot.slane %v186_v32, %v7520_v37  ;;  %v422_v5 = vadd.f32 %v7564_v63, %v354_v4  ;;  %v7769_v9 = vadd.f32 %v7559_v62, %v354_v4 }
 0x2ce   :  { %6867 = vmatmul.mubr.msk.f32.vlgmr.msra.gmra.mrb[8].mxu0 %vm1306_vm2, %v720_v61  ;;  %6872 = vmatmul.mubr.msk.f32.vlgmr.msra.gmra.mrb[10].mxu1 %vm1306_vm2, %v721_v7 }
 0x2cf   :  { %6876 = vmatprep.mubr.msk.f32.mxu0 %vm7421_vm1, %v7420_v1  ;;  %6881 = vmatprep.mubr.msk.f32.mxu1 %vm7421_vm1, %v7420_v1 }
 0x391   :  { %v1379_v20 = vpop.f32.mrb[2].mxu1  ;;  %v1531_v21 = vpop.f32.mrb[4].mxu0 }
 0x392   :  { %v1915_v22 = vmul.f32 0.35355338, %v1379_v20  ;;  %v1917_v23 = vmul.f32 0.35355338, %v1531_v21  ;;  %v6838_v24 = vpop.f32.mrb[3].mxu1  ;;  %v6848_v25 = vpop.f32.mrb[5].mxu0 }
 0x394   :  { %v1933_v26 = vadd.f32 %v7733_v19, %v1915_v22  ;;  %v1935_v31 = vadd.f32 %v7733_v19, %v1917_v23 }
 0x395   :  { %v1455_v27 = vpop.f32.mrb[4].mxu1 }
 0x396   :  { %v1916_v28 = vmul.f32 0.35355338, %v1455_v27  ;;  %v6843_v29 = vpop.f32.mrb[5].mxu1  ;;  %v1941_v30 = vsel %vm1306_vm2, %v1933_v26, -inf  ;;  %v1947_v36 = vsel %vm1306_vm2, %v1935_v31, -inf }
 0x397   :  { %1942 = vmax.xlane.f32.xlu0 %v1941_v30 }
 0x398   :  { %v1934_v33 = vadd.f32 %v7733_v19, %v1916_v28 }
 0x399   :  { %v1607_v2 = vpop.f32.mrb[6].mxu1 }
 0x39a   :  { %v6853_v34 = vpop.f32.mrb[7].mxu1  ;;  %v1944_v38 = vsel %vm1306_vm2, %v1934_v33, -inf  ;;  %v1918_v42 = vmul.f32 0.35355338, %v1607_v2 }
 0x39b   :  { %1948 = vmax.xlane.f32.xlu0 %v1947_v36  ;;  %1945 = vmax.xlane.f32.xlu1 %v1944_v38 }
 0x39c   :  { %v1936_v56 = vadd.f32 %v7733_v19, %v1918_v42 }
 0x39d   :  { %v1683_v41 = vpop.f32.mrb[6].mxu0  ;;  %v1759_v44 = vpop.f32.mrb[8].mxu1 }
 0x39e   :  { %v1919_v43 = vmul.f32 0.35355338, %v1683_v41  ;;  %v6858_v45 = vpop.f32.mrb[7].mxu0  ;;  %v6863_v47 = vpop.f32.mrb[9].mxu1  ;;  %v1950_v59 = vsel %vm1306_vm2, %v1936_v56, -inf }
 0x39f   :  { %v1920_v6 = vmul.f32 0.35355338, %v1759_v44 }
 0x3a0   :  { %v1937_v48 = vadd.f32 %v7742_v40, %v1919_v43 }
 0x3a1   :  { %v1835_v49 = vpop.f32.mrb[8].mxu0  ;;  %v1911_v52 = vpop.f32.mrb[10].mxu1  ;;  %v7759_v7 = vadd.f32 %v7742_v40, %v1920_v6 }
 0x3a2   :  { %v1921_v50 = vmul.f32 0.35355338, %v1835_v49  ;;  %v6868_v54 = vpop.f32.mrb[9].mxu0  ;;  %v1953_v55 = vsel %vm1306_vm2, %v1937_v48, -inf  ;;  %v6873_v58 = vpop.f32.mrb[11].mxu1 }
 0x3a3   :  { %1954 = vmax.xlane.f32.xlu0 %v1953_v55  ;;  %v1922_v61 = vmul.f32 0.35355338, %v1911_v52  ;;  %v1956_v53 = vsel %vm1306_vm2, %v7759_v7, -inf }
 0x3a4   :  { %v1939_v3 = vadd.f32 %v7742_v40, %v1921_v50 }
 0x3a5   :  { %v7764_v8 = vadd.f32 %v7742_v40, %v1922_v61 }
 0x3a6   :  { %v1959_v60 = vsel %vm1306_vm2, %v1939_v3, -inf }
 0x3a7   :  { %1951 = vmax.xlane.f32.xlu0 %v1950_v59  ;;  %v1962_v63 = vsel %vm1306_vm2, %v7764_v8, -inf }
 0x3ab   :  { %1960 = vmax.xlane.f32.xlu0 %v1959_v60 }
 0x3ac   :  { %1022 = vrot.lane.b32.xlu1 %v422_v5, %s7417_s22 }
 0x3b0   :  { %1028 = vrot.lane.b32.xlu1 %v422_v5, %s7419_s24 }
 0x3c1   :  { %1016 = vrot.lane.b32.xlu0 %v422_v5, %s7418_s23 }
 0x3d4   :  { %1957 = vmax.xlane.f32.xlu1 %v1956_v53 }
 0x3d8   :  { %1963 = vmax.xlane.f32.xlu1 %v1962_v63 }
 0x3e9   :  { %1018 = vrot.lane.b32.xlu1 %v7769_v9, %s7418_s23 }
 0x424   :  { %v1943_v10 = vpop.xlane.xlu0 %1942 }
 0x425   :  { %v1965_v12 = vsub.f32 %v1933_v26, %v1943_v10 }
 0x427   :  { %v1973_v13 = vmul.f32 1.442695, %v1965_v12 }
 0x428   :  { %v1949_v14 = vpop.xlane.xlu0 %1948  ;;  %v1946_v15 = vpop.xlane.xlu1 %1945 }
 0x429   :  { %7274 = vpow2.f32 %v1973_v13  ;;  %v1967_v16 = vsub.f32 %v1935_v31, %v1949_v14  ;;  %v1966_v17 = vsub.f32 %v1934_v33, %v1946_v15 }
 0x42b   :  { %v1977_v20 = vmul.f32 1.442695, %v1967_v16  ;;  %v1975_v21 = vmul.f32 1.442695, %v1966_v17 }
 0x42c   :  { %v1023_v27 = vpop.permute.xlu1 %1022 }
 0x42d   :  { %7276 = vpow2.f32 %v1977_v20  ;;  %v1034_v34 = vcombine.low %v422_v5, %v1023_v27  ;;  %v1035_v36 = vcombine.high %v422_v5, %v1023_v27 }
 0x42e   :  { %7278 = vpow2.f32 %v1975_v21 }
 0x42f   :  { %v1042_v47 = vrot.slane %v1034_v34, %v7593_v11 }
 0x430   :  { %v1955_v22 = vpop.xlane.xlu0 %1954  ;;  %v1029_v41 = vpop.permute.xlu1 %1028 }
 0x431   :  { %v1969_v23 = vsub.f32 %v1937_v48, %v1955_v22  ;;  %v1049_v48 = vrot.slane %v1035_v36, %v7593_v11 }
 0x433   :  { %v1981_v24 = vmul.f32 1.442695, %v1969_v23  ;;  %v7773_v62 = vpop.eup %7274 }
 0x434   :  { %v1952_v25 = vpop.xlane.xlu0 %1951  ;;  %v1989_v26 = vsel %vm1306_vm2, %v7773_v62, 0.0 }
 0x435   :  { %7280 = vpow2.f32 %v1981_v24  ;;  %v1968_v0 = vsub.f32 %v1936_v56, %v1952_v25  ;;  %1990 = vadd.xlane.f32.xlu0 %v1989_v26 }
 0x437   :  { %v1979_v28 = vmul.f32 1.442695, %v1968_v0  ;;  %v7777_v29 = vpop.eup %7276 }
 0x438   :  { %v1961_v30 = vpop.xlane.xlu0 %1960  ;;  %v7779_v31 = vpop.eup %7278  ;;  %v1995_v33 = vsel %vm1306_vm2, %v7777_v29, 0.0 }
 0x439   :  { %7282 = vpow2.f32 %v1979_v28  ;;  %v1971_v32 = vsub.f32 %v1939_v3, %v1961_v30  ;;  %1996 = vadd.xlane.f32.xlu0 %v1995_v33  ;;  %v1992_v2 = vsel %vm1306_vm2, %v7779_v31, 0.0 }
 0x43a   :  { %1993 = vadd.xlane.f32.xlu1 %v1992_v2 }
 0x43b   :  { %v1985_v38 = vmul.f32 1.442695, %v1971_v32 }
 0x43c   :  { %v1017_v42 = vpop.permute.xlu0 %1016 }
 0x43d   :  { %7284 = vpow2.f32 %v1985_v38  ;;  %v1050_v43 = vcombine.low %v1017_v42, %v1029_v41  ;;  %v1051_v44 = vcombine.high %v1017_v42, %v1029_v41 }
 0x43f   :  { %v7785_v45 = vpop.eup %7280  ;;  %v1058_v49 = vrot.slane %v1050_v43, %v7593_v11  ;;  %v1065_v50 = vrot.slane %v1051_v44, %v7593_v11 }
 0x440   :  { %v2001_v52 = vsel %vm1306_vm2, %v7785_v45, 0.0 }
 0x441   :  { %v1066_v54 = vcombine.low %v1042_v47, %v1058_v49  ;;  %v1067_v55 = vcombine.high %v1042_v47, %v1058_v49  ;;  %v1082_v56 = vcombine.low %v1049_v48, %v1065_v50  ;;  %v1083_v58 = vcombine.high %v1049_v48, %v1065_v50  ;;  %2002 = vadd.xlane.f32.xlu1 %v2001_v52 }
 0x443   :  { %v7793_v59 = vpop.eup %7282  ;;  %v1074_v3 = vrot.slane %v1066_v54, %v7596_v18  ;;  %v1081_v4 = vrot.slane %v1067_v55, %v7596_v18  ;;  %v1090_v60 = vrot.slane %v1082_v56, %v7596_v18  ;;  %v1097_v5 = vrot.slane %v1083_v58, %v7596_v18 }
 0x444   :  { %v1998_v6 = vsel %vm1306_vm2, %v7793_v59, 0.0 }
 0x445   :  { %v1170_v61 = vcombine.low %v1074_v3, %v1081_v4  ;;  %v6549_v53 = vcombine.high %v1074_v3, %v1081_v4  ;;  %v1186_v63 = vcombine.low %v1090_v60, %v1097_v5  ;;  %v6550_v10 = vcombine.high %v1090_v60, %v1097_v5  ;;  %1999 = vadd.xlane.f32.xlu1 %v1998_v6 }
 0x447   :  { %v7801_v12 = vpop.eup %7284  ;;  %v1177_v13 = vrot.slane %v1170_v61, %v7593_v11  ;;  %v1185_v14 = vrot.slane %v6549_v53, %v7593_v11  ;;  %v1193_v15 = vrot.slane %v1186_v63, %v7593_v11  ;;  %v1201_v16 = vrot.slane %v6550_v10, %v7593_v11 }
 0x448   :  { %v2007_v17 = vsel %vm1306_vm2, %v7801_v12, 0.0 }
 0x449   :  { %2008 = vadd.xlane.f32.xlu0 %v2007_v17  ;;  %v1202_v20 = vcombine.low %v1177_v13, %v1185_v14  ;;  %v1218_v21 = vcombine.low %v1193_v15, %v1201_v16  ;;  %v1203_v22 = vcombine.high %v1177_v13, %v1185_v14  ;;  %v1219_v23 = vcombine.high %v1193_v15, %v1201_v16 }
 0x44b   :  { %v1210_v24 = vrot.slane %v1202_v20, %v7596_v18  ;;  %v1226_v25 = vrot.slane %v1218_v21, %v7596_v18  ;;  %v1217_v0 = vrot.slane %v1203_v22, %v7596_v18  ;;  %v1233_v26 = vrot.slane %v1219_v23, %v7596_v18 }
 0x44d   :  { %v1234_v27 = vcombine.low %v1210_v24, %v1226_v25  ;;  %v1235_v28 = vcombine.high %v1210_v24, %v1226_v25  ;;  %v1236_v30 = vcombine.low %v1217_v0, %v1233_v26  ;;  %v1237_v32 = vcombine.high %v1217_v0, %v1233_v26 }
 0x44f   :  { %6875 = vmatpush3.msra.mxu0 %v1234_v27  ;;  %6880 = vmatpush3.msra.mxu1 %v1235_v28 }
 0x450   :  { %6884 = vmatprep.subr.mxu0 %v7420_v1  ;;  %6889 = vmatprep.subr.mxu1 %v7420_v1 }
 0x456   :  { %1030 = vrot.lane.b32.xlu1 %v7769_v9, %s7419_s24 }
 0x461   :  { %v1958_v33 = vpop.xlane.xlu1 %1957 }
 0x462   :  { %v1970_v2 = vsub.f32 %v7759_v7, %v1958_v33 }
 0x464   :  { %v1983_v34 = vmul.f32 1.442695, %v1970_v2 }
 0x465   :  { %v1964_v36 = vpop.xlane.xlu1 %1963 }
 0x466   :  { %7286 = vpow2.f32 %v1983_v34  ;;  %v1972_v38 = vsub.f32 %v7764_v8, %v1964_v36 }
 0x468   :  { %v1987_v41 = vmul.f32 1.442695, %v1972_v38 }
 0x469   :  { %v1019_v48 = vpop.permute.xlu1 %1018 }
 0x46a   :  { %7288 = vpow2.f32 %v1987_v41 }
 0x470   :  { %v7819_v42 = vpop.eup %7286 }
 0x471   :  { %v2004_v43 = vsel %vm1306_vm2, %v7819_v42, 0.0 }
 0x472   :  { %2005 = vadd.xlane.f32.xlu0 %v2004_v43 }
 0x474   :  { %v7823_v44 = vpop.eup %7288 }
 0x475   :  { %v2010_v47 = vsel %vm1306_vm2, %v7823_v44, 0.0 }
 0x476   :  { %2011 = vadd.xlane.f32.xlu0 %v2010_v47 }
 0x48c   :  { %1024 = vrot.lane.b32.xlu0 %v7769_v9, %s7417_s22 }
 0x4c2   :  { %v1991_v7 = vpop.xlane.xlu0 %1990 }
 0x4c3   :  { %7290 = vrcp.f32 %v1991_v7 }
 0x4c6   :  { %v1997_v8 = vpop.xlane.xlu0 %1996 }
 0x4c7   :  { %7292 = vrcp.f32 %v1997_v8  ;;  %v1994_v49 = vpop.xlane.xlu1 %1993 }
 0x4c8   :  { %7294 = vrcp.f32 %v1994_v49 }
 0x4cd   :  { %v7291_v50 = vpop.eup %7290 }
 0x4ce   :  { %v2003_v52 = vpop.xlane.xlu1 %2002  ;;  %v2021_v54 = vmul.f32 %v7291_v50, %v7773_v62 }
 0x4d0   :  { %6877 = vmatmul.mubr.msk.f32.vlgmr.msra.gmra.mrb[10].mxu0 %vm1306_vm2, %v2021_v54 }
 0x4d1   :  { %v7293_v55 = vpop.eup %7292  ;;  %6885 = vmatpush3.msra.mxu0 %v1236_v30  ;;  %6886 = vmatprep.mubr.msk.f32.mxu0 %vm7421_vm1, %v7420_v1 }
 0x4d2   :  { %v2000_v56 = vpop.xlane.xlu1 %1999  ;;  %v7295_v58 = vpop.eup %7294  ;;  %v2023_v3 = vmul.f32 %v7293_v55, %v7777_v29  ;;  %6894 = vmatprep.subr.mxu0 %v7420_v1 }
 0x4d3   :  { %7296 = vrcp.f32 %v2000_v56  ;;  %v2022_v4 = vmul.f32 %v7295_v58, %v7779_v31 }
 0x4d4   :  { %6887 = vmatmul.mubr.msk.f32.vlgmr.msra.gmra.mrb[12].mxu0 %vm1306_vm2, %v2023_v3  ;;  %7298 = vrcp.f32 %v2003_v52 }
 0x4d5   :  { %6882 = vmatmul.mubr.msk.f32.vlgmr.msra.gmra.mrb[12].mxu1 %vm1306_vm2, %v2022_v4  ;;  %6896 = vmatprep.mubr.msk.f32.mxu0 %vm7421_vm1, %v7420_v1 }
 0x4d6   :  { %6890 = vmatpush3.msra.mxu1 %v1237_v32  ;;  %6891 = vmatprep.mubr.msk.f32.mxu1 %vm7421_vm1, %v7420_v1  ;;  %v2009_v31 = vpop.xlane.xlu0 %2008  ;;  %v1031_v5 = vpop.permute.xlu1 %1030 }
 0x4d7   :  { %6899 = vmatprep.subr.mxu1 %v7420_v1  ;;  %v1118_v61 = vcombine.low %v1019_v48, %v1031_v5  ;;  %v1119_v53 = vcombine.high %v1019_v48, %v1031_v5 }
 0x4d9   :  { %v1126_v14 = vrot.slane %v1118_v61, %v7593_v11 }
 0x4dd   :  { %v7297_v62 = vpop.eup %7296 }
 0x4de   :  { %v2024_v29 = vmul.f32 %v7297_v62, %v7793_v59  ;;  %v1133_v59 = vrot.slane %v1119_v53, %v7593_v11  ;;  %v7299_v34 = vpop.eup %7298 }
 0x4df   :  { %v2025_v56 = vmul.f32 %v7299_v34, %v7785_v45 }
 0x4e0   :  { %6892 = vmatmul.mubr.msk.f32.vlgmr.msra.gmra.mrb[14].mxu1 %vm1306_vm2, %v2024_v29 }
 0x4e1   :  { %6901 = vmatprep.mubr.msk.f32.mxu1 %vm7421_vm1, %v7420_v1 }
 0x4ff   :  { %v2006_v60 = vpop.xlane.xlu0 %2005 }
 0x500   :  { %7300 = vrcp.f32 %v2006_v60 }
 0x501   :  { %7302 = vrcp.f32 %v2009_v31 }
 0x503   :  { %v2012_v6 = vpop.xlane.xlu0 %2011 }
 0x504   :  { %7304 = vrcp.f32 %v2012_v6 }
 0x507   :  { %v1025_v63 = vpop.permute.xlu0 %1024 }
 0x508   :  { %v1102_v10 = vcombine.low %v7769_v9, %v1025_v63  ;;  %v1103_v13 = vcombine.high %v7769_v9, %v1025_v63 }
 0x50a   :  { %v1110_v15 = vrot.slane %v1102_v10, %v7593_v11  ;;  %v1117_v16 = vrot.slane %v1103_v13, %v7593_v11  ;;  %v7301_v47 = vpop.eup %7300 }
 0x50b   :  { %v7303_v8 = vpop.eup %7302  ;;  %v2026_v58 = vmul.f32 %v7301_v47, %v7819_v42 }
 0x50c   :  { %v1134_v17 = vcombine.low %v1110_v15, %v1126_v14  ;;  %v1135_v20 = vcombine.high %v1110_v15, %v1126_v14  ;;  %v1150_v21 = vcombine.low %v1117_v16, %v1133_v59  ;;  %v1151_v22 = vcombine.high %v1117_v16, %v1133_v59 }
 0x50d   :  { %v2027_v62 = vmul.f32 %v7303_v8, %v7801_v12 }
 0x50e   :  { %v1142_v23 = vrot.slane %v1134_v17, %v7596_v18  ;;  %v1149_v24 = vrot.slane %v1135_v20, %v7596_v18  ;;  %v1158_v9 = vrot.slane %v1150_v21, %v7596_v18  ;;  %v1165_v25 = vrot.slane %v1151_v22, %v7596_v18  ;;  %v7305_v55 = vpop.eup %7304 }
 0x50f   :  { %v2028_v29 = vmul.f32 %v7305_v55, %v7823_v44 }
 0x510   :  { %v1238_v0 = vcombine.low %v1142_v23, %v1149_v24  ;;  %v6551_v26 = vcombine.high %v1142_v23, %v1149_v24  ;;  %v1254_v27 = vcombine.low %v1158_v9, %v1165_v25  ;;  %v6552_v28 = vcombine.high %v1158_v9, %v1165_v25 }
 0x512   :  { %v1245_v30 = vrot.slane %v1238_v0, %v7593_v11  ;;  %v1253_v32 = vrot.slane %v6551_v26, %v7593_v11  ;;  %v1261_v33 = vrot.slane %v1254_v27, %v7593_v11  ;;  %v1269_v2 = vrot.slane %v6552_v28, %v7593_v11 }
 0x514   :  { %v1270_v36 = vcombine.low %v1245_v30, %v1253_v32  ;;  %v1286_v38 = vcombine.low %v1261_v33, %v1269_v2  ;;  %v1271_v41 = vcombine.high %v1245_v30, %v1253_v32  ;;  %v1287_v43 = vcombine.high %v1261_v33, %v1269_v2 }
 0x516   :  { %v1278_v7 = vrot.slane %v1270_v36, %v7596_v18  ;;  %v1294_v48 = vrot.slane %v1286_v38, %v7596_v18  ;;  %v1285_v49 = vrot.slane %v1271_v41, %v7596_v18  ;;  %v1301_v50 = vrot.slane %v1287_v43, %v7596_v18 }
 0x518   :  { %v1302_v52 = vcombine.low %v1278_v7, %v1294_v48  ;;  %v1303_v54 = vcombine.high %v1278_v7, %v1294_v48  ;;  %v1304_v3 = vcombine.low %v1285_v49, %v1301_v50  ;;  %v1305_v4 = vcombine.high %v1285_v49, %v1301_v50 }
 0x51a   :  { %6895 = vmatpush3.msra.mxu0 %v1302_v52  ;;  %6900 = vmatpush3.msra.mxu1 %v1303_v54 }
 0x51b   :  { %6897 = vmatmul.mubr.msk.f32.vlgmr.msra.gmra.mrb[14].mxu0 %vm1306_vm2, %v2025_v56  ;;  %6902 = vmatmul.mubr.msk.f32.vlgmr.msra.gmra.mrb[16].mxu1 %vm1306_vm2, %v2026_v58 }
 0x51c   :  { %6904 = vmatprep.subr.mxu0 %v7420_v1  ;;  %6909 = vmatprep.subr.mxu1 %v7420_v1 }
 0x51d   :  { %6905 = vmatpush3.msra.mxu0 %v1304_v3  ;;  %6910 = vmatpush3.msra.mxu1 %v1305_v4 }
 0x51e   :  { %6906 = vmatprep.mubr.msk.f32.mxu0 %vm7421_vm1, %v7420_v1  ;;  %6911 = vmatprep.mubr.msk.f32.mxu1 %vm7421_vm1, %v7420_v1 }
 0x51f   :  { %6907 = vmatmul.mubr.msk.f32.vlgmr.msra.gmra.mrb[16].mxu0 %vm1306_vm2, %v2027_v62  ;;  %6912 = vmatmul.mubr.msk.f32.vlgmr.msra.gmra.mrb[18].mxu1 %vm1306_vm2, %v2028_v29 }
 0x5a3   :  { %v2098_v45 = vpop.f32.mrb[10].mxu0 }
 0x5a4   :  { %v6878_v42 = vpop.f32.mrb[11].mxu0 }
 0x5a7   :  { %v2244_v31 = vpop.f32.mrb[12].mxu0 }
 0x5a8   :  { %v2171_v60 = vpop.f32.mrb[12].mxu1  ;;  %v2613_v5 = vcombine.low %v2098_v45, %v2244_v31  ;;  %v2614_v12 = vcombine.high %v2098_v45, %v2244_v31  ;;  %v6888_v6 = vpop.f32.mrb[13].mxu0 }
 0x5a9   :  { %v6883_v44 = vpop.f32.mrb[13].mxu1 }
 0x5aa   :  { %v2621_v13 = vrot.slane %v2613_v5, %v7593_v11  ;;  %v2628_v14 = vrot.slane %v2614_v12, %v7593_v11 }
 0x5b3   :  { %v2317_v61 = vpop.f32.mrb[14].mxu1 }
 0x5b4   :  { %v2629_v53 = vcombine.low %v2171_v60, %v2317_v61  ;;  %v2630_v63 = vcombine.high %v2171_v60, %v2317_v61  ;;  %v6893_v10 = vpop.f32.mrb[15].mxu1 }
 0x5b5   :  { %v72_v10 = vld [vmem:[#allocation2 + $0x60] sm:$0xff] }
 0x5b6   :  { %v2637_v59 = vrot.slane %v2629_v53, %v7593_v11  ;;  %v2644_v15 = vrot.slane %v2630_v63, %v7593_v11 }
 0x5b8   :  { %v2645_v16 = vcombine.low %v2621_v13, %v2637_v59  ;;  %v2646_v17 = vcombine.high %v2621_v13, %v2637_v59  ;;  %v2661_v20 = vcombine.low %v2628_v14, %v2644_v15  ;;  %v2662_v21 = vcombine.high %v2628_v14, %v2644_v15  ;;  %v73_v13 = vld [vmem:[#allocation2 + $0x68] sm:$0xff] }
 0x5ba   :  { %v2653_v22 = vrot.slane %v2645_v16, %v7596_v18  ;;  %v2660_v23 = vrot.slane %v2646_v17, %v7596_v18  ;;  %v2669_v24 = vrot.slane %v2661_v20, %v7596_v18  ;;  %v2676_v9 = vrot.slane %v2662_v21, %v7596_v18 }
 0x5bb   :  { %v7155_v17 = vpack.c.bf16 %v73_v13, %v72_v10 }
 0x5bc   :  { %v2749_v25 = vcombine.low %v2653_v22, %v2660_v23  ;;  %v6577_v0 = vcombine.high %v2653_v22, %v2660_v23  ;;  %v2765_v26 = vcombine.low %v2669_v24, %v2676_v9  ;;  %v6578_v27 = vcombine.high %v2669_v24, %v2676_v9  ;;  %v74_v24 = vld [vmem:[#allocation2 + $0x70] sm:$0xff]  ;;  %v75_v9 = vld [vmem:[#allocation2 + $0x78] sm:$0xff] }
 0x5bd   :  { %7156 = vmatprep.subr.bf16.mxu0 %v7155_v17 }
 0x5be   :  { %v2756_v28 = vrot.slane %v2749_v25, %v7593_v11  ;;  %v2764_v30 = vrot.slane %v6577_v0, %v7593_v11  ;;  %v2772_v32 = vrot.slane %v2765_v26, %v7593_v11  ;;  %v2780_v33 = vrot.slane %v6578_v27, %v7593_v11  ;;  %7158 = vmatpush3.bf16.msra.mxu0 %v7155_v17 }
 0x5c0   :  { %v2782_v2 = vcombine.high %v2756_v28, %v2764_v30  ;;  %v2798_v34 = vcombine.high %v2772_v32, %v2780_v33  ;;  %v2781_v36 = vcombine.low %v2756_v28, %v2764_v30  ;;  %v2797_v38 = vcombine.low %v2772_v32, %v2780_v33 }
 0x5c1   :  { %v7159_v28 = vpack.c.bf16 %v75_v9, %v74_v24  ;;  %v95_v9 = vld [vmem:[%s8545_s4 + $0x18] sm:$0xff] }
 0x5c2   :  { %v2796_v41 = vrot.slane %v2782_v2, %v7596_v18  ;;  %v2812_v43 = vrot.slane %v2798_v34, %v7596_v18  ;;  %v7894_v47 = vrot.slane %v2781_v36, %v7596_v18  ;;  %v7897_v7 = vrot.slane %v2797_v38, %v7596_v18 }
 0x5c3   :  { %7160 = vmatprep.subr.bf16.mxu0 %v7159_v28 }
 0x5c4   :  { %v2815_v48 = vcombine.low %v2796_v41, %v2812_v43  ;;  %v2814_v8 = vcombine.high %v7894_v47, %v7897_v7  ;;  %v2813_v49 = vcombine.low %v7894_v47, %v7897_v7  ;;  %v2816_v50 = vcombine.high %v2796_v41, %v2812_v43  ;;  %7162 = vmatpush3.bf16.msra.mxu0 %v7159_v28 }
 0x5c5   :  { %v2919_v7 = vsub.s32 3, %v7517_v35 }
 0x5c6   :  { %2895 = vrot.lane.b32.xlu0 %v2815_v48, %s7425_s1  ;;  %2887 = vrot.lane.b32.xlu1 %v2814_v8, %s7416_s14 }
 0x5ca   :  { %2903 = vrot.lane.b32.xlu0 %v2816_v50, %s7426_s27 }
 0x5ee   :  { %v2390_v52 = vpop.f32.mrb[14].mxu0  ;;  %v2463_v54 = vpop.f32.mrb[16].mxu1 }
 0x5ef   :  { %v6898_v55 = vpop.f32.mrb[15].mxu0  ;;  %v6903_v56 = vpop.f32.mrb[17].mxu1 }
 0x5f2   :  { %v2536_v58 = vpop.f32.mrb[16].mxu0  ;;  %v2609_v3 = vpop.f32.mrb[18].mxu1 }
 0x5f3   :  { %v2681_v4 = vcombine.low %v2390_v52, %v2536_v58  ;;  %v2682_v62 = vcombine.high %v2390_v52, %v2536_v58  ;;  %v2697_v29 = vcombine.low %v2463_v54, %v2609_v3  ;;  %v2698_v45 = vcombine.high %v2463_v54, %v2609_v3  ;;  %v6908_v42 = vpop.f32.mrb[17].mxu0  ;;  %v6913_v31 = vpop.f32.mrb[19].mxu1 }
 0x5f5   :  { %v2689_v60 = vrot.slane %v2681_v4, %v7593_v11  ;;  %v2696_v5 = vrot.slane %v2682_v62, %v7593_v11  ;;  %v2705_v12 = vrot.slane %v2697_v29, %v7593_v11  ;;  %v2712_v6 = vrot.slane %v2698_v45, %v7593_v11 }
 0x5f7   :  { %v2713_v44 = vcombine.low %v2689_v60, %v2705_v12  ;;  %v2714_v61 = vcombine.high %v2689_v60, %v2705_v12  ;;  %v2729_v53 = vcombine.low %v2696_v5, %v2712_v6  ;;  %v2730_v63 = vcombine.high %v2696_v5, %v2712_v6 }
 0x5f9   :  { %v2721_v14 = vrot.slane %v2713_v44, %v7596_v18  ;;  %v2728_v59 = vrot.slane %v2714_v61, %v7596_v18  ;;  %v2737_v15 = vrot.slane %v2729_v53, %v7596_v18  ;;  %v2744_v16 = vrot.slane %v2730_v63, %v7596_v18 }
 0x5fb   :  { %v2817_v20 = vcombine.low %v2721_v14, %v2728_v59  ;;  %v6579_v21 = vcombine.high %v2721_v14, %v2728_v59  ;;  %v2833_v22 = vcombine.low %v2737_v15, %v2744_v16  ;;  %v6580_v23 = vcombine.high %v2737_v15, %v2744_v16 }
 0x5fd   :  { %v2824_v25 = vrot.slane %v2817_v20, %v7593_v11  ;;  %v2832_v0 = vrot.slane %v6579_v21, %v7593_v11  ;;  %v2840_v26 = vrot.slane %v2833_v22, %v7593_v11  ;;  %v2848_v27 = vrot.slane %v6580_v23, %v7593_v11  ;;  %v93_v22 = vld [vmem:[%s8545_s4 + $0x8] sm:$0xff]  ;;  %v94_v23 = vld [vmem:[%s8545_s4 + $0x10] sm:$0xff] }
 0x5ff   :  { %v2849_v30 = vcombine.low %v2824_v25, %v2832_v0  ;;  %v2865_v32 = vcombine.low %v2840_v26, %v2848_v27  ;;  %v2850_v33 = vcombine.high %v2824_v25, %v2832_v0  ;;  %v2866_v2 = vcombine.high %v2840_v26, %v2848_v27 }
 0x600   :  { %v7167_v25 = vpack.c.bf16 %v95_v9, %v94_v23 }
 0x601   :  { %v2857_v34 = vrot.slane %v2849_v30, %v7596_v18  ;;  %v2873_v36 = vrot.slane %v2865_v32, %v7596_v18  ;;  %v2864_v38 = vrot.slane %v2850_v33, %v7596_v18  ;;  %v2880_v41 = vrot.slane %v2866_v2, %v7596_v18 }
 0x602   :  { %v3032_v33 = vsub.s32 4, %v7517_v35  ;;  %v3038_v2 = vsub.s32 5, %v7517_v35 }
 0x603   :  { %v2882_v43 = vcombine.high %v2857_v34, %v2873_v36  ;;  %v2881_v48 = vcombine.low %v2857_v34, %v2873_v36  ;;  %v2883_v8 = vcombine.low %v2864_v38, %v2880_v41  ;;  %v2884_v50 = vcombine.high %v2864_v38, %v2880_v41 }
 0x605   :  { %2889 = vrot.lane.b32.xlu1 %v2882_v43, %s7416_s14 }
 0x609   :  { %2897 = vrot.lane.b32.xlu1 %v2883_v8, %s7425_s1 }
 0x60d   :  { %2905 = vrot.lane.b32.xlu1 %v2884_v50, %s7426_s27 }
 0x638   :  { %v2896_v52 = vpop.permute.xlu0 %2895  ;;  %v2888_v54 = vpop.permute.xlu1 %2887 }
 0x639   :  { %v2909_v55 = vsel %vm1306_vm2, %v2813_v49, %v2888_v54  ;;  %v7940_v49 = vld [vmem:[%s8547_s6] sm:$0xff] }
 0x63a   :  { %v2912_v58 = vsel %vm2911_vm3, %v2909_v55, %v2896_v52  ;;  %v2920_v31 = vrot.slane %v7940_v49, %v2919_v7  ;;  %v3033_v34 = vrot.slane %v7940_v49, %v3032_v33  ;;  %v3039_v41 = vrot.slane %v7940_v49, %v3038_v2  ;;  %v100_v55 = vld [vmem:[%s8546_s5] sm:$0xff] }
 0x63c   :  { %v2904_v56 = vpop.permute.xlu0 %2903 }
 0x63d   :  { %v2915_v3 = vsel %vm2914_vm4, %v2912_v58, %v2904_v56  ;;  %v101_v56 = vld [vmem:[%s8546_s5 + $0x8] sm:$0xff]  ;;  %v102_v58 = vld [vmem:[%s8546_s5 + $0x10] sm:$0xff] }
 0x63e   :  { %6922 = vmatprep.mubr.msk.f32.mxu0 %vm122_vm0, %v2915_v3  ;;  %v7171_v3 = vpack.c.bf16 %v101_v56, %v100_v55 }
 0x640   :  { %7172 = vmatprep.subr.bf16.mxu0 %v7171_v3 }
 0x677   :  { %v2890_v4 = vpop.permute.xlu1 %2889 }
 0x678   :  { %v2910_v29 = vsel %vm1306_vm2, %v2881_v48, %v2890_v4  ;;  %v103_v4 = vld [vmem:[%s8546_s5 + $0x18] sm:$0xff] }
 0x67b   :  { %v2898_v62 = vpop.permute.xlu1 %2897 }
 0x67c   :  { %v2913_v45 = vsel %vm2911_vm3, %v2910_v29, %v2898_v62  ;;  %v7175_v62 = vpack.c.bf16 %v103_v4, %v102_v58  ;;  %v104_v29 = vld [vmem:[%s8546_s5 + $0x20] sm:$0xff] }
 0x67f   :  { %v2906_v42 = vpop.permute.xlu1 %2905 }
 0x680   :  { %v2916_v47 = vsel %vm2914_vm4, %v2913_v45, %v2906_v42  ;;  %v105_v45 = vld [vmem:[%s8546_s5 + $0x28] sm:$0xff] }
 0x681   :  { %6923 = vmatmul.mubr.msk.f32.vlgmr.msra.gmra.mrb[18].mxu0 %vm122_vm0, %v2916_v47  ;;  %v7179_v42 = vpack.c.bf16 %v105_v45, %v104_v29  ;;  %v106_v47 = vld [vmem:[%s8546_s5 + $0x30] sm:$0xff]  ;;  %v84_v29 = vld [vmem:[#allocation2 + $0xc0] sm:$0xff] }
 0x682   :  { %7174 = vmatpush3.bf16.msra.mxu0 %v7171_v3 }
 0x683   :  { %7176 = vmatprep.subr.bf16.mxu0 %v7175_v62 }
 0x686   :  { %7178 = vmatpush3.bf16.msra.mxu0 %v7175_v62  ;;  %v77_v62 = vld [vmem:[#allocation2 + $0x88] sm:$0xff] }
 0x687   :  { %7180 = vmatprep.subr.bf16.mxu0 %v7179_v42 }
 0x68a   :  { %7182 = vmatpush3.bf16.msra.mxu0 %v7179_v42  ;;  %v85_v42 = vld [vmem:[#allocation2 + $0xc8] sm:$0xff] }
 0x754   :  { %v6924_v60 = vpop.f32.mrb[18].mxu0 }
 0x755   :  { %v2999_v5 = vadd.f32 %v6924_v60, %v2920_v31  ;;  %v2993_v12 = vpop.f32.mrb[19].mxu0 }
 0x756   :  { %v2994_v6 = vadd.f32 %v2993_v12, %v2920_v31  ;;  %v107_v31 = vld [vmem:[%s8546_s5 + $0x38] sm:$0xff] }
 0x757   :  { %v3003_v44 = vadd.f32 %v2999_v5, %v7536_v51  ;;  %v7183_v60 = vpack.c.bf16 %v107_v31, %v106_v47  ;;  %v6583_v5 = vld [vmem:[%s8548_s7] ss:$0 sm:$0xff]  ;;  %v78_v47 = vld [vmem:[#allocation2 + $0x90] sm:$0xff]  ;;  %v79_v31 = vld [vmem:[#allocation2 + $0x98] sm:$0xff] }
 0x758   :  { %v3002_v61 = vadd.f32 %v2994_v6, %v7530_v46  ;;  %v92_v46 = vld [vmem:[%s8545_s4] sm:$0xff] }
 0x759   :  { %v3007_v53 = vsel %vm122_vm0, %v3003_v44, 0.0  ;;  %v7163_v24 = vpack.c.bf16 %v93_v22, %v92_v46  ;;  %7184 = vmatprep.subr.bf16.mxu0 %v7183_v60 }
 0x75a   :  { %3008 = vadd.xlane.f32.xlu1 %v3007_v53  ;;  %v3004_v63 = vsel %vm122_vm0, %v3002_v61, 0.0  ;;  %7186 = vmatpush3.bf16.msra.mxu0 %v7183_v60  ;;  %v7203_v60 = vpack.c.bf16 %v85_v42, %v84_v29 }
 0x75b   :  { %3005 = vadd.xlane.f32.xlu0 %v3004_v63  ;;  %7164 = vmatprep.subr.bf16.mxu1 %v7163_v24 }
 0x75c   :  { %7166 = vmatpush3.bf16.msra.mxu1 %v7163_v24  ;;  %7204 = vmatprep.subr.bf16.mxu0 %v7203_v60 }
 0x75d   :  { %7168 = vmatprep.subr.bf16.mxu1 %v7167_v25 }
 0x760   :  { %7170 = vmatpush3.bf16.msra.mxu1 %v7167_v25 }
 0x7e7   :  { %v3009_v10 = vpop.xlane.xlu1 %3008 }
 0x7e8   :  { %v3011_v13 = vmul.f32 0.03125, %v3009_v10  ;;  %v3006_v14 = vpop.xlane.xlu0 %3005 }
 0x7e9   :  { %v3010_v59 = vmul.f32 0.03125, %v3006_v14 }
 0x7ea   :  { %v3013_v15 = vsub.f32 %v3003_v44, %v3011_v13 }
 0x7eb   :  { %v3012_v16 = vsub.f32 %v3002_v61, %v3010_v59 }
 0x7ec   :  { %v3015_v21 = vmul.f32 %v3013_v15, %v3013_v15 }
 0x7ed   :  { %v3014_v17 = vmul.f32 %v3012_v16, %v3012_v16 }
 0x7ee   :  { %v3019_v51 = vsel %vm122_vm0, %v3015_v21, 0.0 }
 0x7ef   :  { %v3016_v20 = vsel %vm122_vm0, %v3014_v17, 0.0 }
 0x7f0   :  { %3017 = vadd.xlane.f32.xlu0 %v3016_v20 }
 0x7f4   :  { %3020 = vadd.xlane.f32.xlu0 %v3019_v51 }
 0x87d   :  { %v3018_v0 = vpop.xlane.xlu0 %3017 }
 0x87e   :  { %v3022_v26 = vmul.f32 0.03125, %v3018_v0  ;;  %v3149_v0 = vsub.s32 6, %v7517_v35 }
 0x880   :  { %v3024_v27 = vadd.f32 1e-12, %v3022_v26  ;;  %v3150_v26 = vrot.slane %v7940_v49, %v3149_v0 }
 0x881   :  { %v3021_v28 = vpop.xlane.xlu0 %3020 }
 0x882   :  { %7306 = vrsqrt.f32 %v3024_v27  ;;  %v3023_v30 = vmul.f32 0.03125, %v3021_v28 }
 0x884   :  { %v3025_v32 = vadd.f32 1e-12, %v3023_v30 }
 0x886   :  { %7308 = vrsqrt.f32 %v3025_v32 }
 0x88c   :  { %v7307_v36 = vpop.eup %7306 }
 0x88d   :  { %v3028_v38 = vmul.f32 %v7307_v36, %v3012_v16 }
 0x88f   :  { %v3034_v43 = vmul.f32 %v3033_v34, %v3028_v38 }
 0x890   :  { %v7309_v48 = vpop.eup %7308 }
 0x891   :  { %v3029_v8 = vmul.f32 %v7309_v48, %v3013_v15  ;;  %v3040_v50 = vadd.f32 %v3039_v41, %v3034_v43 }
 0x893   :  { %v3035_v52 = vmul.f32 %v3033_v34, %v3029_v8  ;;  %6933 = vmatprep.mubr.msk.f32.mxu1 %vm122_vm0, %v3040_v50 }
 0x895   :  { %v3041_v54 = vadd.f32 %v3039_v41, %v3035_v52 }
 0x897   :  { %6934 = vmatmul.mubr.msk.f32.vlgmr.msra.gmra.mrb[20].mxu1 %vm122_vm0, %v3041_v54 }
 0x96a   :  { %v6935_v12 = vpop.f32.mrb[20].mxu1 }
 0x96b   :  { %v3126_v6 = vadd.f32 %v6935_v12, %v6583_v5  ;;  %v3120_v44 = vpop.f32.mrb[21].mxu1  ;;  %v86_v12 = vld [vmem:[#allocation2 + $0xd0] sm:$0xff] }
 0x96c   :  { %v3121_v61 = vadd.f32 %v6583_v5, %v3120_v44  ;;  %v7191_v5 = vpack.c.bf16 %v79_v31, %v78_v47 }
 0x96d   :  { %v3132_v53 = vmul.f32 0.044715, %v3126_v6  ;;  %v3130_v24 = vmul.f32 0.5, %v3126_v6 }
 0x96e   :  { %v3131_v63 = vmul.f32 0.044715, %v3121_v61  ;;  %v3129_v22 = vmul.f32 0.5, %v3121_v61 }
 0x96f   :  { %v3134_v10 = vmul.f32 %v3132_v53, %v3126_v6  ;;  %v81_v53 = vld [vmem:[#allocation2 + $0xa8] sm:$0xff] }
 0x970   :  { %v3133_v13 = vmul.f32 %v3131_v63, %v3121_v61 }
 0x971   :  { %v3136_v14 = vmul.f32 %v3134_v10, %v3126_v6 }
 0x972   :  { %v3135_v59 = vmul.f32 %v3133_v13, %v3121_v61 }
 0x973   :  { %v3138_v15 = vadd.f32 %v3136_v14, %v3126_v6  ;;  %v87_v6 = vld [vmem:[#allocation2 + $0xd8] sm:$0xff] }
 0x974   :  { %v3137_v16 = vadd.f32 %v3135_v59, %v3121_v61  ;;  %v7207_v44 = vpack.c.bf16 %v87_v6, %v86_v12  ;;  %v80_v61 = vld [vmem:[#allocation2 + $0xa0] sm:$0xff] }
 0x975   :  { %v3140_v17 = vmul.f32 0.7978846, %v3138_v15  ;;  %v7195_v63 = vpack.c.bf16 %v81_v53, %v80_v61 }
 0x976   :  { %v3139_v20 = vmul.f32 0.7978846, %v3137_v16 }
 0x977   :  { %7310 = vtanh.f32 %v3140_v17  ;;  %v3263_v17 = vsub.s32 7, %v7517_v35  ;;  %v6434_v35 = vld [vmem:[%s8551_s10] sm:$0xff] }
 0x978   :  { %7312 = vtanh.f32 %v3139_v20 }
 0x979   :  { %v3264_v20 = vrot.slane %v7940_v49, %v3263_v17  ;;  %v8042_v49 = vld [vmem:[%s8547_s6 + $0x10] sm:$0xff] }
 0x981   :  { %v7311_v21 = vpop.eup %7310 }
 0x982   :  { %v7313_v51 = vpop.eup %7312  ;;  %v3144_v46 = vadd.f32 1.0, %v7311_v21 }
 0x983   :  { %v3143_v23 = vadd.f32 1.0, %v7313_v51 }
 0x984   :  { %v3146_v25 = vmul.f32 %v3144_v46, %v3130_v24 }
 0x985   :  { %v3145_v9 = vmul.f32 %v3143_v23, %v3129_v22  ;;  %v6588_v23 = vld [vmem:[%s8547_s6 + $0x8] ss:$0 sm:$0xff] }
 0x987   :  { %6952 = vmatprep.mubr.msk.f32.mxu0 %vm3151_vm5, %v3145_v9 }
 0x988   :  { %6953 = vmatmul.mubr.msk.f32.vlgmr.msra.gmra.mrb[20].mxu0 %vm3151_vm5, %v3146_v25  ;;  %v82_v25 = vld [vmem:[#allocation2 + $0xb0] sm:$0xff] }
 0x989   :  { %7206 = vmatpush3.bf16.msra.mxu0 %v7203_v60 }
 0x98a   :  { %7208 = vmatprep.subr.bf16.mxu0 %v7207_v44 }
 0x98d   :  { %7210 = vmatpush3.bf16.msra.mxu0 %v7207_v44 }
 0x98e   :  { %6998 = vmatprep.subr.mxu0 %v7420_v1 }
 0xa5b   :  { %v6954_v27 = vpop.f32.mrb[20].mxu0 }
 0xa5c   :  { %v3230_v28 = vadd.f32 %v6954_v27, %v3150_v26  ;;  %v3224_v30 = vpop.f32.mrb[21].mxu0 }
 0xa5d   :  { %v3225_v32 = vadd.f32 %v3224_v30, %v3150_v26  ;;  %v83_v26 = vld [vmem:[#allocation2 + $0xb8] sm:$0xff] }
 0xa5e   :  { %v3234_v34 = vadd.f32 %v3230_v28, %v3041_v54  ;;  %v7199_v30 = vpack.c.bf16 %v83_v26, %v82_v25 }
 0xa5f   :  { %v3233_v36 = vadd.f32 %v3225_v32, %v3040_v50  ;;  %v76_v50 = vld [vmem:[#allocation2 + $0x80] sm:$0xff]  ;;  %v3276_v32 = vrot.slane %v8042_v49, %v7520_v37 }
 0xa60   :  { %v3238_v38 = vsel %vm122_vm0, %v3234_v34, 0.0  ;;  %v7187_v45 = vpack.c.bf16 %v77_v62, %v76_v50 }
 0xa61   :  { %3239 = vadd.xlane.f32.xlu1 %v3238_v38  ;;  %v3235_v41 = vsel %vm122_vm0, %v3233_v36, 0.0 }
 0xa62   :  { %3236 = vadd.xlane.f32.xlu0 %v3235_v41  ;;  %7188 = vmatprep.subr.bf16.mxu1 %v7187_v45 }
 0xa63   :  { %7190 = vmatpush3.bf16.msra.mxu1 %v7187_v45 }
 0xa64   :  { %7192 = vmatprep.subr.bf16.mxu1 %v7191_v5 }
 0xa67   :  { %7194 = vmatpush3.bf16.msra.mxu1 %v7191_v5 }
 0xa68   :  { %7196 = vmatprep.subr.bf16.mxu1 %v7195_v63 }
 0xaee   :  { %v3240_v43 = vpop.xlane.xlu1 %3239 }
 0xaef   :  { %v3242_v48 = vmul.f32 0.03125, %v3240_v43  ;;  %v3237_v8 = vpop.xlane.xlu0 %3236 }
 0xaf0   :  { %v3241_v52 = vmul.f32 0.03125, %v3237_v8 }
 0xaf1   :  { %v3244_v55 = vsub.f32 %v3234_v34, %v3242_v48  ;;  %v3361_v48 = vrot.slane %v8042_v49, %v7526_v39 }
 0xaf2   :  { %v3243_v56 = vsub.f32 %v3233_v36, %v3241_v52 }
 0xaf3   :  { %v3246_v58 = vmul.f32 %v3244_v55, %v3244_v55 }
 0xaf4   :  { %v3245_v3 = vmul.f32 %v3243_v56, %v3243_v56 }
 0xaf5   :  { %v3250_v4 = vsel %vm122_vm0, %v3246_v58, 0.0 }
 0xaf6   :  { %3251 = vadd.xlane.f32.xlu1 %v3250_v4  ;;  %v3247_v54 = vsel %vm122_vm0, %v3245_v3, 0.0 }
 0xaf7   :  { %3248 = vadd.xlane.f32.xlu0 %v3247_v54 }
 0xb83   :  { %v3252_v10 = vpop.xlane.xlu1 %3251 }
 0xb84   :  { %v3254_v13 = vmul.f32 0.03125, %v3252_v10  ;;  %v3249_v14 = vpop.xlane.xlu0 %3248 }
 0xb85   :  { %v3253_v59 = vmul.f32 0.03125, %v3249_v14 }
 0xb86   :  { %v3256_v15 = vadd.f32 1e-12, %v3254_v13 }
 0xb87   :  { %v3255_v16 = vadd.f32 1e-12, %v3253_v59 }
 0xb88   :  { %7314 = vrsqrt.f32 %v3256_v15 }
 0xb89   :  { %7316 = vrsqrt.f32 %v3255_v16 }
 0xb92   :  { %v7315_v21 = vpop.eup %7314 }
 0xb93   :  { %v7317_v51 = vpop.eup %7316  ;;  %v3260_v46 = vmul.f32 %v7315_v21, %v3244_v55 }
 0xb94   :  { %v3259_v22 = vmul.f32 %v7317_v51, %v3243_v56 }
 0xb95   :  { %v3266_v24 = vmul.f32 %v3264_v20, %v3260_v46 }
 0xb96   :  { %v3265_v9 = vmul.f32 %v3264_v20, %v3259_v22 }
 0xb97   :  { %v8020_v28 = vadd.f32 %v6588_v23, %v3266_v24 }
 0xb98   :  { %v8018_v27 = vadd.f32 %v6588_v23, %v3265_v9 }
 0xb9a   :  { %6963 = vmatprep.mubr.msk.f32.mxu1 %vm122_vm0, %v8018_v27  ;;  %6985 = vmatprep.mubr.msk.f32.mxu0 %vm122_vm0, %v8018_v27 }
 0xb9b   :  { %6964 = vmatmul.mubr.msk.f32.vlgmr.msra.gmra.mrb[22].mxu1 %vm122_vm0, %v8020_v28  ;;  %6986 = vmatmul.mubr.msk.f32.vlgmr.msra.gmra.mrb[22].mxu0 %vm122_vm0, %v8020_v28 }
 0xb9c   :  { %7198 = vmatpush3.bf16.msra.mxu1 %v7195_v63  ;;  %6974 = vmatprep.mubr.msk.f32.mxu1 %vm122_vm0, %v8018_v27 }
 0xb9d   :  { %7200 = vmatprep.subr.bf16.mxu1 %v7199_v30  ;;  %7000 = vmatprep.mubr.msk.f32.mxu0 %vm7421_vm1, %v7420_v1 }
 0xba0   :  { %7202 = vmatpush3.bf16.msra.mxu1 %v7199_v30 }
 0xba1   :  { %6988 = vmatprep.subr.mxu1 %v7420_v1 }
 0xba3   :  { %6975 = vmatmul.mubr.msk.f32.vlgmr.msra.gmra.mrb[24].mxu1 %vm122_vm0, %v8020_v28 }
 0xba4   :  { %6990 = vmatprep.mubr.msk.f32.mxu1 %vm7421_vm1, %v7420_v1 }
 0xc6e   :  { %v6965_v34 = vpop.f32.mrb[22].mxu1  ;;  %v8046_v36 = vpop.f32.mrb[22].mxu0 }
 0xc6f   :  { %v3349_v38 = vpop.f32.mrb[23].mxu1  ;;  %v8048_v41 = vpop.f32.mrb[23].mxu0  ;;  %v8066_v39 = vadd.f32 %v6965_v34, %v3276_v32 }
 0xc70   :  { %v3350_v43 = vadd.f32 %v3349_v38, %v3276_v32 }
 0xc72   :  { %3518 = vrot.lane.b32.xlu1 %v3350_v43, %s7418_s23 }
 0xc76   :  { %v6976_v8 = vpop.f32.mrb[24].mxu1 }
 0xc77   :  { %v3428_v52 = vpop.f32.mrb[25].mxu1  ;;  %v8057_v37 = vadd.f32 %v6976_v8, %v3361_v48 }
 0xc78   :  { %v3429_v55 = vadd.f32 %v3428_v52, %v3361_v48 }
 0xc7a   :  { %3810 = vrot.lane.b32.xlu0 %v3429_v55, %s7418_s23  ;;  %3816 = vrot.lane.b32.xlu1 %v3429_v55, %s7417_s22 }
 0xc7e   :  { %3524 = vrot.lane.b32.xlu0 %v3350_v43, %s7417_s22  ;;  %3822 = vrot.lane.b32.xlu1 %v3429_v55, %s7419_s24 }
 0xc82   :  { %3812 = vrot.lane.b32.xlu0 %v8057_v37, %s7418_s23  ;;  %3530 = vrot.lane.b32.xlu1 %v3350_v43, %s7419_s24 }
 0xc86   :  { %3824 = vrot.lane.b32.xlu0 %v8057_v37, %s7419_s24  ;;  %3818 = vrot.lane.b32.xlu1 %v8057_v37, %s7417_s22 }
 0xc8a   :  { %3526 = vrot.lane.b32.xlu0 %v8066_v39, %s7417_s22  ;;  %3520 = vrot.lane.b32.xlu1 %v8066_v39, %s7418_s23 }
 0xc8e   :  { %3532 = vrot.lane.b32.xlu1 %v8066_v39, %s7419_s24 }
 0xce4   :  { %v3519_v56 = vpop.permute.xlu1 %3518 }
 0xcec   :  { %v3811_v58 = vpop.permute.xlu0 %3810  ;;  %v3817_v3 = vpop.permute.xlu1 %3816 }
 0xced   :  { %v3828_v4 = vcombine.low %v3429_v55, %v3817_v3  ;;  %v3829_v54 = vcombine.high %v3429_v55, %v3817_v3 }
 0xcef   :  { %v3836_v42 = vrot.slane %v3828_v4, %v7593_v11  ;;  %v3843_v47 = vrot.slane %v3829_v54, %v7593_v11 }
 0xcf0   :  { %v3525_v50 = vpop.permute.xlu0 %3524  ;;  %v3823_v62 = vpop.permute.xlu1 %3822 }
 0xcf1   :  { %v3844_v29 = vcombine.low %v3811_v58, %v3823_v62  ;;  %v3845_v45 = vcombine.high %v3811_v58, %v3823_v62  ;;  %v3536_v5 = vcombine.low %v3350_v43, %v3525_v50  ;;  %v3537_v12 = vcombine.high %v3350_v43, %v3525_v50 }
 0xcf3   :  { %v3852_v31 = vrot.slane %v3844_v29, %v7593_v11  ;;  %v3859_v60 = vrot.slane %v3845_v45, %v7593_v11  ;;  %v3544_v21 = vrot.slane %v3536_v5, %v7593_v11  ;;  %v3551_v51 = vrot.slane %v3537_v12, %v7593_v11 }
 0xcf4   :  { %v3531_v6 = vpop.permute.xlu1 %3530  ;;  %v3813_v10 = vpop.permute.xlu0 %3812 }
 0xcf5   :  { %v3860_v44 = vcombine.low %v3836_v42, %v3852_v31  ;;  %v3861_v61 = vcombine.high %v3836_v42, %v3852_v31  ;;  %v3876_v53 = vcombine.low %v3843_v47, %v3859_v60  ;;  %v3877_v63 = vcombine.high %v3843_v47, %v3859_v60 }
 0xcf6   :  { %v3552_v13 = vcombine.low %v3519_v56, %v3531_v6  ;;  %v3553_v14 = vcombine.high %v3519_v56, %v3531_v6 }
 0xcf7   :  { %v3868_v59 = vrot.slane %v3860_v44, %v7596_v18  ;;  %v3875_v15 = vrot.slane %v3861_v61, %v7596_v18  ;;  %v3884_v16 = vrot.slane %v3876_v53, %v7596_v18  ;;  %v3891_v20 = vrot.slane %v3877_v63, %v7596_v18 }
 0xcf8   :  { %v3560_v46 = vrot.slane %v3552_v13, %v7593_v11  ;;  %v3567_v22 = vrot.slane %v3553_v14, %v7593_v11  ;;  %v3819_v23 = vpop.permute.xlu1 %3818  ;;  %v3825_v55 = vpop.permute.xlu0 %3824 }
 0xcf9   :  { %v3964_v24 = vcombine.low %v3868_v59, %v3875_v15  ;;  %v6599_v9 = vcombine.high %v3868_v59, %v3875_v15  ;;  %v3980_v25 = vcombine.low %v3884_v16, %v3891_v20  ;;  %v6600_v26 = vcombine.high %v3884_v16, %v3891_v20 }
 0xcfa   :  { %v3568_v30 = vcombine.low %v3544_v21, %v3560_v46  ;;  %v3569_v32 = vcombine.high %v3544_v21, %v3560_v46  ;;  %v3584_v34 = vcombine.low %v3551_v51, %v3567_v22  ;;  %v3585_v38 = vcombine.high %v3551_v51, %v3567_v22 }
 0xcfb   :  { %v8087_v43 = vrot.slane %v3964_v24, %v7593_v11  ;;  %v8090_v48 = vrot.slane %v6599_v9, %v7593_v11  ;;  %v8093_v8 = vrot.slane %v3980_v25, %v7593_v11  ;;  %v8096_v52 = vrot.slane %v6600_v26, %v7593_v11 }
 0xcfc   :  { %v3576_v56 = vrot.slane %v3568_v30, %v7596_v18  ;;  %v3583_v58 = vrot.slane %v3569_v32, %v7596_v18  ;;  %v3592_v3 = vrot.slane %v3584_v34, %v7596_v18  ;;  %v3599_v4 = vrot.slane %v3585_v38, %v7596_v18  ;;  %v3521_v54 = vpop.permute.xlu1 %3520  ;;  %v3527_v14 = vpop.permute.xlu0 %3526 }
 0xcfd   :  { %v3996_v50 = vcombine.low %v8087_v43, %v8090_v48  ;;  %v3997_v62 = vcombine.high %v8087_v43, %v8090_v48  ;;  %v3912_v31 = vcombine.low %v3813_v10, %v3825_v55  ;;  %v3913_v60 = vcombine.high %v3813_v10, %v3825_v55 }
 0xcfe   :  { %v3672_v29 = vcombine.low %v3576_v56, %v3583_v58  ;;  %v6595_v45 = vcombine.high %v3576_v56, %v3583_v58  ;;  %v3688_v42 = vcombine.low %v3592_v3, %v3599_v4  ;;  %v6596_v47 = vcombine.high %v3592_v3, %v3599_v4 }
 0xcff   :  { %v3896_v5 = vcombine.low %v8057_v37, %v3819_v23  ;;  %v3897_v12 = vcombine.high %v8057_v37, %v3819_v23  ;;  %v4012_v6 = vcombine.low %v8093_v8, %v8096_v52  ;;  %v4013_v44 = vcombine.high %v8093_v8, %v8096_v52 }
 0xd00   :  { %v8113_v61 = vrot.slane %v3672_v29, %v7593_v11  ;;  %v8116_v53 = vrot.slane %v6595_v45, %v7593_v11  ;;  %v3920_v63 = vrot.slane %v3912_v31, %v7593_v11  ;;  %v3927_v10 = vrot.slane %v3913_v60, %v7593_v11  ;;  %v3533_v59 = vpop.permute.xlu1 %3532 }
 0xd01   :  { %v3904_v13 = vrot.slane %v3896_v5, %v7593_v11  ;;  %v3911_v37 = vrot.slane %v3897_v12, %v7593_v11  ;;  %v8123_v15 = vrot.slane %v3688_v42, %v7593_v11  ;;  %v8126_v16 = vrot.slane %v6596_v47, %v7593_v11 }
 0xd02   :  { %v3704_v20 = vcombine.low %v8113_v61, %v8116_v53  ;;  %v3705_v21 = vcombine.high %v8113_v61, %v8116_v53  ;;  %v3604_v24 = vcombine.low %v8066_v39, %v3527_v14  ;;  %v3605_v9 = vcombine.high %v8066_v39, %v3527_v14 }
 0xd03   :  { %v3928_v51 = vcombine.low %v3904_v13, %v3920_v63  ;;  %v3929_v46 = vcombine.high %v3904_v13, %v3920_v63  ;;  %v3944_v22 = vcombine.low %v3911_v37, %v3927_v10  ;;  %v3945_v23 = vcombine.high %v3911_v37, %v3927_v10 }
 0xd04   :  { %v3620_v25 = vcombine.low %v3521_v54, %v3533_v59  ;;  %v3621_v26 = vcombine.high %v3521_v54, %v3533_v59  ;;  %v3612_v8 = vrot.slane %v3604_v24, %v7593_v11  ;;  %v3619_v52 = vrot.slane %v3605_v9, %v7593_v11 }
 0xd05   :  { %v3936_v30 = vrot.slane %v3928_v51, %v7596_v18  ;;  %v3943_v32 = vrot.slane %v3929_v46, %v7596_v18  ;;  %v3952_v34 = vrot.slane %v3944_v22, %v7596_v18  ;;  %v3959_v38 = vrot.slane %v3945_v23, %v7596_v18 }
 0xd06   :  { %v3628_v55 = vrot.slane %v3620_v25, %v7593_v11  ;;  %v3635_v56 = vrot.slane %v3621_v26, %v7593_v11  ;;  %v3720_v10 = vcombine.low %v8123_v15, %v8126_v16  ;;  %v3721_v13 = vcombine.high %v8123_v15, %v8126_v16 }
 0xd07   :  { %v4032_v58 = vcombine.low %v3936_v30, %v3943_v32  ;;  %v6601_v39 = vcombine.high %v3936_v30, %v3943_v32  ;;  %v4048_v3 = vcombine.low %v3952_v34, %v3959_v38  ;;  %v6602_v4 = vcombine.high %v3952_v34, %v3959_v38 }
 0xd08   :  { %v3636_v54 = vcombine.low %v3612_v8, %v3628_v55  ;;  %v3637_v29 = vcombine.high %v3612_v8, %v3628_v55  ;;  %v3652_v45 = vcombine.low %v3619_v52, %v3635_v56  ;;  %v3653_v42 = vcombine.high %v3619_v52, %v3635_v56 }
 0xd09   :  { %v4039_v47 = vrot.slane %v4032_v58, %v7593_v11  ;;  %v4047_v31 = vrot.slane %v6601_v39, %v7593_v11  ;;  %v4055_v60 = vrot.slane %v4048_v3, %v7593_v11  ;;  %v4063_v5 = vrot.slane %v6602_v4, %v7593_v11 }
 0xd0a   :  { %v3644_v12 = vrot.slane %v3636_v54, %v7596_v18  ;;  %v3651_v61 = vrot.slane %v3637_v29, %v7596_v18  ;;  %v3660_v53 = vrot.slane %v3652_v45, %v7596_v18  ;;  %v3667_v63 = vrot.slane %v3653_v42, %v7596_v18 }
 0xd0b   :  { %v4064_v37 = vcombine.low %v4039_v47, %v4047_v31  ;;  %v4080_v14 = vcombine.low %v4055_v60, %v4063_v5  ;;  %v4004_v23 = vrot.slane %v3996_v50, %v7596_v18  ;;  %v4020_v24 = vrot.slane %v4012_v6, %v7596_v18 }
 0xd0c   :  { %v3740_v59 = vcombine.low %v3644_v12, %v3651_v61  ;;  %v6597_v51 = vcombine.high %v3644_v12, %v3651_v61  ;;  %v3756_v46 = vcombine.low %v3660_v53, %v3667_v63  ;;  %v6598_v22 = vcombine.high %v3660_v53, %v3667_v63 }
 0xd0d   :  { %v4011_v9 = vrot.slane %v3997_v62, %v7596_v18  ;;  %v4027_v15 = vrot.slane %v4013_v44, %v7596_v18  ;;  %v4028_v32 = vcombine.low %v4004_v23, %v4020_v24  ;;  %v3712_v50 = vrot.slane %v3704_v20, %v7596_v18 }
 0xd0e   :  { %v3747_v16 = vrot.slane %v3740_v59, %v7593_v11  ;;  %v3755_v25 = vrot.slane %v6597_v51, %v7593_v11  ;;  %v3763_v26 = vrot.slane %v3756_v46, %v7593_v11  ;;  %v3771_v30 = vrot.slane %v6598_v22, %v7593_v11 }
 0xd0f   :  { %v4030_v34 = vcombine.low %v4011_v9, %v4027_v15  ;;  %v3728_v6 = vrot.slane %v3720_v10, %v7596_v18  ;;  %v4065_v38 = vcombine.high %v4039_v47, %v4047_v31  ;;  %v4081_v48 = vcombine.high %v4055_v60, %v4063_v5  ;;  %6989 = vmatpush3.xpose.msk.msra.mxu1 %vm1306_vm2, %v4028_v32 }
 0xd10   :  { %v3772_v8 = vcombine.low %v3747_v16, %v3755_v25  ;;  %v3788_v43 = vcombine.low %v3763_v26, %v3771_v30  ;;  %v3719_v44 = vrot.slane %v3705_v21, %v7596_v18  ;;  %6993 = vmatprep.subr.mxu1 %v7420_v1  ;;  %v4029_v52 = vcombine.high %v4004_v23, %v4020_v24 }
 0xd11   :  { %6999 = vmatpush3.xpose.msk.msra.mxu0 %vm1306_vm2, %v4030_v34  ;;  %v3736_v62 = vcombine.low %v3712_v50, %v3728_v6  ;;  %v3735_v55 = vrot.slane %v3721_v13, %v7596_v18  ;;  %v4072_v20 = vrot.slane %v4064_v37, %v7596_v18  ;;  %v4088_v56 = vrot.slane %v4080_v14, %v7596_v18 }
 0xd12   :  { %7008 = vmatprep.subr.mxu0 %v7420_v1  ;;  %v3780_v58 = vrot.slane %v3772_v8, %v7596_v18  ;;  %v3796_v39 = vrot.slane %v3788_v43, %v7596_v18  ;;  %v3773_v3 = vcombine.high %v3747_v16, %v3755_v25  ;;  %v3789_v4 = vcombine.high %v3763_v26, %v3771_v30 }
 0xd13   :  { %6991 = vmatmul.mubr.msk.f32.vlgmr.msra.gmra.mrb[26].mxu1 %vm1306_vm2, %v3736_v62  ;;  %v3738_v21 = vcombine.low %v3719_v44, %v3735_v55  ;;  %v4096_v54 = vcombine.low %v4072_v20, %v4088_v56  ;;  %v4079_v29 = vrot.slane %v4065_v38, %v7596_v18  ;;  %v4095_v45 = vrot.slane %v4081_v48, %v7596_v18 }
 0xd14   :  { %6994 = vmatpush3.xpose.msk.msra.mxu1 %vm1306_vm2, %v4029_v52  ;;  %6995 = vmatprep.mubr.msk.f32.mxu1 %vm7421_vm1, %v7420_v1  ;;  %v3737_v42 = vcombine.high %v3712_v50, %v3728_v6  ;;  %v3804_v47 = vcombine.low %v3780_v58, %v3796_v39  ;;  %v4031_v31 = vcombine.high %v4011_v9, %v4027_v15 }
 0xd15   :  { %7001 = vmatmul.mubr.msk.f32.vlgmr.msra.gmra.mrb[24].mxu0 %vm1306_vm2, %v3738_v21  ;;  %7003 = vmatprep.subr.mxu1 %v7420_v1  ;;  %v3787_v60 = vrot.slane %v3773_v3, %v7596_v18  ;;  %v3803_v5 = vrot.slane %v3789_v4, %v7596_v18  ;;  %v4098_v12 = vcombine.low %v4079_v29, %v4095_v45 }
 0xd16   :  { %7009 = vmatpush3.xpose.msk.msra.mxu0 %vm1306_vm2, %v4096_v54  ;;  %7010 = vmatprep.mubr.msk.f32.mxu0 %vm7421_vm1, %v7420_v1  ;;  %v3739_v61 = vcombine.high %v3719_v44, %v3735_v55  ;;  %v4097_v53 = vcombine.high %v4072_v20, %v4088_v56  ;;  %v3805_v63 = vcombine.high %v3780_v58, %v3796_v39 }
 0xd17   :  { %6996 = vmatmul.mubr.msk.f32.vlgmr.msra.gmra.mrb[28].mxu1 %vm1306_vm2, %v3737_v42  ;;  %7018 = vmatprep.subr.mxu0 %v7420_v1  ;;  %v3806_v10 = vcombine.low %v3787_v60, %v3803_v5  ;;  %v4099_v13 = vcombine.high %v4079_v29, %v4095_v45  ;;  %v3807_v37 = vcombine.high %v3787_v60, %v3803_v5 }
 0xd18   :  { %7004 = vmatpush3.xpose.msk.msra.mxu1 %vm1306_vm2, %v4031_v31  ;;  %7005 = vmatprep.mubr.msk.f32.mxu1 %vm7421_vm1, %v7420_v1  ;;  %v3440_v29 = vrot.slane %v8042_v49, %v353_v57 }
 0xd19   :  { %7013 = vmatprep.subr.mxu1 %v7420_v1  ;;  %7011 = vmatmul.mubr.msk.f32.vlgmr.msra.gmra.mrb[26].mxu0 %vm1306_vm2, %v3804_v47 }
 0xd1a   :  { %7019 = vmatpush3.xpose.msk.msra.mxu0 %vm1306_vm2, %v4098_v12  ;;  %7020 = vmatprep.mubr.msk.f32.mxu0 %vm7421_vm1, %v7420_v1  ;;  %v3508_v42 = vadd.f32 %v8048_v41, %v3440_v29  ;;  %v8250_v41 = vadd.f32 %v8046_v36, %v3440_v29 }
 0xd1b   :  { %7006 = vmatmul.mubr.msk.f32.vlgmr.msra.gmra.mrb[30].mxu1 %vm1306_vm2, %v3739_v61  ;;  %7028 = vmatprep.subr.mxu0 %v7420_v1 }
 0xd1c   :  { %7014 = vmatpush3.xpose.msk.msra.mxu1 %vm1306_vm2, %v4097_v53  ;;  %7015 = vmatprep.mubr.msk.f32.mxu1 %vm7421_vm1, %v7420_v1 }
 0xd1d   :  { %7023 = vmatprep.subr.mxu1 %v7420_v1  ;;  %7021 = vmatmul.mubr.msk.f32.vlgmr.msra.gmra.mrb[28].mxu0 %vm1306_vm2, %v3806_v10 }
 0xd1e   :  { %7030 = vmatprep.mubr.msk.f32.mxu0 %vm7421_vm1, %v7420_v1 }
 0xd1f   :  { %7016 = vmatmul.mubr.msk.f32.vlgmr.msra.gmra.mrb[32].mxu1 %vm1306_vm2, %v3805_v63 }
 0xd20   :  { %7024 = vmatpush3.xpose.msk.msra.mxu1 %vm1306_vm2, %v4099_v13  ;;  %7025 = vmatprep.mubr.msk.f32.mxu1 %vm7421_vm1, %v7420_v1 }
 0xd21   :  { %7033 = vmatprep.subr.mxu1 %v7420_v1 }
 0xd23   :  { %7026 = vmatmul.mubr.msk.f32.vlgmr.msra.gmra.mrb[34].mxu1 %vm1306_vm2, %v3807_v37 }
 0xd24   :  { %7035 = vmatprep.mubr.msk.f32.mxu1 %vm7421_vm1, %v7420_v1 }
 0xde6   :  { %v4464_v14 = vpop.f32.mrb[26].mxu1 }
 0xde7   :  { %v5000_v59 = vmul.f32 0.35355338, %v4464_v14  ;;  %v6992_v51 = vpop.f32.mrb[27].mxu1 }
 0xde8   :  { %v4616_v46 = vpop.f32.mrb[24].mxu0 }
 0xde9   :  { %v5002_v22 = vmul.f32 0.35355338, %v4616_v46  ;;  %v7002_v23 = vpop.f32.mrb[25].mxu0  ;;  %v5008_v24 = vadd.f32 %v5000_v59, %v7733_v19 }
 0xdea   :  { %v4540_v9 = vpop.f32.mrb[28].mxu1 }
 0xdeb   :  { %v5001_v15 = vmul.f32 0.35355338, %v4540_v9  ;;  %v6997_v16 = vpop.f32.mrb[29].mxu1  ;;  %v5016_v25 = vsel %vm1306_vm2, %v5008_v24, -inf  ;;  %v5010_v26 = vadd.f32 %v5002_v22, %v7733_v19 }
 0xdec   :  { %5017 = vmax.xlane.f32.xlu0 %v5016_v25  ;;  %v4768_v30 = vpop.f32.mrb[26].mxu0 }
 0xded   :  { %v5009_v32 = vadd.f32 %v5001_v15, %v7733_v19  ;;  %v5004_v34 = vmul.f32 0.35355338, %v4768_v30  ;;  %v7012_v50 = vpop.f32.mrb[27].mxu0  ;;  %v5022_v43 = vsel %vm1306_vm2, %v5010_v26, -inf }
 0xdee   :  { %v4692_v6 = vpop.f32.mrb[30].mxu1 }
 0xdef   :  { %v5003_v38 = vmul.f32 0.35355338, %v4692_v6  ;;  %v7007_v8 = vpop.f32.mrb[31].mxu1  ;;  %v5019_v48 = vsel %vm1306_vm2, %v5009_v32, -inf  ;;  %v5012_v62 = vadd.f32 %v5004_v34, %v7742_v40 }
 0xdf0   :  { %5023 = vmax.xlane.f32.xlu0 %v5022_v43  ;;  %5020 = vmax.xlane.f32.xlu1 %v5019_v48  ;;  %v4920_v44 = vpop.f32.mrb[28].mxu0 }
 0xdf1   :  { %v7022_v52 = vpop.f32.mrb[29].mxu0  ;;  %v5028_v55 = vsel %vm1306_vm2, %v5012_v62, -inf  ;;  %v5006_v58 = vmul.f32 0.35355338, %v4920_v44  ;;  %v5011_v39 = vadd.f32 %v5003_v38, %v7733_v19 }
 0xdf2   :  { %v4844_v20 = vpop.f32.mrb[32].mxu1 }
 0xdf3   :  { %v7017_v56 = vpop.f32.mrb[33].mxu1  ;;  %v5025_v21 = vsel %vm1306_vm2, %v5011_v39, -inf  ;;  %v5014_v54 = vadd.f32 %v5006_v58, %v7742_v40  ;;  %v5005_v19 = vmul.f32 0.35355338, %v4844_v20 }
 0xdf4   :  { %5029 = vmax.xlane.f32.xlu0 %v5028_v55 }
 0xdf5   :  { %v5034_v45 = vsel %vm1306_vm2, %v5014_v54, -inf  ;;  %v8240_v31 = vadd.f32 %v5005_v19, %v7742_v40 }
 0xdf6   :  { %v4996_v3 = vpop.f32.mrb[34].mxu1 }
 0xdf7   :  { %v7027_v4 = vpop.f32.mrb[35].mxu1  ;;  %v5007_v47 = vmul.f32 0.35355338, %v4996_v3  ;;  %v5031_v60 = vsel %vm1306_vm2, %v8240_v31, -inf }
 0xdf8   :  { %5026 = vmax.xlane.f32.xlu0 %v5025_v21 }
 0xdf9   :  { %v8245_v57 = vadd.f32 %v5007_v47, %v7742_v40 }
 0xdfb   :  { %v5037_v49 = vsel %vm1306_vm2, %v8245_v57, -inf }
 0xdfc   :  { %5035 = vmax.xlane.f32.xlu0 %v5034_v45 }
 0xe01   :  { %4108 = vrot.lane.b32.xlu1 %v3508_v42, %s7417_s22 }
 0xe05   :  { %4114 = vrot.lane.b32.xlu1 %v3508_v42, %s7419_s24 }
 0xe12   :  { %4102 = vrot.lane.b32.xlu0 %v3508_v42, %s7418_s23 }
 0xe29   :  { %5032 = vmax.xlane.f32.xlu1 %v5031_v60 }
 0xe2d   :  { %5038 = vmax.xlane.f32.xlu1 %v5037_v49 }
 0xe3e   :  { %4104 = vrot.lane.b32.xlu1 %v8250_v41, %s7418_s23 }
 0xe79   :  { %v5018_v5 = vpop.xlane.xlu0 %5017 }
 0xe7a   :  { %v5040_v12 = vsub.f32 %v5008_v24, %v5018_v5 }
 0xe7c   :  { %v5048_v61 = vmul.f32 1.442695, %v5040_v12 }
 0xe7d   :  { %v5024_v53 = vpop.xlane.xlu0 %5023  ;;  %v5021_v63 = vpop.xlane.xlu1 %5020 }
 0xe7e   :  { %7318 = vpow2.f32 %v5048_v61  ;;  %v5042_v10 = vsub.f32 %v5010_v26, %v5024_v53  ;;  %v5041_v40 = vsub.f32 %v5009_v32, %v5021_v63 }
 0xe80   :  { %v5052_v13 = vmul.f32 1.442695, %v5042_v10  ;;  %v5050_v37 = vmul.f32 1.442695, %v5041_v40 }
 0xe81   :  { %v5030_v14 = vpop.xlane.xlu0 %5029  ;;  %v4109_v22 = vpop.permute.xlu1 %4108 }
 0xe82   :  { %7320 = vpow2.f32 %v5052_v13  ;;  %v5044_v59 = vsub.f32 %v5012_v62, %v5030_v14  ;;  %v4120_v26 = vcombine.low %v3508_v42, %v4109_v22  ;;  %v4121_v30 = vcombine.high %v3508_v42, %v4109_v22 }
 0xe83   :  { %7322 = vpow2.f32 %v5050_v37 }
 0xe84   :  { %v5056_v51 = vmul.f32 1.442695, %v5044_v59  ;;  %v4128_v44 = vrot.slane %v4120_v26, %v7593_v11  ;;  %v4135_v52 = vrot.slane %v4121_v30, %v7593_v11 }
 0xe85   :  { %v5027_v36 = vpop.xlane.xlu0 %5026  ;;  %v4115_v50 = vpop.permute.xlu1 %4114 }
 0xe86   :  { %7324 = vpow2.f32 %v5056_v51  ;;  %v5043_v46 = vsub.f32 %v5011_v39, %v5027_v36 }
 0xe88   :  { %v8254_v23 = vpop.eup %7318  ;;  %v5054_v24 = vmul.f32 1.442695, %v5043_v46 }
 0xe89   :  { %v5064_v9 = vsel %vm1306_vm2, %v8254_v23, 0.0  ;;  %v5036_v15 = vpop.xlane.xlu0 %5035 }
 0xe8a   :  { %7326 = vpow2.f32 %v5054_v24  ;;  %5065 = vadd.xlane.f32.xlu0 %v5064_v9  ;;  %v5046_v16 = vsub.f32 %v5014_v54, %v5036_v15 }
 0xe8c   :  { %v8258_v25 = vpop.eup %7320  ;;  %v5060_v32 = vmul.f32 1.442695, %v5046_v16 }
 0xe8d   :  { %v8260_v34 = vpop.eup %7322  ;;  %v5070_v6 = vsel %vm1306_vm2, %v8258_v25, 0.0  ;;  %v4103_v38 = vpop.permute.xlu0 %4102 }
 0xe8e   :  { %7328 = vpow2.f32 %v5060_v32  ;;  %5071 = vadd.xlane.f32.xlu0 %v5070_v6  ;;  %v5067_v8 = vsel %vm1306_vm2, %v8260_v34, 0.0  ;;  %v4136_v43 = vcombine.low %v4103_v38, %v4115_v50  ;;  %v4137_v48 = vcombine.high %v4103_v38, %v4115_v50 }
 0xe8f   :  { %5068 = vadd.xlane.f32.xlu1 %v5067_v8 }
 0xe90   :  { %v8266_v62 = vpop.eup %7324  ;;  %v4144_v55 = vrot.slane %v4136_v43, %v7593_v11  ;;  %v4151_v20 = vrot.slane %v4137_v48, %v7593_v11 }
 0xe91   :  { %v5076_v56 = vsel %vm1306_vm2, %v8266_v62, 0.0 }
 0xe92   :  { %v4152_v58 = vcombine.low %v4128_v44, %v4144_v55  ;;  %v4153_v39 = vcombine.high %v4128_v44, %v4144_v55  ;;  %v4168_v3 = vcombine.low %v4135_v52, %v4151_v20  ;;  %v4169_v4 = vcombine.high %v4135_v52, %v4151_v20 }
 0xe93   :  { %5077 = vadd.xlane.f32.xlu1 %v5076_v56 }
 0xe94   :  { %v8274_v21 = vpop.eup %7326  ;;  %v4160_v54 = vrot.slane %v4152_v58, %v7596_v18  ;;  %v4167_v29 = vrot.slane %v4153_v39, %v7596_v18  ;;  %v4176_v45 = vrot.slane %v4168_v3, %v7596_v18  ;;  %v4183_v42 = vrot.slane %v4169_v4, %v7596_v18 }
 0xe95   :  { %v5073_v19 = vsel %vm1306_vm2, %v8274_v21, 0.0 }
 0xe96   :  { %v4256_v47 = vcombine.low %v4160_v54, %v4167_v29  ;;  %v6603_v60 = vcombine.high %v4160_v54, %v4167_v29  ;;  %v4272_v49 = vcombine.low %v4176_v45, %v4183_v42  ;;  %v6604_v5 = vcombine.high %v4176_v45, %v4183_v42 }
 0xe97   :  { %5074 = vadd.xlane.f32.xlu1 %v5073_v19 }
 0xe98   :  { %v8282_v12 = vpop.eup %7328  ;;  %v4263_v61 = vrot.slane %v4256_v47, %v7593_v11  ;;  %v4271_v53 = vrot.slane %v6603_v60, %v7593_v11  ;;  %v4279_v63 = vrot.slane %v4272_v49, %v7593_v11  ;;  %v4287_v10 = vrot.slane %v6604_v5, %v7593_v11 }
 0xe99   :  { %v5082_v40 = vsel %vm1306_vm2, %v8282_v12, 0.0 }
 0xe9a   :  { %5083 = vadd.xlane.f32.xlu0 %v5082_v40  ;;  %v4288_v13 = vcombine.low %v4263_v61, %v4271_v53  ;;  %v4304_v37 = vcombine.low %v4279_v63, %v4287_v10  ;;  %v4289_v14 = vcombine.high %v4263_v61, %v4271_v53  ;;  %v4305_v59 = vcombine.high %v4279_v63, %v4287_v10 }
 0xe9c   :  { %v4296_v51 = vrot.slane %v4288_v13, %v7596_v18  ;;  %v4312_v36 = vrot.slane %v4304_v37, %v7596_v18  ;;  %v4303_v46 = vrot.slane %v4289_v14, %v7596_v18  ;;  %v4319_v22 = vrot.slane %v4305_v59, %v7596_v18 }
 0xe9e   :  { %v4320_v24 = vcombine.low %v4296_v51, %v4312_v36  ;;  %v4321_v9 = vcombine.high %v4296_v51, %v4312_v36  ;;  %v4322_v15 = vcombine.low %v4303_v46, %v4319_v22  ;;  %v4323_v16 = vcombine.high %v4303_v46, %v4319_v22 }
 0xea0   :  { %7029 = vmatpush3.msra.mxu0 %v4320_v24  ;;  %7034 = vmatpush3.msra.mxu1 %v4321_v9 }
 0xea1   :  { %7038 = vmatprep.subr.mxu0 %v7420_v1  ;;  %7043 = vmatprep.subr.mxu1 %v7420_v1 }
 0xea8   :  { %4116 = vrot.lane.b32.xlu1 %v8250_v41, %s7419_s24 }
 0xeb6   :  { %v5033_v26 = vpop.xlane.xlu1 %5032 }
 0xeb7   :  { %v5045_v30 = vsub.f32 %v8240_v31, %v5033_v26 }
 0xeb9   :  { %v5058_v32 = vmul.f32 1.442695, %v5045_v30 }
 0xeba   :  { %v5039_v50 = vpop.xlane.xlu1 %5038 }
 0xebb   :  { %7330 = vpow2.f32 %v5058_v32  ;;  %v5047_v6 = vsub.f32 %v8245_v57, %v5039_v50 }
 0xebd   :  { %v5062_v38 = vmul.f32 1.442695, %v5047_v6 }
 0xebe   :  { %v4105_v52 = vpop.permute.xlu1 %4104 }
 0xebf   :  { %7332 = vpow2.f32 %v5062_v38 }
 0xec5   :  { %v8300_v8 = vpop.eup %7330 }
 0xec6   :  { %v5079_v43 = vsel %vm1306_vm2, %v8300_v8, 0.0 }
 0xec7   :  { %5080 = vadd.xlane.f32.xlu0 %v5079_v43 }
 0xec9   :  { %v8304_v48 = vpop.eup %7332 }
 0xeca   :  { %v5085_v44 = vsel %vm1306_vm2, %v8304_v48, 0.0 }
 0xecb   :  { %5086 = vadd.xlane.f32.xlu0 %v5085_v44 }
 0xee1   :  { %4110 = vrot.lane.b32.xlu0 %v8250_v41, %s7417_s22 }
 0xf17   :  { %v5066_v31 = vpop.xlane.xlu0 %5065 }
 0xf18   :  { %7334 = vrcp.f32 %v5066_v31 }
 0xf1b   :  { %v5072_v57 = vpop.xlane.xlu0 %5071 }
 0xf1c   :  { %7336 = vrcp.f32 %v5072_v57  ;;  %v5069_v55 = vpop.xlane.xlu1 %5068 }
 0xf1d   :  { %7338 = vrcp.f32 %v5069_v55 }
 0xf20   :  { %v5078_v20 = vpop.xlane.xlu1 %5077 }
 0xf22   :  { %v7335_v56 = vpop.eup %7334 }
 0xf23   :  { %v5096_v58 = vmul.f32 %v7335_v56, %v8254_v23 }
 0xf24   :  { %v5075_v39 = vpop.xlane.xlu1 %5074 }
 0xf25   :  { %7031 = vmatmul.mubr.msk.f32.vlgmr.msra.gmra.mrb[30].mxu0 %vm1306_vm2, %v5096_v58  ;;  %7340 = vrcp.f32 %v5075_v39 }
 0xf26   :  { %v7337_v3 = vpop.eup %7336  ;;  %7039 = vmatpush3.msra.mxu0 %v4322_v15  ;;  %7040 = vmatprep.mubr.msk.f32.mxu0 %vm7421_vm1, %v7420_v1  ;;  %7342 = vrcp.f32 %v5078_v20 }
 0xf27   :  { %v7339_v4 = vpop.eup %7338  ;;  %v5098_v54 = vmul.f32 %v7337_v3, %v8258_v25  ;;  %7048 = vmatprep.subr.mxu0 %v7420_v1 }
 0xf28   :  { %v5097_v29 = vmul.f32 %v7339_v4, %v8260_v34  ;;  %v5084_v34 = vpop.xlane.xlu0 %5083  ;;  %v4117_v42 = vpop.permute.xlu1 %4116 }
 0xf29   :  { %7041 = vmatmul.mubr.msk.f32.vlgmr.msra.gmra.mrb[32].mxu0 %vm1306_vm2, %v5098_v54  ;;  %v4204_v47 = vcombine.low %v4105_v52, %v4117_v42  ;;  %v4205_v60 = vcombine.high %v4105_v52, %v4117_v42 }
 0xf2a   :  { %7036 = vmatmul.mubr.msk.f32.vlgmr.msra.gmra.mrb[36].mxu1 %vm1306_vm2, %v5097_v29  ;;  %7050 = vmatprep.mubr.msk.f32.mxu0 %vm7421_vm1, %v7420_v1 }
 0xf2b   :  { %7044 = vmatpush3.msra.mxu1 %v4323_v16  ;;  %7045 = vmatprep.mubr.msk.f32.mxu1 %vm7421_vm1, %v7420_v1  ;;  %v4212_v53 = vrot.slane %v4204_v47, %v7593_v11 }
 0xf2c   :  { %7053 = vmatprep.subr.mxu1 %v7420_v1 }
 0xf2f   :  { %v7341_v23 = vpop.eup %7340 }
 0xf30   :  { %v5099_v25 = vmul.f32 %v7341_v23, %v8274_v21  ;;  %v4219_v21 = vrot.slane %v4205_v60, %v7593_v11  ;;  %v7343_v32 = vpop.eup %7342 }
 0xf31   :  { %v5100_v3 = vmul.f32 %v7343_v32, %v8266_v62 }
 0xf32   :  { %7046 = vmatmul.mubr.msk.f32.vlgmr.msra.gmra.mrb[38].mxu1 %vm1306_vm2, %v5099_v25 }
 0xf33   :  { %7055 = vmatprep.mubr.msk.f32.mxu1 %vm7421_vm1, %v7420_v1 }
 0xf54   :  { %v5081_v45 = vpop.xlane.xlu0 %5080 }
 0xf55   :  { %7344 = vrcp.f32 %v5081_v45 }
 0xf56   :  { %7346 = vrcp.f32 %v5084_v34 }
 0xf58   :  { %v5087_v19 = vpop.xlane.xlu0 %5086 }
 0xf59   :  { %7348 = vrcp.f32 %v5087_v19 }
 0xf5c   :  { %v4111_v49 = vpop.permute.xlu0 %4110 }
 0xf5d   :  { %v4188_v5 = vcombine.low %v8250_v41, %v4111_v49  ;;  %v4189_v61 = vcombine.high %v8250_v41, %v4111_v49 }
 0xf5f   :  { %v4196_v63 = vrot.slane %v4188_v5, %v7593_v11  ;;  %v4203_v10 = vrot.slane %v4189_v61, %v7593_v11  ;;  %v7345_v44 = vpop.eup %7344 }
 0xf60   :  { %v7347_v57 = vpop.eup %7346  ;;  %v5101_v4 = vmul.f32 %v7345_v44, %v8300_v8 }
 0xf61   :  { %v4220_v40 = vcombine.low %v4196_v63, %v4212_v53  ;;  %v4221_v13 = vcombine.high %v4196_v63, %v4212_v53  ;;  %v4236_v37 = vcombine.low %v4203_v10, %v4219_v21  ;;  %v4237_v14 = vcombine.high %v4203_v10, %v4219_v21 }
 0xf62   :  { %v5102_v23 = vmul.f32 %v7347_v57, %v8282_v12 }
 0xf63   :  { %v4228_v59 = vrot.slane %v4220_v40, %v7596_v18  ;;  %v4235_v51 = vrot.slane %v4221_v13, %v7596_v18  ;;  %v4244_v41 = vrot.slane %v4236_v37, %v7596_v18  ;;  %v4251_v36 = vrot.slane %v4237_v14, %v7596_v18  ;;  %v7349_v39 = vpop.eup %7348 }
 0xf64   :  { %v5103_v25 = vmul.f32 %v7349_v39, %v8304_v48 }
 0xf65   :  { %v4324_v46 = vcombine.low %v4228_v59, %v4235_v51  ;;  %v6605_v22 = vcombine.high %v4228_v59, %v4235_v51  ;;  %v4340_v24 = vcombine.low %v4244_v41, %v4251_v36  ;;  %v6606_v9 = vcombine.high %v4244_v41, %v4251_v36 }
 0xf67   :  { %v4331_v15 = vrot.slane %v4324_v46, %v7593_v11  ;;  %v4339_v16 = vrot.slane %v6605_v22, %v7593_v11  ;;  %v4347_v26 = vrot.slane %v4340_v24, %v7593_v11  ;;  %v4355_v30 = vrot.slane %v6606_v9, %v7593_v11 }
 0xf69   :  { %v4356_v50 = vcombine.low %v4331_v15, %v4339_v16  ;;  %v4372_v6 = vcombine.low %v4347_v26, %v4355_v30  ;;  %v4357_v38 = vcombine.high %v4331_v15, %v4339_v16  ;;  %v4373_v43 = vcombine.high %v4347_v26, %v4355_v30 }
 0xf6b   :  { %v4364_v31 = vrot.slane %v4356_v50, %v7596_v18  ;;  %v4380_v52 = vrot.slane %v4372_v6, %v7596_v18  ;;  %v4371_v55 = vrot.slane %v4357_v38, %v7596_v18  ;;  %v4387_v20 = vrot.slane %v4373_v43, %v7596_v18 }
 0xf6d   :  { %v4388_v56 = vcombine.low %v4364_v31, %v4380_v52  ;;  %v4389_v58 = vcombine.high %v4364_v31, %v4380_v52  ;;  %v4390_v54 = vcombine.low %v4371_v55, %v4387_v20  ;;  %v4391_v29 = vcombine.high %v4371_v55, %v4387_v20 }
 0xf6f   :  { %7049 = vmatpush3.msra.mxu0 %v4388_v56  ;;  %7054 = vmatpush3.msra.mxu1 %v4389_v58 }
 0xf70   :  { %7051 = vmatmul.mubr.msk.f32.vlgmr.msra.gmra.mrb[34].mxu0 %vm1306_vm2, %v5100_v3  ;;  %7056 = vmatmul.mubr.msk.f32.vlgmr.msra.gmra.mrb[40].mxu1 %vm1306_vm2, %v5101_v4 }
 0xf71   :  { %7058 = vmatprep.subr.mxu0 %v7420_v1  ;;  %7063 = vmatprep.subr.mxu1 %v7420_v1 }
 0xf72   :  { %7059 = vmatpush3.msra.mxu0 %v4390_v54  ;;  %7064 = vmatpush3.msra.mxu1 %v4391_v29 }
 0xf73   :  { %7060 = vmatprep.mubr.msk.f32.mxu0 %vm7421_vm1, %v7420_v1  ;;  %7065 = vmatprep.mubr.msk.f32.mxu1 %vm7421_vm1, %v7420_v1 }
 0xf74   :  { %7061 = vmatmul.mubr.msk.f32.vlgmr.msra.gmra.mrb[36].mxu0 %vm1306_vm2, %v5102_v23  ;;  %7066 = vmatmul.mubr.msk.f32.vlgmr.msra.gmra.mrb[42].mxu1 %vm1306_vm2, %v5103_v25 }
 0xff8   :  { %v5173_v62 = vpop.f32.mrb[30].mxu0 }
 0xff9   :  { %v7032_v8 = vpop.f32.mrb[31].mxu0 }
 0xffc   :  { %v5319_v34 = vpop.f32.mrb[32].mxu0 }
 0xffd   :  { %v5246_v45 = vpop.f32.mrb[36].mxu1  ;;  %v5688_v42 = vcombine.low %v5173_v62, %v5319_v34  ;;  %v5689_v12 = vcombine.high %v5173_v62, %v5319_v34  ;;  %v7042_v19 = vpop.f32.mrb[33].mxu0 }
 0xffe   :  { %v7037_v48 = vpop.f32.mrb[37].mxu1 }
 0xfff   :  { %v5696_v61 = vrot.slane %v5688_v42, %v7593_v11  ;;  %v5703_v53 = vrot.slane %v5689_v12, %v7593_v11 }
0x1005   :  { %v5392_v47 = vpop.f32.mrb[38].mxu1 }
0x1006   :  { %v5704_v60 = vcombine.low %v5246_v45, %v5392_v47  ;;  %v5705_v49 = vcombine.high %v5246_v45, %v5392_v47  ;;  %v7047_v5 = vpop.f32.mrb[39].mxu1 }
0x1007   :  { %v88_v5 = vld [vmem:[#allocation2 + $0xe0] sm:$0xff] }
0x1008   :  { %v5712_v21 = vrot.slane %v5704_v60, %v7593_v11  ;;  %v5719_v63 = vrot.slane %v5705_v49, %v7593_v11 }
0x100a   :  { %v5720_v10 = vcombine.low %v5696_v61, %v5712_v21  ;;  %v5721_v40 = vcombine.high %v5696_v61, %v5712_v21  ;;  %v5736_v13 = vcombine.low %v5703_v53, %v5719_v63  ;;  %v5737_v37 = vcombine.high %v5703_v53, %v5719_v63  ;;  %v89_v61 = vld [vmem:[#allocation2 + $0xe8] sm:$0xff] }
0x100c   :  { %v5728_v14 = vrot.slane %v5720_v10, %v7596_v18  ;;  %v5735_v59 = vrot.slane %v5721_v40, %v7596_v18  ;;  %v5744_v51 = vrot.slane %v5736_v13, %v7596_v18  ;;  %v5751_v41 = vrot.slane %v5737_v37, %v7596_v18 }
0x100d   :  { %v7211_v40 = vpack.c.bf16 %v89_v61, %v88_v5 }
0x100e   :  { %v5824_v36 = vcombine.low %v5728_v14, %v5735_v59  ;;  %v6631_v46 = vcombine.high %v5728_v14, %v5735_v59  ;;  %v5840_v22 = vcombine.low %v5744_v51, %v5751_v41  ;;  %v6632_v24 = vcombine.high %v5744_v51, %v5751_v41  ;;  %v90_v51 = vld [vmem:[#allocation2 + $0xf0] sm:$0xff]  ;;  %v91_v41 = vld [vmem:[#allocation2 + $0xf8] sm:$0xff] }
0x100f   :  { %7212 = vmatprep.subr.bf16.mxu0 %v7211_v40 }
0x1010   :  { %v5831_v9 = vrot.slane %v5824_v36, %v7593_v11  ;;  %v5839_v15 = vrot.slane %v6631_v46, %v7593_v11  ;;  %v5847_v16 = vrot.slane %v5840_v22, %v7593_v11  ;;  %v5855_v26 = vrot.slane %v6632_v24, %v7593_v11  ;;  %7214 = vmatpush3.bf16.msra.mxu0 %v7211_v40 }
0x1012   :  { %v5857_v30 = vcombine.high %v5831_v9, %v5839_v15  ;;  %v5873_v32 = vcombine.high %v5847_v16, %v5855_v26  ;;  %v5856_v50 = vcombine.low %v5831_v9, %v5839_v15  ;;  %v5872_v6 = vcombine.low %v5847_v16, %v5855_v26 }
0x1013   :  { %v7215_v9 = vpack.c.bf16 %v91_v41, %v90_v51 }
0x1014   :  { %v5871_v38 = vrot.slane %v5857_v30, %v7596_v18  ;;  %v5887_v43 = vrot.slane %v5873_v32, %v7596_v18  ;;  %v8375_v44 = vrot.slane %v5856_v50, %v7596_v18  ;;  %v8378_v31 = vrot.slane %v5872_v6, %v7596_v18 }
0x1015   :  { %7216 = vmatprep.subr.bf16.mxu0 %v7215_v9 }
0x1016   :  { %v5890_v52 = vcombine.low %v5871_v38, %v5887_v43  ;;  %v5889_v57 = vcombine.high %v8375_v44, %v8378_v31  ;;  %v5888_v55 = vcombine.low %v8375_v44, %v8378_v31  ;;  %v5891_v20 = vcombine.high %v5871_v38, %v5887_v43  ;;  %7218 = vmatpush3.bf16.msra.mxu0 %v7215_v9  ;;  %v8420_v44 = vld [vmem:[%s8547_s6 + $0x10] sm:$0xff] }
0x1017   :  { %v5993_v31 = vrot.slane %v8420_v44, %v2919_v7 }
0x1018   :  { %5970 = vrot.lane.b32.xlu0 %v5890_v52, %s7425_s1  ;;  %5962 = vrot.lane.b32.xlu1 %v5889_v57, %s7416_s14 }
0x101c   :  { %5978 = vrot.lane.b32.xlu0 %v5891_v20, %s7426_s27 }
0x1043   :  { %v5465_v56 = vpop.f32.mrb[34].mxu0  ;;  %v5538_v58 = vpop.f32.mrb[40].mxu1 }
0x1044   :  { %v7052_v39 = vpop.f32.mrb[35].mxu0  ;;  %v7057_v3 = vpop.f32.mrb[41].mxu1 }
0x1047   :  { %v5611_v4 = vpop.f32.mrb[36].mxu0  ;;  %v5684_v54 = vpop.f32.mrb[42].mxu1 }
0x1048   :  { %v5756_v29 = vcombine.low %v5465_v56, %v5611_v4  ;;  %v5757_v23 = vcombine.high %v5465_v56, %v5611_v4  ;;  %v5772_v25 = vcombine.low %v5538_v58, %v5684_v54  ;;  %v5773_v62 = vcombine.high %v5538_v58, %v5684_v54  ;;  %v7062_v8 = vpop.f32.mrb[37].mxu0  ;;  %v7067_v34 = vpop.f32.mrb[43].mxu1 }
0x104a   :  { %v5764_v45 = vrot.slane %v5756_v29, %v7593_v11  ;;  %v5771_v42 = vrot.slane %v5757_v23, %v7593_v11  ;;  %v5780_v12 = vrot.slane %v5772_v25, %v7593_v11  ;;  %v5787_v19 = vrot.slane %v5773_v62, %v7593_v11 }
0x104c   :  { %v5788_v48 = vcombine.low %v5764_v45, %v5780_v12  ;;  %v5789_v47 = vcombine.high %v5764_v45, %v5780_v12  ;;  %v5804_v60 = vcombine.low %v5771_v42, %v5787_v19  ;;  %v5805_v49 = vcombine.high %v5771_v42, %v5787_v19 }
0x104e   :  { %v5796_v53 = vrot.slane %v5788_v48, %v7596_v18  ;;  %v5803_v21 = vrot.slane %v5789_v47, %v7596_v18  ;;  %v5812_v63 = vrot.slane %v5804_v60, %v7596_v18  ;;  %v5819_v10 = vrot.slane %v5805_v49, %v7596_v18 }
0x1050   :  { %v5892_v13 = vcombine.low %v5796_v53, %v5803_v21  ;;  %v6633_v37 = vcombine.high %v5796_v53, %v5803_v21  ;;  %v5908_v14 = vcombine.low %v5812_v63, %v5819_v10  ;;  %v6634_v59 = vcombine.high %v5812_v63, %v5819_v10  ;;  %v97_v10 = vld [vmem:[%s8545_s4 + $0x28] sm:$0xff] }
0x1052   :  { %v5899_v36 = vrot.slane %v5892_v13, %v7593_v11  ;;  %v5907_v46 = vrot.slane %v6633_v37, %v7593_v11  ;;  %v5915_v22 = vrot.slane %v5908_v14, %v7593_v11  ;;  %v5923_v24 = vrot.slane %v6634_v59, %v7593_v11  ;;  %v98_v13 = vld [vmem:[%s8545_s4 + $0x30] sm:$0xff]  ;;  %v99_v37 = vld [vmem:[%s8545_s4 + $0x38] sm:$0xff] }
0x1053   :  { %v7223_v14 = vpack.c.bf16 %v99_v37, %v98_v13 }
0x1054   :  { %v5924_v15 = vcombine.low %v5899_v36, %v5907_v46  ;;  %v5940_v16 = vcombine.low %v5915_v22, %v5923_v24  ;;  %v5925_v26 = vcombine.high %v5899_v36, %v5907_v46  ;;  %v5941_v30 = vcombine.high %v5915_v22, %v5923_v24 }
0x1055   :  { %v6106_v24 = vrot.slane %v8420_v44, %v3032_v33  ;;  %v108_v33 = vld [vmem:[%s8546_s5 + $0x40] sm:$0xff] }
0x1056   :  { %v5932_v32 = vrot.slane %v5924_v15, %v7596_v18  ;;  %v5948_v50 = vrot.slane %v5940_v16, %v7596_v18  ;;  %v5939_v6 = vrot.slane %v5925_v26, %v7596_v18  ;;  %v5955_v38 = vrot.slane %v5941_v30, %v7596_v18 }
0x1057   :  { %v6112_v16 = vrot.slane %v8420_v44, %v3038_v2  ;;  %v109_v2 = vld [vmem:[%s8546_s5 + $0x48] sm:$0xff] }
0x1058   :  { %v5957_v43 = vcombine.high %v5932_v32, %v5948_v50  ;;  %v5956_v52 = vcombine.low %v5932_v32, %v5948_v50  ;;  %v5958_v57 = vcombine.low %v5939_v6, %v5955_v38  ;;  %v5959_v11 = vcombine.high %v5939_v6, %v5955_v38 }
0x105a   :  { %5964 = vrot.lane.b32.xlu1 %v5957_v43, %s7416_s14  ;;  %v110_v43 = vld [vmem:[%s8546_s5 + $0x50] sm:$0xff] }
0x105e   :  { %5972 = vrot.lane.b32.xlu1 %v5958_v57, %s7425_s1  ;;  %v111_v57 = vld [vmem:[%s8546_s5 + $0x58] sm:$0xff] }
0x1062   :  { %5980 = vrot.lane.b32.xlu1 %v5959_v11, %s7426_s27  ;;  %v7231_v11 = vpack.c.bf16 %v111_v57, %v110_v43 }
0x108a   :  { %v5971_v20 = vpop.permute.xlu0 %5970  ;;  %v5963_v56 = vpop.permute.xlu1 %5962 }
0x108b   :  { %v5984_v58 = vsel %vm1306_vm2, %v5888_v55, %v5963_v56  ;;  %v113_v56 = vld [vmem:[%s8546_s5 + $0x68] sm:$0xff] }
0x108c   :  { %v5986_v18 = vsel %vm2911_vm3, %v5984_v58, %v5971_v20  ;;  %v112_v20 = vld [vmem:[%s8546_s5 + $0x60] sm:$0xff] }
0x108d   :  { %v7235_v58 = vpack.c.bf16 %v113_v56, %v112_v20  ;;  %v6336_v56 = vrot.slane %v8420_v44, %v3263_v17  ;;  %v6435_v17 = vld [vmem:[%s8551_s10 + $0x8] sm:$0xff] }
0x108e   :  { %v5979_v39 = vpop.permute.xlu0 %5978 }
0x108f   :  { %v5988_v3 = vsel %vm2914_vm4, %v5986_v18, %v5979_v39  ;;  %v114_v39 = vld [vmem:[%s8546_s5 + $0x70] sm:$0xff]  ;;  %v115_v18 = vld [vmem:[%s8546_s5 + $0x78] sm:$0xff] }
0x1090   :  { %7076 = vmatprep.mubr.msk.f32.mxu0 %vm122_vm0, %v5988_v3  ;;  %v7239_v3 = vpack.c.bf16 %v115_v18, %v114_v39 }
0x10cc   :  { %v5965_v4 = vpop.permute.xlu1 %5964 }
0x10cd   :  { %v5985_v29 = vsel %vm1306_vm2, %v5956_v52, %v5965_v4  ;;  %v7227_v52 = vpack.c.bf16 %v109_v2, %v108_v33  ;;  %v6637_v4 = vld [vmem:[%s8548_s7 + $0x1] ss:$0 sm:$0xff] }
0x10cf   :  { %7228 = vmatprep.subr.bf16.mxu0 %v7227_v52 }
0x10d0   :  { %v5973_v54 = vpop.permute.xlu1 %5972 }
0x10d1   :  { %v5987_v23 = vsel %vm2911_vm3, %v5985_v29, %v5973_v54 }
0x10d4   :  { %v5981_v25 = vpop.permute.xlu1 %5980 }
0x10d5   :  { %v5989_v62 = vsel %vm2914_vm4, %v5987_v23, %v5981_v25 }
0x10d6   :  { %7077 = vmatmul.mubr.msk.f32.vlgmr.msra.gmra.mrb[38].mxu0 %vm122_vm0, %v5989_v62 }
0x10d7   :  { %7230 = vmatpush3.bf16.msra.mxu0 %v7227_v52 }
0x10d8   :  { %7232 = vmatprep.subr.bf16.mxu0 %v7231_v11 }
0x10db   :  { %7234 = vmatpush3.bf16.msra.mxu0 %v7231_v11 }
0x10dc   :  { %7236 = vmatprep.subr.bf16.mxu0 %v7235_v58 }
0x10df   :  { %7238 = vmatpush3.bf16.msra.mxu0 %v7235_v58 }
0x10e0   :  { %7240 = vmatprep.subr.bf16.mxu0 %v7239_v3 }
0x10e3   :  { %7242 = vmatpush3.bf16.msra.mxu0 %v7239_v3 }
0x11a9   :  { %v7078_v55 = vpop.f32.mrb[38].mxu0 }
0x11aa   :  { %v6072_v8 = vadd.f32 %v7078_v55, %v5993_v31  ;;  %v6066_v34 = vpop.f32.mrb[39].mxu0 }
0x11ab   :  { %v6067_v45 = vadd.f32 %v6066_v34, %v5993_v31 }
0x11ac   :  { %v6076_v42 = vadd.f32 %v6072_v8, %v8020_v28 }
0x11ad   :  { %v6075_v12 = vadd.f32 %v6067_v45, %v8018_v27  ;;  %v96_v27 = vld [vmem:[%s8545_s4 + $0x20] sm:$0xff] }
0x11ae   :  { %v6080_v19 = vsel %vm122_vm0, %v6076_v42, 0.0  ;;  %v7219_v40 = vpack.c.bf16 %v97_v10, %v96_v27 }
0x11af   :  { %6081 = vadd.xlane.f32.xlu1 %v6080_v19  ;;  %v6077_v48 = vsel %vm122_vm0, %v6075_v12, 0.0 }
0x11b0   :  { %6078 = vadd.xlane.f32.xlu0 %v6077_v48  ;;  %7220 = vmatprep.subr.bf16.mxu1 %v7219_v40 }
0x11b1   :  { %7222 = vmatpush3.bf16.msra.mxu1 %v7219_v40 }
0x11b2   :  { %7224 = vmatprep.subr.bf16.mxu1 %v7223_v14 }
0x11b5   :  { %7226 = vmatpush3.bf16.msra.mxu1 %v7223_v14 }
0x123c   :  { %v6082_v47 = vpop.xlane.xlu1 %6081 }
0x123d   :  { %v6084_v60 = vmul.f32 0.03125, %v6082_v47  ;;  %v6079_v49 = vpop.xlane.xlu0 %6078 }
0x123e   :  { %v6083_v5 = vmul.f32 0.03125, %v6079_v49 }
0x123f   :  { %v6086_v61 = vsub.f32 %v6076_v42, %v6084_v60 }
0x1240   :  { %v6085_v7 = vsub.f32 %v6075_v12, %v6083_v5 }
0x1241   :  { %v6088_v63 = vmul.f32 %v6086_v61, %v6086_v61 }
0x1242   :  { %v6087_v53 = vmul.f32 %v6085_v7, %v6085_v7 }
0x1243   :  { %v6092_v28 = vsel %vm122_vm0, %v6088_v63, 0.0  ;;  %v6223_v63 = vrot.slane %v8420_v44, %v3149_v0  ;;  %v6436_v44 = vld [vmem:[%s8551_s10 + $0x10] sm:$0xff] }
0x1244   :  { %v6089_v21 = vsel %vm122_vm0, %v6087_v53, 0.0 }
0x1245   :  { %6090 = vadd.xlane.f32.xlu0 %v6089_v21 }
0x1249   :  { %6093 = vadd.xlane.f32.xlu0 %v6092_v28 }
0x12d2   :  { %v6091_v59 = vpop.xlane.xlu0 %6090 }
0x12d3   :  { %v6095_v51 = vmul.f32 0.03125, %v6091_v59 }
0x12d5   :  { %v6097_v41 = vadd.f32 1e-12, %v6095_v51 }
0x12d6   :  { %v6094_v36 = vpop.xlane.xlu0 %6093 }
0x12d7   :  { %7350 = vrsqrt.f32 %v6097_v41  ;;  %v6096_v46 = vmul.f32 0.03125, %v6094_v36 }
0x12d9   :  { %v6098_v22 = vadd.f32 1e-12, %v6096_v46 }
0x12db   :  { %7352 = vrsqrt.f32 %v6098_v22 }
0x12e1   :  { %v7351_v9 = vpop.eup %7350 }
0x12e2   :  { %v6101_v15 = vmul.f32 %v7351_v9, %v6085_v7 }
0x12e4   :  { %v6107_v26 = vmul.f32 %v6106_v24, %v6101_v15 }
0x12e5   :  { %v7353_v30 = vpop.eup %7352 }
0x12e6   :  { %v6102_v32 = vmul.f32 %v7353_v30, %v6086_v61  ;;  %v6113_v50 = vadd.f32 %v6112_v16, %v6107_v26  ;;  %v6345_v26 = vld [vmem:[%s8549_s8] sm:$0xff]  ;;  %v6346_v30 = vld [vmem:[%s8549_s8 + $0x8] sm:$0xff] }
0x12e8   :  { %v6108_v6 = vmul.f32 %v6106_v24, %v6102_v32  ;;  %7087 = vmatprep.mubr.msk.f32.mxu1 %vm122_vm0, %v6113_v50  ;;  %v6347_v32 = vld [vmem:[%s8549_s8 + $0x10] sm:$0xff] }
0x12ea   :  { %v6114_v38 = vadd.f32 %v6112_v16, %v6108_v6  ;;  %v7244_v6 = vpack.c.bf16 %v6346_v30, %v6345_v26 }
0x12ec   :  { %7088 = vmatmul.mubr.msk.f32.vlgmr.msra.gmra.mrb[44].mxu1 %vm122_vm0, %v6114_v38 }
0x12ed   :  { %7117 = vmatprep.mubr.msk.f32.mxu1 %vm7421_vm1, %v7420_v1 }
0x13bf   :  { %v7089_v54 = vpop.f32.mrb[44].mxu1 }
0x13c0   :  { %v6199_v29 = vadd.f32 %v7089_v54, %v6637_v4  ;;  %v6193_v23 = vpop.f32.mrb[45].mxu1 }
0x13c1   :  { %v6194_v25 = vadd.f32 %v6637_v4, %v6193_v23  ;;  %v6642_v4 = vld [vmem:[%s8547_s6 + $0x18] ss:$0 sm:$0xff] }
0x13c2   :  { %v6205_v62 = vmul.f32 0.044715, %v6199_v29  ;;  %v6203_v7 = vmul.f32 0.5, %v6199_v29 }
0x13c3   :  { %v6204_v31 = vmul.f32 0.044715, %v6194_v25  ;;  %v6202_v5 = vmul.f32 0.5, %v6194_v25 }
0x13c4   :  { %v6207_v55 = vmul.f32 %v6205_v62, %v6199_v29 }
0x13c5   :  { %v6206_v8 = vmul.f32 %v6204_v31, %v6194_v25 }
0x13c6   :  { %v6209_v34 = vmul.f32 %v6207_v55, %v6199_v29  ;;  %v7250_v55 = vpack.c.bf16 %v6435_v17, %v6434_v35 }
0x13c7   :  { %v6208_v45 = vmul.f32 %v6206_v8, %v6194_v25  ;;  %v6437_v8 = vld [vmem:[%s8551_s10 + $0x18] sm:$0xff]  ;;  %s7428_s10 = smov [#allocation5]  }
0x13c8   :  { %v6211_v42 = vadd.f32 %v6209_v34, %v6199_v29  ;;  %v7253_v34 = vpack.c.bf16 %v6437_v8, %v6436_v44  ;;  %s6525_s14 = sshll.u32 %s7428_s10, 4  ;;  %s6526_s14 = int_to_ptr.vmem [resolvable:$true] %s6525_s14 }
0x13c9   :  { %v6210_v12 = vadd.f32 %v6208_v45, %v6194_v25  ;;  %s7388_s22 = scalar_lea.vmem %s6526_s14, 32  ;;  %p7393_p9 = scmp.lt.s32.totalorder %s6526_s14, %s6526_s14 }
0x13ca   :  { %v6213_v19 = vmul.f32 0.7978846, %v6211_v42  ;;  %p7389_p8 = scmp.ne.s32.totalorder %s6526_s14, %s7388_s22  ;;  %p7394_p10 = scmp.lt.s32.totalorder %s7388_s22, %s7388_s22 }
0x13cb   :  { %v6212_v48 = vmul.f32 0.7978846, %v6210_v12 }
0x13cc   :  { %7354 = vtanh.f32 %v6213_v19  ;;  %p7395_p11 = por %p7394_p10, %p7393_p9 }
0x13cd   :  { %7356 = vtanh.f32 %v6212_v48  ;;  %v6645_v48 = vld [vmem:[%s8552_s11] ss:$0 sm:$0xff] }
0x13ce   :  { %p7396_p12 = pnand %p7395_p11, %p7389_p8 }
0x13d6   :  { %v7355_v47 = vpop.eup %7354 }
0x13d7   :  { %v7357_v60 = vpop.eup %7356  ;;  %v6217_v49 = vadd.f32 1.0, %v7355_v47 }
0x13d8   :  { %v6216_v61 = vadd.f32 1.0, %v7357_v60 }
0x13d9   :  { %v6219_v21 = vmul.f32 %v6217_v49, %v6203_v7 }
0x13da   :  { %v6218_v53 = vmul.f32 %v6216_v61, %v6202_v5 }
0x13dc   :  { %7106 = vmatprep.mubr.msk.f32.mxu0 %vm3151_vm5, %v6218_v53 }
0x13dd   :  { %7107 = vmatmul.mubr.msk.f32.vlgmr.msra.gmra.mrb[40].mxu0 %vm3151_vm5, %v6219_v21 }
0x14b0   :  { %v7108_v28 = vpop.f32.mrb[40].mxu0 }
0x14b1   :  { %v6302_v27 = vadd.f32 %v7108_v28, %v6223_v63  ;;  %v6296_v10 = vpop.f32.mrb[41].mxu0 }
0x14b2   :  { %v6297_v40 = vadd.f32 %v6296_v10, %v6223_v63 }
0x14b3   :  { %v6306_v13 = vadd.f32 %v6302_v27, %v6114_v38  ;;  %v6348_v38 = vld [vmem:[%s8549_s8 + $0x18] sm:$0xff] }
0x14b4   :  { %v6305_v37 = vadd.f32 %v6297_v40, %v6113_v50  ;;  %v7427_v50 = vmov 0.0|0.0   ;;  %v7247_v33 = vpack.c.bf16 %v6348_v38, %v6347_v32 }
0x14b5   :  { %v6310_v14 = vsel %vm122_vm0, %v6306_v13, 0.0  ;;  %7243 = vmatprep.subr.bf16.mxu1 %v7427_v50 }
0x14b6   :  { %6311 = vadd.xlane.f32.xlu0 %v6310_v14  ;;  %v6307_v59 = vsel %vm122_vm0, %v6305_v37, 0.0  ;;  %7245 = vmatpush3.bf16.msra.mxu1 %v7244_v6 }
0x14b7   :  { %6308 = vadd.xlane.f32.xlu1 %v6307_v59  ;;  %7246 = vmatprep.subr.bf16.mxu1 %v7427_v50 }
0x14ba   :  { %7248 = vmatpush3.bf16.msra.mxu1 %v7247_v33 }
0x14bb   :  { %7249 = vmatprep.subr.bf16.mxu1 %v7427_v50 }
0x1543   :  { %v6312_v51 = vpop.xlane.xlu0 %6311 }
0x1544   :  { %v6314_v41 = vmul.f32 0.03125, %v6312_v51  ;;  %v6309_v36 = vpop.xlane.xlu1 %6308 }
0x1545   :  { %v6313_v46 = vmul.f32 0.03125, %v6309_v36 }
0x1546   :  { %v6316_v22 = vsub.f32 %v6306_v13, %v6314_v41 }
0x1547   :  { %v6315_v24 = vsub.f32 %v6305_v37, %v6313_v46 }
0x1548   :  { %v6318_v9 = vmul.f32 %v6316_v22, %v6316_v22 }
0x1549   :  { %v6317_v0 = vmul.f32 %v6315_v24, %v6315_v24 }
0x154a   :  { %v6322_v15 = vsel %vm122_vm0, %v6318_v9, 0.0 }
0x154b   :  { %6323 = vadd.xlane.f32.xlu0 %v6322_v15  ;;  %v6319_v16 = vsel %vm122_vm0, %v6317_v0, 0.0 }
0x154c   :  { %6320 = vadd.xlane.f32.xlu1 %v6319_v16 }
0x15d8   :  { %v6324_v2 = vpop.xlane.xlu0 %6323 }
0x15d9   :  { %v6326_v43 = vmul.f32 0.03125, %v6324_v2  ;;  %v6321_v52 = vpop.xlane.xlu1 %6320 }
0x15da   :  { %v6325_v57 = vmul.f32 0.03125, %v6321_v52 }
0x15db   :  { %v6328_v11 = vadd.f32 1e-12, %v6326_v43 }
0x15dc   :  { %v6327_v20 = vadd.f32 1e-12, %v6325_v57 }
0x15dd   :  { %7358 = vrsqrt.f32 %v6328_v11 }
0x15de   :  { %7360 = vrsqrt.f32 %v6327_v20 }
0x15e7   :  { %v7359_v58 = vpop.eup %7358 }
0x15e8   :  { %v7361_v39 = vpop.eup %7360  ;;  %v6332_v18 = vmul.f32 %v7359_v58, %v6316_v22 }
0x15e9   :  { %v6331_v3 = vmul.f32 %v7361_v39, %v6315_v24 }
0x15ea   :  { %v6338_v54 = vmul.f32 %v6336_v56, %v6332_v18 }
0x15eb   :  { %v6337_v29 = vmul.f32 %v6336_v56, %v6331_v3 }
0x15ec   :  { %v6344_v23 = vadd.f32 %v6642_v4, %v6338_v54 }
0x15ed   :  { %v6343_v25 = vadd.f32 %v6642_v4, %v6337_v29 }
0x15ee   :  { %v6358_v62 = vrot.slane %v6344_v23, 7 }
0x15f0   :  { %v6360_v31 = vsel %vm6359_vm6, %v6358_v62, %v6343_v25 }
0x15f1   :  { %7118 = vmatmul.mubr.msk.f32.vlgmr.msra.gmra.mrb[46].mxu1 %vm122_vm0, %v6360_v31 }
0x15f2   :  { %7128 = vmatprep.mubr.msk.f32.mxu1 %vm7421_vm1, %v7420_v1  ;;  %7251 = vmatpush3.bf16.msra.mxu1 %v7250_v55  ;;  %v6643_v1 = vld [vmem:[%s8550_s9] ss:$0 sm:$0xff] }
0x15f3   :  { %7252 = vmatprep.subr.bf16.mxu1 %v7427_v50 }
0x15f6   :  { %7254 = vmatpush3.bf16.msra.mxu1 %v7253_v34 }
0x16c4   :  { %v6429_v45 = vpop.f32.mrb[46].mxu1 }
0x16c5   :  { %v6430_v42 = vadd.f32 %v6643_v1, %v6429_v45  ;;  %v7119_v12 = vpop.f32.mrb[47].mxu1 }
0x16c7   :  { %7362 = vtanh.f32 %v6430_v42 }
0x16d1   :  { %v7363_v19 = vpop.eup %7362 }
0x16d2   :  { %7129 = vmatmul.mubr.msk.f32.vlgmr.msra.gmra.mrb[48].mxu1 %vm122_vm0, %v7363_v19 }
0x17a5   :  { %v6514_v47 = vpop.f32.mrb[48].mxu1 }
0x17a6   :  { %v6515_v60 = vadd.f32 %v6645_v48, %v6514_v47  ;;  %v7130_v49 = vpop.f32.mrb[49].mxu1 }
0x17a8   :  { %6518 = vst [vmem:[#allocation5] sm:$0x3] %v6515_v60 }
0x17a9   :  { %7399 = shalt.err (!%p7396_p12)
}
0x17aa   :  { %s7400_s24 = scalar_lea.hbm %s8553_s12, 32 }
0x17ab   :  { %p7401_p13 = scmp.ne.s32.totalorder %s8553_s12, %s7400_s24  ;;  %p7404_p0 = scmp.lt.u32.totalorder %s7400_s24, %s8553_s12 }
0x17ad   :  { %p7406_p1 = pnand %p7404_p0, %p7401_p13 }
0x17af   :  { %7409 = shalt.err (!%p7406_p1)
}
0x17b0   :  { %6528 = dma.vmem_to_hbm [thread:$0]  %s6526_s14, 32, %s8553_s12, [#allocation4]  }
0x17b1   :  { %7412 = dma.done.wait [#allocation4], 32  }
0x17b2   :  { %7413 = vsyncadd [#allocation4], 4294967264 }
0x17b3   :  { %6532 = vsyncpa [#allocation3], 1 }
0x17b4   :  { %6533 = vsyncpa [#allocation4], 1 }

</bundles_post_ra>
